<compile_context>
chip_gen: v6e
topology: v6e:2x2x1
jax: 0.10.0
libtpu: 0.0.40
codegen_flags: <defaults>
</compile_context>

<pallas_src>
import jax
import jax.numpy as jnp
from jax.experimental import pallas as pl
from jax.experimental.pallas import tpu as pltpu

NEG_SLOPE = 0.01   # torch.nn.LeakyReLU default
LN_EPS = 1e-5      # torch.nn.LayerNorm default


# ---------------------------------------------------------------------------
# in-kernel helpers
# ---------------------------------------------------------------------------
def _mm(a, b):
    # shared-weight matmul: bf16 operands on the MXU, f32 accumulation
    return jnp.dot(a.astype(jnp.bfloat16), b.astype(jnp.bfloat16),
                   preferred_element_type=jnp.float32)


def _bmm(a, b):
    # per-graph (batched) matmul: bf16 operands, f32 accumulation
    return jnp.einsum("bqk,bkf->bqf",
                      a.astype(jnp.bfloat16), b.astype(jnp.bfloat16),
                      preferred_element_type=jnp.float32)


def _leaky(x):
    return jnp.where(x >= 0, x, NEG_SLOPE * x)


def _elu(x):
    # clamp the exp argument so the discarded branch never produces inf
    return jnp.where(x > 0, x, jnp.exp(jnp.minimum(x, 0.0)) - 1.0)


def _layernorm(x):
    # a fresh nn.LayerNorm(dim) is built every forward in torch -> weight=1, bias=0
    mean = jnp.mean(x, axis=-1, keepdims=True)
    var = jnp.mean((x - mean) ** 2, axis=-1, keepdims=True)
    return (x - mean) * jax.lax.rsqrt(var + LN_EPS)


def _masked_softmax(e, mask):
    z = jnp.where(mask, e, -9.0e15)
    m = jnp.max(z, axis=-1, keepdims=True)
    p = jnp.exp(z - m)
    s = jnp.sum(p, axis=-1, keepdims=True)
    att = p * pl.reciprocal(s, approx=True)     # EUP slot, frees VALU
    return jnp.where(mask, att, 0.0)            # post-softmax re-mask (as in torch)


def _attention_block(xf, mask, bt, n, Wcat, A, Wf, bf):
    """Multi-head GAT + reshape_fc + optional residual + LayerNorm (torch Attention).

    xf:   (bt*n, fin) flattened activations (shared-weight matmuls)
    mask: (bt, n, n) boolean adjacency mask
    """
    fin = xf.shape[1]
    fout = Wf.shape[1]
    nheads = A.shape[1] // 2
    Wh_all = _mm(xf, Wcat)                                   # (bt*n, nheads*fout)
    scores = _mm(Wh_all, A).reshape(bt, n, 2 * nheads)       # per-head (Wh.a1, Wh.a2)
    Wh_b = Wh_all.reshape(bt, n, nheads * fout)
    acc = None
    for h in range(nheads):
        Wh = Wh_b[:, :, h * fout:(h + 1) * fout]             # (bt, n, fout)
        s1 = scores[:, :, 2 * h:2 * h + 1]                   # (bt, n, 1)
        s2 = scores[:, :, 2 * h + 1:2 * h + 2]               # (bt, n, 1)
        # torch: e = leakyrelu(Wh_a1 @ Wh_a2^T)   (multiplicative outer product)
        e = _leaky(s1 * jnp.transpose(s2, (0, 2, 1)))        # (bt, n, n)
        att = _masked_softmax(e, mask)
        hp = _elu(_bmm(att, Wh))                             # concat=True heads -> ELU
        # fold reshape_fc per head: the concat of head outputs never exists
        part = _mm(hp.reshape(bt * n, fout), Wf[h * fout:(h + 1) * fout, :])
        acc = part if acc is None else acc + part
    y = acc + bf
    if fout == fin:       # residual iff shapes match (static, as in torch)
        y = y + xf
    return _layernorm(y)


def _gat_single(xf, mask, bt, n, W, a_pair):
    """Single-head GraphAttentionLayer with concat=False (no ELU)."""
    fout = W.shape[1]
    Wh = _mm(xf, W)                                          # (bt*n, fout)
    s = _mm(Wh, a_pair).reshape(bt, n, 2)                    # cols: (Wh.a1, Wh.a2)
    e = _leaky(s[:, :, 0:1] * jnp.transpose(s[:, :, 1:2], (0, 2, 1)))
    att = _masked_softmax(e, mask)
    hp = _bmm(att, Wh.reshape(bt, n, fout))                  # (bt, n, fout)
    return hp.reshape(bt * n, fout)


# ---------------------------------------------------------------------------
# Fused whole-network kernel: one batch TILE per grid step
# ---------------------------------------------------------------------------
# weight ordering inside `refs[:-1]`:
#   [ 0:12]  FEL  : W1a b1a W1b b1b W2a b2a W2b b2b W3a b3a W3b b3b
#   [12:24]  att0..att2        : (Wcat, A, Wf, bf) x 3
#   [24:26]  out_att           : (W, a_pair)
#   [26:38]  att0_t..att2_t    : (Wcat, A, Wf, bf) x 3
#   [38:40]  out_att_t         : (W, a_pair)
#   [40:43]  projection        : Wp_fwd (1,nhid), Wp_rev (1,rh), bp (1,1)
def bignn_kernel(x_ref, adj_ref, *refs):
    out_ref = refs[-1]
    w = refs[:-1]

    bt, n, nfeat = x_ref.shape

    # forward mask only (int8 adj block stays narrow in VMEM; widen in-register)
    mask_f = adj_ref[...].astype(jnp.float32) > 0.0          # (bt, n, n)

    xf = x_ref[...].reshape(bt * n, nfeat)                   # flatten for shared weights

    # ---- FEL embedding (6 linears + 2 residual LayerNorms) ----
    (W1a, b1a, W1b, b1b, W2a, b2a, W2b, b2b,
     W3a, b3a, W3b, b3b) = (r[...] for r in w[0:12])
    h = _leaky(_mm(xf, W1a) + b1a)
    res = _leaky(_mm(h, W1b) + b1b)
    h = _leaky(_mm(res, W2a) + b2a)
    h = _leaky(_mm(h, W2b) + b2b)
    x1 = _layernorm(h + res)
    h = _leaky(_mm(x1, W3a) + b3a)
    h = _mm(h, W3b) + b3b
    xcur = _layernorm(h + x1)                                # (bt*n, nhid)

    # ---- forward GAT chain ----
    for i in range(3):
        Wcat, A, Wf, bf = (r[...] for r in w[12 + 4 * i: 16 + 4 * i])
        xcur = _attention_block(xcur, mask_f, bt, n, Wcat, A, Wf, bf)
    xcur = _leaky(_gat_single(xcur, mask_f, bt, n, w[24][...], w[25][...]))

    # ---- reverse GAT chain (adj^T built only now: short live range) ----
    mask_r = jnp.transpose(adj_ref[...].astype(jnp.float32), (0, 2, 1)) > 0.0

    xt = xcur
    for i in range(3):
        Wcat, A, Wf, bf = (r[...] for r in w[26 + 4 * i: 30 + 4 * i])
        xt = _attention_block(xt, mask_r, bt, n, Wcat, A, Wf, bf)
    xt = _leaky(_gat_single(xt, mask_r, bt, n, w[38][...], w[39][...]))

    # ---- mean pool over nodes + concat + final Linear(nhid+rh, 1) ----
    inv_n = 1.0 / n
    pooled_f = jnp.sum(xcur.reshape(bt, n, -1), axis=1) * inv_n   # (bt, nhid)
    pooled_r = jnp.sum(xt.reshape(bt, n, -1), axis=1) * inv_n     # (bt, rh)
    Wpf = w[40][...]                                              # (1, nhid)
    Wpr = w[41][...]                                              # (1, rh)
    bp = w[42][...]                                               # (1, 1)
    proj = (jnp.sum(pooled_f * Wpf, axis=-1, keepdims=True)
            + jnp.sum(pooled_r * Wpr, axis=-1, keepdims=True)
            + bp)                                                 # (bt, 1)
    out_ref[0] = jnp.transpose(proj)                              # (1, bt) lane-dense


# ---------------------------------------------------------------------------
# wrapper: single pallas_call over batch tiles
# ---------------------------------------------------------------------------
def bignn_forward(params, x, adj, layer_id=None, batch_tile=None):
    # layer_id is accepted but unused, exactly as in the PyTorch forward.
    del layer_id
    B, N, nfeat = x.shape

    # adj is only ever used as a mask: ship it as int8 (4x less DMA / VMEM)
    if adj.dtype != jnp.int8:
        adj = (adj > 0).astype(jnp.int8)

    if batch_tile is None:
        batch_tile = 1
        for cand in (8, 4, 2, 1):
            if cand <= B and B % cand == 0:
                batch_tile = cand
                break
    bt = batch_tile
    assert B % bt == 0, "batch must be divisible by batch_tile"
    grid_b = B // bt

    def _wspec(p):
        nd = p.ndim
        return pl.BlockSpec(p.shape, lambda b, _nd=nd: (0,) * _nd)

    in_specs = [
        pl.BlockSpec((bt, N, nfeat), lambda b: (b, 0, 0)),
        pl.BlockSpec((bt, N, N), lambda b: (b, 0, 0)),
    ] + [_wspec(p) for p in params]

    # explicit scoped-VMEM limit: double-buffered inputs/weights + (N,N) temporaries
    w_bytes = sum(int(p.size) * p.dtype.itemsize for p in params)
    blk_bytes = bt * N * nfeat * 4 + bt * N * N * 1
    temps = 12 * bt * N * N * 4 + 8 * bt * N * 256 * 4
    vmem_limit = int(min(max(2 * (w_bytes + blk_bytes) + temps + (4 << 20),
                             16 << 20), 64 << 20))

    out = pl.pallas_call(
        bignn_kernel,
        out_shape=jax.ShapeDtypeStruct((grid_b, 1, bt), jnp.float32),
        grid_spec=pltpu.PrefetchScalarGridSpec(
            num_scalar_prefetch=0,
            grid=(grid_b,),
            in_specs=in_specs,
            out_specs=pl.BlockSpec((1, 1, bt), lambda b: (b, 0, 0)),
        ),
        compiler_params=pltpu.CompilerParams(
            dimension_semantics=("parallel",),
            vmem_limit_bytes=vmem_limit),
    )(x, adj, *params)
    return out.reshape(B)


# ---------------------------------------------------------------------------
# Parameter initialization (deterministic, synthetic; f32 to match torch math)
# ---------------------------------------------------------------------------
def xavier_uniform(key, shape, gain=1.414):
    limit = gain * (6.0 / (shape[0] + shape[1])) ** 0.5
    return jax.random.uniform(key, shape, jnp.float32, -limit, limit)


def linear_params(key, fin, fout):
    k1, k2 = jax.random.split(key)
    bound = 1.0 / (fin ** 0.5)
    W = jax.random.uniform(k1, (fin, fout), jnp.float32, -bound, bound)
    b = jax.random.uniform(k2, (1, fout), jnp.float32, -bound, bound)
    return W, b


def init_fel_params(key, fin, fout):
    ks = jax.random.split(key, 6)
    W1a, b1a = linear_params(ks[0], fin, fout)
    W1b, b1b = linear_params(ks[1], fout, fout)
    W2a, b2a = linear_params(ks[2], fout, 2 * fout)
    W2b, b2b = linear_params(ks[3], 2 * fout, fout)
    W3a, b3a = linear_params(ks[4], fout, 2 * fout)
    W3b, b3b = linear_params(ks[5], 2 * fout, fout)
    return (W1a, b1a, W1b, b1b, W2a, b2a, W2b, b2b, W3a, b3a, W3b, b3b)


def init_attention_block_params(key, fin, fout, nheads):
    """Heads packed for batched MXU use: Wcat (fin, nheads*fout),
    A block-diagonal (nheads*fout, 2*nheads), plus reshape_fc (Wf, bf)."""
    keys = jax.random.split(key, nheads + 1)
    Ws = []
    A = jnp.zeros((nheads * fout, 2 * nheads), jnp.float32)
    for h in range(nheads):
        kw, ka = jax.random.split(keys[h])
        Ws.append(xavier_uniform(kw, (fin, fout)))
        a = xavier_uniform(ka, (2 * fout, 1))
        A = A.at[h * fout:(h + 1) * fout, 2 * h].set(a[:fout, 0])
        A = A.at[h * fout:(h + 1) * fout, 2 * h + 1].set(a[fout:, 0])
    Wcat = jnp.concatenate(Ws, axis=1)                     # (fin, nheads*fout)
    Wf, bf = linear_params(keys[nheads], nheads * fout, fout)
    return (Wcat, A, Wf, bf)


def init_out_gat_params(key, fin, fout):
    kw, ka = jax.random.split(key)
    W = xavier_uniform(kw, (fin, fout))
    a = xavier_uniform(ka, (2 * fout, 1))
    a_pair = jnp.concatenate([a[:fout], a[fout:]], axis=1)  # (fout, 2)
    return (W, a_pair)


def init_bignn_params(key, nfeat, nhid, reverse_hidden, nheads):
    ks = jax.random.split(key, 10)
    flat = []
    flat.extend(init_fel_params(ks[0], nfeat, nhid))                          # 12
    flat.extend(init_attention_block_params(ks[1], nhid, nhid, nheads))       # 4
    flat.extend(init_attention_block_params(ks[2], nhid, nhid, nheads))       # 4
    flat.extend(init_attention_block_params(ks[3], nhid, nhid, nheads))       # 4
    flat.extend(init_out_gat_params(ks[4], nhid, nhid))                       # 2
    flat.extend(init_attention_block_params(ks[5], nhid, reverse_hidden, nheads))
    flat.extend(init_attention_block_params(ks[6], reverse_hidden, reverse_hidden, nheads))
    flat.extend(init_attention_block_params(ks[7], reverse_hidden, reverse_hidden, nheads))
    flat.extend(init_out_gat_params(ks[8], reverse_hidden, reverse_hidden))
    Wp, bp = linear_params(ks[9], nhid + reverse_hidden, 1)
    flat.append(jnp.transpose(Wp[:nhid, :]))          # (1, nhid)
    flat.append(jnp.transpose(Wp[nhid:, :]))          # (1, reverse_hidden)
    flat.append(bp.reshape(1, 1))                     # (1, 1)
    return tuple(flat)                                # 43 arrays


# ---------------------------------------------------------------------------
if __name__ == "__main__":
    B, N = 2, 8
    nfeat, nhid, reverse_hidden, nheads = 16, 32, 16, 2

    key = jax.random.PRNGKey(0)
    kp, kx, ka = jax.random.split(key, 3)

    params = init_bignn_params(kp, nfeat, nhid, reverse_hidden, nheads)
    x = jax.random.normal(kx, (B, N, nfeat), jnp.float32)
    adj = (jax.random.uniform(ka, (B, N, N)) > 0.5).astype(jnp.float32)
    layer_id = jnp.zeros((B,), jnp.int32)   # unused by forward (as in PyTorch)

    out = jax.jit(bignn_forward)(params, x, adj, layer_id)
    out = jax.block_until_ready(out)

    assert out.shape == (B,)
    assert bool(jnp.all(jnp.isfinite(out)))
    print("KERNEL_OK")
</pallas_src>

<mosaic_0001>
module attributes {stable_mosaic.version = 11 : i64} {
  func.func @bignn_kernel(%arg0: i32, %arg1: memref<2x8x16xf32, #tpu.memory_space<vmem>>, %arg2: memref<2x8x8xi8, #tpu.memory_space<vmem>>, %arg3: memref<16x32xf32, #tpu.memory_space<vmem>>, %arg4: memref<1x32xf32, #tpu.memory_space<vmem>>, %arg5: memref<32x32xf32, #tpu.memory_space<vmem>>, %arg6: memref<1x32xf32, #tpu.memory_space<vmem>>, %arg7: memref<32x64xf32, #tpu.memory_space<vmem>>, %arg8: memref<1x64xf32, #tpu.memory_space<vmem>>, %arg9: memref<64x32xf32, #tpu.memory_space<vmem>>, %arg10: memref<1x32xf32, #tpu.memory_space<vmem>>, %arg11: memref<32x64xf32, #tpu.memory_space<vmem>>, %arg12: memref<1x64xf32, #tpu.memory_space<vmem>>, %arg13: memref<64x32xf32, #tpu.memory_space<vmem>>, %arg14: memref<1x32xf32, #tpu.memory_space<vmem>>, %arg15: memref<32x64xf32, #tpu.memory_space<vmem>>, %arg16: memref<64x4xf32, #tpu.memory_space<vmem>>, %arg17: memref<64x32xf32, #tpu.memory_space<vmem>>, %arg18: memref<1x32xf32, #tpu.memory_space<vmem>>, %arg19: memref<32x64xf32, #tpu.memory_space<vmem>>, %arg20: memref<64x4xf32, #tpu.memory_space<vmem>>, %arg21: memref<64x32xf32, #tpu.memory_space<vmem>>, %arg22: memref<1x32xf32, #tpu.memory_space<vmem>>, %arg23: memref<32x64xf32, #tpu.memory_space<vmem>>, %arg24: memref<64x4xf32, #tpu.memory_space<vmem>>, %arg25: memref<64x32xf32, #tpu.memory_space<vmem>>, %arg26: memref<1x32xf32, #tpu.memory_space<vmem>>, %arg27: memref<32x32xf32, #tpu.memory_space<vmem>>, %arg28: memref<32x2xf32, #tpu.memory_space<vmem>>, %arg29: memref<32x32xf32, #tpu.memory_space<vmem>>, %arg30: memref<32x4xf32, #tpu.memory_space<vmem>>, %arg31: memref<32x16xf32, #tpu.memory_space<vmem>>, %arg32: memref<1x16xf32, #tpu.memory_space<vmem>>, %arg33: memref<16x32xf32, #tpu.memory_space<vmem>>, %arg34: memref<32x4xf32, #tpu.memory_space<vmem>>, %arg35: memref<32x16xf32, #tpu.memory_space<vmem>>, %arg36: memref<1x16xf32, #tpu.memory_space<vmem>>, %arg37: memref<16x32xf32, #tpu.memory_space<vmem>>, %arg38: memref<32x4xf32, #tpu.memory_space<vmem>>, %arg39: memref<32x16xf32, #tpu.memory_space<vmem>>, %arg40: memref<1x16xf32, #tpu.memory_space<vmem>>, %arg41: memref<16x16xf32, #tpu.memory_space<vmem>>, %arg42: memref<16x2xf32, #tpu.memory_space<vmem>>, %arg43: memref<1x32xf32, #tpu.memory_space<vmem>>, %arg44: memref<1x16xf32, #tpu.memory_space<vmem>>, %arg45: memref<1x1xf32, #tpu.memory_space<vmem>>, %arg46: memref<1x1x2xf32, #tpu.memory_space<vmem>>) attributes {dimension_semantics = [#tpu.dimension_semantics<parallel>], iteration_bounds = array<i64: 1>, scalar_prefetch = 0 : i64, scratch_operands = 0 : i64, tpu.core_type = #tpu.core_type<tc>, window_params = [{transform_indices = @transform_0, window_bounds = array<i64: 2, 8, 16>}, {transform_indices = @transform_1, window_bounds = array<i64: 2, 8, 8>}, {pipeline_mode = #tpu.pipeline_mode<synchronous>, transform_indices = @transform_2, window_bounds = array<i64: 16, 32>}, {pipeline_mode = #tpu.pipeline_mode<synchronous>, transform_indices = @transform_3, window_bounds = array<i64: 1, 32>}, {pipeline_mode = #tpu.pipeline_mode<synchronous>, transform_indices = @transform_4, window_bounds = array<i64: 32, 32>}, {pipeline_mode = #tpu.pipeline_mode<synchronous>, transform_indices = @transform_5, window_bounds = array<i64: 1, 32>}, {pipeline_mode = #tpu.pipeline_mode<synchronous>, transform_indices = @transform_6, window_bounds = array<i64: 32, 64>}, {pipeline_mode = #tpu.pipeline_mode<synchronous>, transform_indices = @transform_7, window_bounds = array<i64: 1, 64>}, {pipeline_mode = #tpu.pipeline_mode<synchronous>, transform_indices = @transform_8, window_bounds = array<i64: 64, 32>}, {pipeline_mode = #tpu.pipeline_mode<synchronous>, transform_indices = @transform_9, window_bounds = array<i64: 1, 32>}, {pipeline_mode = #tpu.pipeline_mode<synchronous>, transform_indices = @transform_10, window_bounds = array<i64: 32, 64>}, {pipeline_mode = #tpu.pipeline_mode<synchronous>, transform_indices = @transform_11, window_bounds = array<i64: 1, 64>}, {pipeline_mode = #tpu.pipeline_mode<synchronous>, transform_indices = @transform_12, window_bounds = array<i64: 64, 32>}, {pipeline_mode = #tpu.pipeline_mode<synchronous>, transform_indices = @transform_13, window_bounds = array<i64: 1, 32>}, {pipeline_mode = #tpu.pipeline_mode<synchronous>, transform_indices = @transform_14, window_bounds = array<i64: 32, 64>}, {pipeline_mode = #tpu.pipeline_mode<synchronous>, transform_indices = @transform_15, window_bounds = array<i64: 64, 4>}, {pipeline_mode = #tpu.pipeline_mode<synchronous>, transform_indices = @transform_16, window_bounds = array<i64: 64, 32>}, {pipeline_mode = #tpu.pipeline_mode<synchronous>, transform_indices = @transform_17, window_bounds = array<i64: 1, 32>}, {pipeline_mode = #tpu.pipeline_mode<synchronous>, transform_indices = @transform_18, window_bounds = array<i64: 32, 64>}, {pipeline_mode = #tpu.pipeline_mode<synchronous>, transform_indices = @transform_19, window_bounds = array<i64: 64, 4>}, {pipeline_mode = #tpu.pipeline_mode<synchronous>, transform_indices = @transform_20, window_bounds = array<i64: 64, 32>}, {pipeline_mode = #tpu.pipeline_mode<synchronous>, transform_indices = @transform_21, window_bounds = array<i64: 1, 32>}, {pipeline_mode = #tpu.pipeline_mode<synchronous>, transform_indices = @transform_22, window_bounds = array<i64: 32, 64>}, {pipeline_mode = #tpu.pipeline_mode<synchronous>, transform_indices = @transform_23, window_bounds = array<i64: 64, 4>}, {pipeline_mode = #tpu.pipeline_mode<synchronous>, transform_indices = @transform_24, window_bounds = array<i64: 64, 32>}, {pipeline_mode = #tpu.pipeline_mode<synchronous>, transform_indices = @transform_25, window_bounds = array<i64: 1, 32>}, {pipeline_mode = #tpu.pipeline_mode<synchronous>, transform_indices = @transform_26, window_bounds = array<i64: 32, 32>}, {pipeline_mode = #tpu.pipeline_mode<synchronous>, transform_indices = @transform_27, window_bounds = array<i64: 32, 2>}, {pipeline_mode = #tpu.pipeline_mode<synchronous>, transform_indices = @transform_28, window_bounds = array<i64: 32, 32>}, {pipeline_mode = #tpu.pipeline_mode<synchronous>, transform_indices = @transform_29, window_bounds = array<i64: 32, 4>}, {pipeline_mode = #tpu.pipeline_mode<synchronous>, transform_indices = @transform_30, window_bounds = array<i64: 32, 16>}, {pipeline_mode = #tpu.pipeline_mode<synchronous>, transform_indices = @transform_31, window_bounds = array<i64: 1, 16>}, {pipeline_mode = #tpu.pipeline_mode<synchronous>, transform_indices = @transform_32, window_bounds = array<i64: 16, 32>}, {pipeline_mode = #tpu.pipeline_mode<synchronous>, transform_indices = @transform_33, window_bounds = array<i64: 32, 4>}, {pipeline_mode = #tpu.pipeline_mode<synchronous>, transform_indices = @transform_34, window_bounds = array<i64: 32, 16>}, {pipeline_mode = #tpu.pipeline_mode<synchronous>, transform_indices = @transform_35, window_bounds = array<i64: 1, 16>}, {pipeline_mode = #tpu.pipeline_mode<synchronous>, transform_indices = @transform_36, window_bounds = array<i64: 16, 32>}, {pipeline_mode = #tpu.pipeline_mode<synchronous>, transform_indices = @transform_37, window_bounds = array<i64: 32, 4>}, {pipeline_mode = #tpu.pipeline_mode<synchronous>, transform_indices = @transform_38, window_bounds = array<i64: 32, 16>}, {pipeline_mode = #tpu.pipeline_mode<synchronous>, transform_indices = @transform_39, window_bounds = array<i64: 1, 16>}, {pipeline_mode = #tpu.pipeline_mode<synchronous>, transform_indices = @transform_40, window_bounds = array<i64: 16, 16>}, {pipeline_mode = #tpu.pipeline_mode<synchronous>, transform_indices = @transform_41, window_bounds = array<i64: 16, 2>}, {pipeline_mode = #tpu.pipeline_mode<synchronous>, transform_indices = @transform_42, window_bounds = array<i64: 1, 32>}, {pipeline_mode = #tpu.pipeline_mode<synchronous>, transform_indices = @transform_43, window_bounds = array<i64: 1, 16>}, {pipeline_mode = #tpu.pipeline_mode<synchronous>, transform_indices = @transform_44, window_bounds = array<i64: 1, 1>}, {transform_indices = @transform_45, window_bounds = array<i64: 1, 1, 2>}]} {
    %c0 = arith.constant 0 : index
    %c0_0 = arith.constant 0 : index
    %c0_1 = arith.constant 0 : index
    %0 = vector.load %arg2[%c0, %c0_0, %c0_1] : memref<2x8x8xi8, #tpu.memory_space<vmem>>, vector<2x8x8xi8>
    %1 = arith.sitofp %0 : vector<2x8x8xi8> to vector<2x8x8xf32>
    %cst = arith.constant 0.000000e+00 : f32
    %2 = vector.broadcast %cst : f32 to vector<2x8x8xf32>
    %3 = arith.cmpf ogt, %1, %2 : vector<2x8x8xf32>
    %c0_2 = arith.constant 0 : index
    %c0_3 = arith.constant 0 : index
    %c0_4 = arith.constant 0 : index
    %4 = vector.load %arg1[%c0_2, %c0_3, %c0_4] : memref<2x8x16xf32, #tpu.memory_space<vmem>>, vector<2x8x16xf32>
    %5 = vector.shape_cast %4 : vector<2x8x16xf32> to vector<16x16xf32>
    %c0_5 = arith.constant 0 : index
    %c0_6 = arith.constant 0 : index
    %6 = vector.load %arg3[%c0_5, %c0_6] : memref<16x32xf32, #tpu.memory_space<vmem>>, vector<16x32xf32>
    %c0_7 = arith.constant 0 : index
    %c0_8 = arith.constant 0 : index
    %7 = vector.load %arg4[%c0_7, %c0_8] : memref<1x32xf32, #tpu.memory_space<vmem>>, vector<1x32xf32>
    %c0_9 = arith.constant 0 : index
    %c0_10 = arith.constant 0 : index
    %8 = vector.load %arg5[%c0_9, %c0_10] : memref<32x32xf32, #tpu.memory_space<vmem>>, vector<32x32xf32>
    %c0_11 = arith.constant 0 : index
    %c0_12 = arith.constant 0 : index
    %9 = vector.load %arg6[%c0_11, %c0_12] : memref<1x32xf32, #tpu.memory_space<vmem>>, vector<1x32xf32>
    %c0_13 = arith.constant 0 : index
    %c0_14 = arith.constant 0 : index
    %10 = vector.load %arg7[%c0_13, %c0_14] : memref<32x64xf32, #tpu.memory_space<vmem>>, vector<32x64xf32>
    %c0_15 = arith.constant 0 : index
    %c0_16 = arith.constant 0 : index
    %11 = vector.load %arg8[%c0_15, %c0_16] : memref<1x64xf32, #tpu.memory_space<vmem>>, vector<1x64xf32>
    %c0_17 = arith.constant 0 : index
    %c0_18 = arith.constant 0 : index
    %12 = vector.load %arg9[%c0_17, %c0_18] : memref<64x32xf32, #tpu.memory_space<vmem>>, vector<64x32xf32>
    %c0_19 = arith.constant 0 : index
    %c0_20 = arith.constant 0 : index
    %13 = vector.load %arg10[%c0_19, %c0_20] : memref<1x32xf32, #tpu.memory_space<vmem>>, vector<1x32xf32>
    %c0_21 = arith.constant 0 : index
    %c0_22 = arith.constant 0 : index
    %14 = vector.load %arg11[%c0_21, %c0_22] : memref<32x64xf32, #tpu.memory_space<vmem>>, vector<32x64xf32>
    %c0_23 = arith.constant 0 : index
    %c0_24 = arith.constant 0 : index
    %15 = vector.load %arg12[%c0_23, %c0_24] : memref<1x64xf32, #tpu.memory_space<vmem>>, vector<1x64xf32>
    %c0_25 = arith.constant 0 : index
    %c0_26 = arith.constant 0 : index
    %16 = vector.load %arg13[%c0_25, %c0_26] : memref<64x32xf32, #tpu.memory_space<vmem>>, vector<64x32xf32>
    %c0_27 = arith.constant 0 : index
    %c0_28 = arith.constant 0 : index
    %17 = vector.load %arg14[%c0_27, %c0_28] : memref<1x32xf32, #tpu.memory_space<vmem>>, vector<1x32xf32>
    %18 = arith.truncf %5 : vector<16x16xf32> to vector<16x16xbf16>
    %19 = arith.truncf %6 : vector<16x32xf32> to vector<16x32xbf16>
    %cst_29 = arith.constant dense<0.000000e+00> : vector<16x32xf32>
    %20 = tpu.matmul %18, %19, %cst_29 {dimension_numbers = #tpu.dot_dimension_numbers<[1], [0], [0], [1], [0, 0, 1, 1], [], []>} : vector<16x16xbf16>, vector<16x32xbf16>, vector<16x32xf32> -> vector<16x32xf32>
    %21 = vector.broadcast %7 : vector<1x32xf32> to vector<16x32xf32>
    %22 = arith.addf %20, %21 : vector<16x32xf32>
    %cst_30 = arith.constant 0.000000e+00 : f32
    %23 = vector.broadcast %cst_30 : f32 to vector<16x32xf32>
    %24 = arith.cmpf oge, %22, %23 : vector<16x32xf32>
    %cst_31 = arith.constant 0.00999999977 : f32
    %25 = vector.broadcast %cst_31 : f32 to vector<16x32xf32>
    %26 = arith.mulf %25, %22 : vector<16x32xf32>
    %27 = arith.select %24, %22, %26 : vector<16x32xi1>, vector<16x32xf32>
    %28 = arith.truncf %27 : vector<16x32xf32> to vector<16x32xbf16>
    %29 = arith.truncf %8 : vector<32x32xf32> to vector<32x32xbf16>
    %cst_32 = arith.constant dense<0.000000e+00> : vector<16x32xf32>
    %30 = tpu.matmul %28, %29, %cst_32 {dimension_numbers = #tpu.dot_dimension_numbers<[1], [0], [0], [1], [0, 0, 1, 1], [], []>} : vector<16x32xbf16>, vector<32x32xbf16>, vector<16x32xf32> -> vector<16x32xf32>
    %31 = vector.broadcast %9 : vector<1x32xf32> to vector<16x32xf32>
    %32 = arith.addf %30, %31 : vector<16x32xf32>
    %cst_33 = arith.constant 0.000000e+00 : f32
    %33 = vector.broadcast %cst_33 : f32 to vector<16x32xf32>
    %34 = arith.cmpf oge, %32, %33 : vector<16x32xf32>
    %cst_34 = arith.constant 0.00999999977 : f32
    %35 = vector.broadcast %cst_34 : f32 to vector<16x32xf32>
    %36 = arith.mulf %35, %32 : vector<16x32xf32>
    %37 = arith.select %34, %32, %36 : vector<16x32xi1>, vector<16x32xf32>
    %38 = arith.truncf %37 : vector<16x32xf32> to vector<16x32xbf16>
    %39 = arith.truncf %10 : vector<32x64xf32> to vector<32x64xbf16>
    %cst_35 = arith.constant dense<0.000000e+00> : vector<16x64xf32>
    %40 = tpu.matmul %38, %39, %cst_35 {dimension_numbers = #tpu.dot_dimension_numbers<[1], [0], [0], [1], [0, 0, 1, 1], [], []>} : vector<16x32xbf16>, vector<32x64xbf16>, vector<16x64xf32> -> vector<16x64xf32>
    %41 = vector.broadcast %11 : vector<1x64xf32> to vector<16x64xf32>
    %42 = arith.addf %40, %41 : vector<16x64xf32>
    %cst_36 = arith.constant 0.000000e+00 : f32
    %43 = vector.broadcast %cst_36 : f32 to vector<16x64xf32>
    %44 = arith.cmpf oge, %42, %43 : vector<16x64xf32>
    %cst_37 = arith.constant 0.00999999977 : f32
    %45 = vector.broadcast %cst_37 : f32 to vector<16x64xf32>
    %46 = arith.mulf %45, %42 : vector<16x64xf32>
    %47 = arith.select %44, %42, %46 : vector<16x64xi1>, vector<16x64xf32>
    %48 = arith.truncf %47 : vector<16x64xf32> to vector<16x64xbf16>
    %49 = arith.truncf %12 : vector<64x32xf32> to vector<64x32xbf16>
    %cst_38 = arith.constant dense<0.000000e+00> : vector<16x32xf32>
    %50 = tpu.matmul %48, %49, %cst_38 {dimension_numbers = #tpu.dot_dimension_numbers<[1], [0], [0], [1], [0, 0, 1, 1], [], []>} : vector<16x64xbf16>, vector<64x32xbf16>, vector<16x32xf32> -> vector<16x32xf32>
    %51 = vector.broadcast %13 : vector<1x32xf32> to vector<16x32xf32>
    %52 = arith.addf %50, %51 : vector<16x32xf32>
    %cst_39 = arith.constant 0.000000e+00 : f32
    %53 = vector.broadcast %cst_39 : f32 to vector<16x32xf32>
    %54 = arith.cmpf oge, %52, %53 : vector<16x32xf32>
    %cst_40 = arith.constant 0.00999999977 : f32
    %55 = vector.broadcast %cst_40 : f32 to vector<16x32xf32>
    %56 = arith.mulf %55, %52 : vector<16x32xf32>
    %57 = arith.select %54, %52, %56 : vector<16x32xi1>, vector<16x32xf32>
    %58 = arith.addf %57, %37 : vector<16x32xf32>
    %cst_41 = arith.constant dense<0.000000e+00> : vector<16xf32>
    %59 = vector.multi_reduction <add>, %58, %cst_41 [1] : vector<16x32xf32> to vector<16xf32>
    %60 = vector.shape_cast %59 : vector<16xf32> to vector<16x1xf32>
    %cst_42 = arith.constant 3.200000e+01 : f32
    %61 = vector.broadcast %cst_42 : f32 to vector<16x1xf32>
    %62 = arith.divf %60, %61 : vector<16x1xf32>
    %63 = vector.broadcast %62 : vector<16x1xf32> to vector<16x32xf32>
    %64 = arith.subf %58, %63 : vector<16x32xf32>
    %65 = arith.mulf %64, %64 : vector<16x32xf32>
    %cst_43 = arith.constant dense<0.000000e+00> : vector<16xf32>
    %66 = vector.multi_reduction <add>, %65, %cst_43 [1] : vector<16x32xf32> to vector<16xf32>
    %67 = vector.shape_cast %66 : vector<16xf32> to vector<16x1xf32>
    %cst_44 = arith.constant 3.200000e+01 : f32
    %68 = vector.broadcast %cst_44 : f32 to vector<16x1xf32>
    %69 = arith.divf %67, %68 : vector<16x1xf32>
    %70 = vector.broadcast %62 : vector<16x1xf32> to vector<16x32xf32>
    %71 = arith.subf %58, %70 : vector<16x32xf32>
    %cst_45 = arith.constant 9.99999974E-6 : f32
    %72 = vector.broadcast %cst_45 : f32 to vector<16x1xf32>
    %73 = arith.addf %69, %72 : vector<16x1xf32>
    %74 = math.rsqrt %73 : vector<16x1xf32>
    %75 = vector.broadcast %74 : vector<16x1xf32> to vector<16x32xf32>
    %76 = arith.mulf %71, %75 : vector<16x32xf32>
    %77 = arith.truncf %76 : vector<16x32xf32> to vector<16x32xbf16>
    %78 = arith.truncf %14 : vector<32x64xf32> to vector<32x64xbf16>
    %cst_46 = arith.constant dense<0.000000e+00> : vector<16x64xf32>
    %79 = tpu.matmul %77, %78, %cst_46 {dimension_numbers = #tpu.dot_dimension_numbers<[1], [0], [0], [1], [0, 0, 1, 1], [], []>} : vector<16x32xbf16>, vector<32x64xbf16>, vector<16x64xf32> -> vector<16x64xf32>
    %80 = vector.broadcast %15 : vector<1x64xf32> to vector<16x64xf32>
    %81 = arith.addf %79, %80 : vector<16x64xf32>
    %cst_47 = arith.constant 0.000000e+00 : f32
    %82 = vector.broadcast %cst_47 : f32 to vector<16x64xf32>
    %83 = arith.cmpf oge, %81, %82 : vector<16x64xf32>
    %cst_48 = arith.constant 0.00999999977 : f32
    %84 = vector.broadcast %cst_48 : f32 to vector<16x64xf32>
    %85 = arith.mulf %84, %81 : vector<16x64xf32>
    %86 = arith.select %83, %81, %85 : vector<16x64xi1>, vector<16x64xf32>
    %87 = arith.truncf %86 : vector<16x64xf32> to vector<16x64xbf16>
    %88 = arith.truncf %16 : vector<64x32xf32> to vector<64x32xbf16>
    %cst_49 = arith.constant dense<0.000000e+00> : vector<16x32xf32>
    %89 = tpu.matmul %87, %88, %cst_49 {dimension_numbers = #tpu.dot_dimension_numbers<[1], [0], [0], [1], [0, 0, 1, 1], [], []>} : vector<16x64xbf16>, vector<64x32xbf16>, vector<16x32xf32> -> vector<16x32xf32>
    %90 = vector.broadcast %17 : vector<1x32xf32> to vector<16x32xf32>
    %91 = arith.addf %89, %90 : vector<16x32xf32>
    %92 = arith.addf %91, %76 : vector<16x32xf32>
    %cst_50 = arith.constant dense<0.000000e+00> : vector<16xf32>
    %93 = vector.multi_reduction <add>, %92, %cst_50 [1] : vector<16x32xf32> to vector<16xf32>
    %94 = vector.shape_cast %93 : vector<16xf32> to vector<16x1xf32>
    %cst_51 = arith.constant 3.200000e+01 : f32
    %95 = vector.broadcast %cst_51 : f32 to vector<16x1xf32>
    %96 = arith.divf %94, %95 : vector<16x1xf32>
    %97 = vector.broadcast %96 : vector<16x1xf32> to vector<16x32xf32>
    %98 = arith.subf %92, %97 : vector<16x32xf32>
    %99 = arith.mulf %98, %98 : vector<16x32xf32>
    %cst_52 = arith.constant dense<0.000000e+00> : vector<16xf32>
    %100 = vector.multi_reduction <add>, %99, %cst_52 [1] : vector<16x32xf32> to vector<16xf32>
    %101 = vector.shape_cast %100 : vector<16xf32> to vector<16x1xf32>
    %cst_53 = arith.constant 3.200000e+01 : f32
    %102 = vector.broadcast %cst_53 : f32 to vector<16x1xf32>
    %103 = arith.divf %101, %102 : vector<16x1xf32>
    %104 = vector.broadcast %96 : vector<16x1xf32> to vector<16x32xf32>
    %105 = arith.subf %92, %104 : vector<16x32xf32>
    %cst_54 = arith.constant 9.99999974E-6 : f32
    %106 = vector.broadcast %cst_54 : f32 to vector<16x1xf32>
    %107 = arith.addf %103, %106 : vector<16x1xf32>
    %108 = math.rsqrt %107 : vector<16x1xf32>
    %109 = vector.broadcast %108 : vector<16x1xf32> to vector<16x32xf32>
    %110 = arith.mulf %105, %109 : vector<16x32xf32>
    %c0_55 = arith.constant 0 : index
    %c0_56 = arith.constant 0 : index
    %111 = vector.load %arg15[%c0_55, %c0_56] : memref<32x64xf32, #tpu.memory_space<vmem>>, vector<32x64xf32>
    %c0_57 = arith.constant 0 : index
    %c0_58 = arith.constant 0 : index
    %112 = vector.load %arg16[%c0_57, %c0_58] : memref<64x4xf32, #tpu.memory_space<vmem>>, vector<64x4xf32>
    %c0_59 = arith.constant 0 : index
    %c0_60 = arith.constant 0 : index
    %113 = vector.load %arg17[%c0_59, %c0_60] : memref<64x32xf32, #tpu.memory_space<vmem>>, vector<64x32xf32>
    %c0_61 = arith.constant 0 : index
    %c0_62 = arith.constant 0 : index
    %114 = vector.load %arg18[%c0_61, %c0_62] : memref<1x32xf32, #tpu.memory_space<vmem>>, vector<1x32xf32>
    %115 = arith.truncf %110 : vector<16x32xf32> to vector<16x32xbf16>
    %116 = arith.truncf %111 : vector<32x64xf32> to vector<32x64xbf16>
    %cst_63 = arith.constant dense<0.000000e+00> : vector<16x64xf32>
    %117 = tpu.matmul %115, %116, %cst_63 {dimension_numbers = #tpu.dot_dimension_numbers<[1], [0], [0], [1], [0, 0, 1, 1], [], []>} : vector<16x32xbf16>, vector<32x64xbf16>, vector<16x64xf32> -> vector<16x64xf32>
    %118 = arith.truncf %117 : vector<16x64xf32> to vector<16x64xbf16>
    %119 = arith.truncf %112 : vector<64x4xf32> to vector<64x4xbf16>
    %cst_64 = arith.constant dense<0.000000e+00> : vector<16x4xf32>
    %120 = tpu.matmul %118, %119, %cst_64 {dimension_numbers = #tpu.dot_dimension_numbers<[1], [0], [0], [1], [0, 0, 1, 1], [], []>} : vector<16x64xbf16>, vector<64x4xbf16>, vector<16x4xf32> -> vector<16x4xf32>
    %121 = vector.shape_cast %120 : vector<16x4xf32> to vector<2x8x4xf32>
    %122 = vector.shape_cast %117 : vector<16x64xf32> to vector<2x8x64xf32>
    %123 = vector.extract_strided_slice %122 {offsets = [0, 0, 0], sizes = [2, 8, 32], strides = [1, 1, 1]} : vector<2x8x64xf32> to vector<2x8x32xf32>
    %124 = vector.extract_strided_slice %121 {offsets = [0, 0, 0], sizes = [2, 8, 1], strides = [1, 1, 1]} : vector<2x8x4xf32> to vector<2x8x1xf32>
    %125 = vector.extract_strided_slice %121 {offsets = [0, 0, 1], sizes = [2, 8, 1], strides = [1, 1, 1]} : vector<2x8x4xf32> to vector<2x8x1xf32>
    %126 = tpu.transpose %125, [0, 2, 1] : vector<2x8x1xf32> -> vector<2x1x8xf32>
    %127 = vector.broadcast %124 : vector<2x8x1xf32> to vector<2x8x8xf32>
    %128 = vector.broadcast %126 : vector<2x1x8xf32> to vector<2x8x8xf32>
    %129 = arith.mulf %127, %128 : vector<2x8x8xf32>
    %cst_65 = arith.constant 0.000000e+00 : f32
    %130 = vector.broadcast %cst_65 : f32 to vector<2x8x8xf32>
    %131 = arith.cmpf oge, %129, %130 : vector<2x8x8xf32>
    %cst_66 = arith.constant 0.00999999977 : f32
    %132 = vector.broadcast %cst_66 : f32 to vector<2x8x8xf32>
    %133 = arith.mulf %132, %129 : vector<2x8x8xf32>
    %134 = arith.select %131, %129, %133 : vector<2x8x8xi1>, vector<2x8x8xf32>
    %cst_67 = arith.constant -9.000000e+15 : f32
    %135 = vector.broadcast %cst_67 : f32 to vector<2x8x8xf32>
    %136 = arith.select %3, %134, %135 : vector<2x8x8xi1>, vector<2x8x8xf32>
    %cst_68 = arith.constant dense<0xFF800000> : vector<2x8xf32>
    %137 = vector.multi_reduction <maximumf>, %136, %cst_68 [2] : vector<2x8x8xf32> to vector<2x8xf32>
    %138 = vector.shape_cast %137 : vector<2x8xf32> to vector<2x8x1xf32>
    %139 = vector.broadcast %138 : vector<2x8x1xf32> to vector<2x8x8xf32>
    %140 = arith.subf %136, %139 : vector<2x8x8xf32>
    %141 = math.exp %140 : vector<2x8x8xf32>
    %cst_69 = arith.constant dense<0.000000e+00> : vector<2x8xf32>
    %142 = vector.multi_reduction <add>, %141, %cst_69 [2] : vector<2x8x8xf32> to vector<2x8xf32>
    %143 = vector.shape_cast %142 : vector<2x8xf32> to vector<2x8x1xf32>
    %144 = tpu.reciprocal %143 {approx = true} : vector<2x8x1xf32> -> vector<2x8x1xf32>
    %145 = vector.broadcast %144 : vector<2x8x1xf32> to vector<2x8x8xf32>
    %146 = arith.mulf %141, %145 : vector<2x8x8xf32>
    %cst_70 = arith.constant 0.000000e+00 : f32
    %147 = vector.broadcast %cst_70 : f32 to vector<2x8x8xf32>
    %148 = arith.select %3, %146, %147 : vector<2x8x8xi1>, vector<2x8x8xf32>
    %149 = arith.truncf %148 : vector<2x8x8xf32> to vector<2x8x8xbf16>
    %150 = arith.truncf %123 : vector<2x8x32xf32> to vector<2x8x32xbf16>
    "tpu.trace_start"() <{level = 10 : i32, message = "bqk,bkf->bqf"}> : () -> ()
    %cst_71 = arith.constant dense<0.000000e+00> : vector<2x8x32xf32>
    %151 = tpu.matmul %149, %150, %cst_71 {dimension_numbers = #tpu.dot_dimension_numbers<[2], [1], [1], [2], [0, 0, 0, 1, 1, 2], [0], [0]>} : vector<2x8x8xbf16>, vector<2x8x32xbf16>, vector<2x8x32xf32> -> vector<2x8x32xf32>
    %cst_72 = arith.constant 0.000000e+00 : f32
    "tpu.trace_stop"() : () -> ()
    %152 = vector.broadcast %cst_72 : f32 to vector<2x8x32xf32>
    %153 = arith.cmpf ogt, %151, %152 : vector<2x8x32xf32>
    %cst_73 = arith.constant 0.000000e+00 : f32
    %154 = vector.broadcast %cst_73 : f32 to vector<2x8x32xf32>
    %155 = arith.minimumf %151, %154 : vector<2x8x32xf32>
    %156 = math.exp %155 : vector<2x8x32xf32>
    %cst_74 = arith.constant 1.000000e+00 : f32
    %157 = vector.broadcast %cst_74 : f32 to vector<2x8x32xf32>
    %158 = arith.subf %156, %157 : vector<2x8x32xf32>
    %159 = arith.select %153, %151, %158 : vector<2x8x32xi1>, vector<2x8x32xf32>
    %160 = vector.shape_cast %159 : vector<2x8x32xf32> to vector<16x32xf32>
    %161 = vector.extract_strided_slice %113 {offsets = [0, 0], sizes = [32, 32], strides = [1, 1]} : vector<64x32xf32> to vector<32x32xf32>
    %162 = arith.truncf %160 : vector<16x32xf32> to vector<16x32xbf16>
    %163 = arith.truncf %161 : vector<32x32xf32> to vector<32x32xbf16>
    %cst_75 = arith.constant dense<0.000000e+00> : vector<16x32xf32>
    %164 = tpu.matmul %162, %163, %cst_75 {dimension_numbers = #tpu.dot_dimension_numbers<[1], [0], [0], [1], [0, 0, 1, 1], [], []>} : vector<16x32xbf16>, vector<32x32xbf16>, vector<16x32xf32> -> vector<16x32xf32>
    %165 = vector.extract_strided_slice %122 {offsets = [0, 0, 32], sizes = [2, 8, 32], strides = [1, 1, 1]} : vector<2x8x64xf32> to vector<2x8x32xf32>
    %166 = vector.extract_strided_slice %121 {offsets = [0, 0, 2], sizes = [2, 8, 1], strides = [1, 1, 1]} : vector<2x8x4xf32> to vector<2x8x1xf32>
    %167 = vector.extract_strided_slice %121 {offsets = [0, 0, 3], sizes = [2, 8, 1], strides = [1, 1, 1]} : vector<2x8x4xf32> to vector<2x8x1xf32>
    %168 = tpu.transpose %167, [0, 2, 1] : vector<2x8x1xf32> -> vector<2x1x8xf32>
    %169 = vector.broadcast %166 : vector<2x8x1xf32> to vector<2x8x8xf32>
    %170 = vector.broadcast %168 : vector<2x1x8xf32> to vector<2x8x8xf32>
    %171 = arith.mulf %169, %170 : vector<2x8x8xf32>
    %cst_76 = arith.constant 0.000000e+00 : f32
    %172 = vector.broadcast %cst_76 : f32 to vector<2x8x8xf32>
    %173 = arith.cmpf oge, %171, %172 : vector<2x8x8xf32>
    %cst_77 = arith.constant 0.00999999977 : f32
    %174 = vector.broadcast %cst_77 : f32 to vector<2x8x8xf32>
    %175 = arith.mulf %174, %171 : vector<2x8x8xf32>
    %176 = arith.select %173, %171, %175 : vector<2x8x8xi1>, vector<2x8x8xf32>
    %cst_78 = arith.constant -9.000000e+15 : f32
    %177 = vector.broadcast %cst_78 : f32 to vector<2x8x8xf32>
    %178 = arith.select %3, %176, %177 : vector<2x8x8xi1>, vector<2x8x8xf32>
    %cst_79 = arith.constant dense<0xFF800000> : vector<2x8xf32>
    %179 = vector.multi_reduction <maximumf>, %178, %cst_79 [2] : vector<2x8x8xf32> to vector<2x8xf32>
    %180 = vector.shape_cast %179 : vector<2x8xf32> to vector<2x8x1xf32>
    %181 = vector.broadcast %180 : vector<2x8x1xf32> to vector<2x8x8xf32>
    %182 = arith.subf %178, %181 : vector<2x8x8xf32>
    %183 = math.exp %182 : vector<2x8x8xf32>
    %cst_80 = arith.constant dense<0.000000e+00> : vector<2x8xf32>
    %184 = vector.multi_reduction <add>, %183, %cst_80 [2] : vector<2x8x8xf32> to vector<2x8xf32>
    %185 = vector.shape_cast %184 : vector<2x8xf32> to vector<2x8x1xf32>
    %186 = tpu.reciprocal %185 {approx = true} : vector<2x8x1xf32> -> vector<2x8x1xf32>
    %187 = vector.broadcast %186 : vector<2x8x1xf32> to vector<2x8x8xf32>
    %188 = arith.mulf %183, %187 : vector<2x8x8xf32>
    %cst_81 = arith.constant 0.000000e+00 : f32
    %189 = vector.broadcast %cst_81 : f32 to vector<2x8x8xf32>
    %190 = arith.select %3, %188, %189 : vector<2x8x8xi1>, vector<2x8x8xf32>
    %191 = arith.truncf %190 : vector<2x8x8xf32> to vector<2x8x8xbf16>
    %192 = arith.truncf %165 : vector<2x8x32xf32> to vector<2x8x32xbf16>
    "tpu.trace_start"() <{level = 10 : i32, message = "bqk,bkf->bqf"}> : () -> ()
    %cst_82 = arith.constant dense<0.000000e+00> : vector<2x8x32xf32>
    %193 = tpu.matmul %191, %192, %cst_82 {dimension_numbers = #tpu.dot_dimension_numbers<[2], [1], [1], [2], [0, 0, 0, 1, 1, 2], [0], [0]>} : vector<2x8x8xbf16>, vector<2x8x32xbf16>, vector<2x8x32xf32> -> vector<2x8x32xf32>
    %cst_83 = arith.constant 0.000000e+00 : f32
    "tpu.trace_stop"() : () -> ()
    %194 = vector.broadcast %cst_83 : f32 to vector<2x8x32xf32>
    %195 = arith.cmpf ogt, %193, %194 : vector<2x8x32xf32>
    %cst_84 = arith.constant 0.000000e+00 : f32
    %196 = vector.broadcast %cst_84 : f32 to vector<2x8x32xf32>
    %197 = arith.minimumf %193, %196 : vector<2x8x32xf32>
    %198 = math.exp %197 : vector<2x8x32xf32>
    %cst_85 = arith.constant 1.000000e+00 : f32
    %199 = vector.broadcast %cst_85 : f32 to vector<2x8x32xf32>
    %200 = arith.subf %198, %199 : vector<2x8x32xf32>
    %201 = arith.select %195, %193, %200 : vector<2x8x32xi1>, vector<2x8x32xf32>
    %202 = vector.shape_cast %201 : vector<2x8x32xf32> to vector<16x32xf32>
    %203 = vector.extract_strided_slice %113 {offsets = [32, 0], sizes = [32, 32], strides = [1, 1]} : vector<64x32xf32> to vector<32x32xf32>
    %204 = arith.truncf %202 : vector<16x32xf32> to vector<16x32xbf16>
    %205 = arith.truncf %203 : vector<32x32xf32> to vector<32x32xbf16>
    %cst_86 = arith.constant dense<0.000000e+00> : vector<16x32xf32>
    %206 = tpu.matmul %204, %205, %cst_86 {dimension_numbers = #tpu.dot_dimension_numbers<[1], [0], [0], [1], [0, 0, 1, 1], [], []>} : vector<16x32xbf16>, vector<32x32xbf16>, vector<16x32xf32> -> vector<16x32xf32>
    %207 = arith.addf %164, %206 : vector<16x32xf32>
    %208 = vector.broadcast %114 : vector<1x32xf32> to vector<16x32xf32>
    %209 = arith.addf %207, %208 : vector<16x32xf32>
    %210 = arith.addf %209, %110 : vector<16x32xf32>
    %cst_87 = arith.constant dense<0.000000e+00> : vector<16xf32>
    %211 = vector.multi_reduction <add>, %210, %cst_87 [1] : vector<16x32xf32> to vector<16xf32>
    %212 = vector.shape_cast %211 : vector<16xf32> to vector<16x1xf32>
    %cst_88 = arith.constant 3.200000e+01 : f32
    %213 = vector.broadcast %cst_88 : f32 to vector<16x1xf32>
    %214 = arith.divf %212, %213 : vector<16x1xf32>
    %215 = vector.broadcast %214 : vector<16x1xf32> to vector<16x32xf32>
    %216 = arith.subf %210, %215 : vector<16x32xf32>
    %217 = arith.mulf %216, %216 : vector<16x32xf32>
    %cst_89 = arith.constant dense<0.000000e+00> : vector<16xf32>
    %218 = vector.multi_reduction <add>, %217, %cst_89 [1] : vector<16x32xf32> to vector<16xf32>
    %219 = vector.shape_cast %218 : vector<16xf32> to vector<16x1xf32>
    %cst_90 = arith.constant 3.200000e+01 : f32
    %220 = vector.broadcast %cst_90 : f32 to vector<16x1xf32>
    %221 = arith.divf %219, %220 : vector<16x1xf32>
    %222 = vector.broadcast %214 : vector<16x1xf32> to vector<16x32xf32>
    %223 = arith.subf %210, %222 : vector<16x32xf32>
    %cst_91 = arith.constant 9.99999974E-6 : f32
    %224 = vector.broadcast %cst_91 : f32 to vector<16x1xf32>
    %225 = arith.addf %221, %224 : vector<16x1xf32>
    %226 = math.rsqrt %225 : vector<16x1xf32>
    %227 = vector.broadcast %226 : vector<16x1xf32> to vector<16x32xf32>
    %228 = arith.mulf %223, %227 : vector<16x32xf32>
    %c0_92 = arith.constant 0 : index
    %c0_93 = arith.constant 0 : index
    %229 = vector.load %arg19[%c0_92, %c0_93] : memref<32x64xf32, #tpu.memory_space<vmem>>, vector<32x64xf32>
    %c0_94 = arith.constant 0 : index
    %c0_95 = arith.constant 0 : index
    %230 = vector.load %arg20[%c0_94, %c0_95] : memref<64x4xf32, #tpu.memory_space<vmem>>, vector<64x4xf32>
    %c0_96 = arith.constant 0 : index
    %c0_97 = arith.constant 0 : index
    %231 = vector.load %arg21[%c0_96, %c0_97] : memref<64x32xf32, #tpu.memory_space<vmem>>, vector<64x32xf32>
    %c0_98 = arith.constant 0 : index
    %c0_99 = arith.constant 0 : index
    %232 = vector.load %arg22[%c0_98, %c0_99] : memref<1x32xf32, #tpu.memory_space<vmem>>, vector<1x32xf32>
    %233 = arith.truncf %228 : vector<16x32xf32> to vector<16x32xbf16>
    %234 = arith.truncf %229 : vector<32x64xf32> to vector<32x64xbf16>
    %cst_100 = arith.constant dense<0.000000e+00> : vector<16x64xf32>
    %235 = tpu.matmul %233, %234, %cst_100 {dimension_numbers = #tpu.dot_dimension_numbers<[1], [0], [0], [1], [0, 0, 1, 1], [], []>} : vector<16x32xbf16>, vector<32x64xbf16>, vector<16x64xf32> -> vector<16x64xf32>
    %236 = arith.truncf %235 : vector<16x64xf32> to vector<16x64xbf16>
    %237 = arith.truncf %230 : vector<64x4xf32> to vector<64x4xbf16>
    %cst_101 = arith.constant dense<0.000000e+00> : vector<16x4xf32>
    %238 = tpu.matmul %236, %237, %cst_101 {dimension_numbers = #tpu.dot_dimension_numbers<[1], [0], [0], [1], [0, 0, 1, 1], [], []>} : vector<16x64xbf16>, vector<64x4xbf16>, vector<16x4xf32> -> vector<16x4xf32>
    %239 = vector.shape_cast %238 : vector<16x4xf32> to vector<2x8x4xf32>
    %240 = vector.shape_cast %235 : vector<16x64xf32> to vector<2x8x64xf32>
    %241 = vector.extract_strided_slice %240 {offsets = [0, 0, 0], sizes = [2, 8, 32], strides = [1, 1, 1]} : vector<2x8x64xf32> to vector<2x8x32xf32>
    %242 = vector.extract_strided_slice %239 {offsets = [0, 0, 0], sizes = [2, 8, 1], strides = [1, 1, 1]} : vector<2x8x4xf32> to vector<2x8x1xf32>
    %243 = vector.extract_strided_slice %239 {offsets = [0, 0, 1], sizes = [2, 8, 1], strides = [1, 1, 1]} : vector<2x8x4xf32> to vector<2x8x1xf32>
    %244 = tpu.transpose %243, [0, 2, 1] : vector<2x8x1xf32> -> vector<2x1x8xf32>
    %245 = vector.broadcast %242 : vector<2x8x1xf32> to vector<2x8x8xf32>
    %246 = vector.broadcast %244 : vector<2x1x8xf32> to vector<2x8x8xf32>
    %247 = arith.mulf %245, %246 : vector<2x8x8xf32>
    %cst_102 = arith.constant 0.000000e+00 : f32
    %248 = vector.broadcast %cst_102 : f32 to vector<2x8x8xf32>
    %249 = arith.cmpf oge, %247, %248 : vector<2x8x8xf32>
    %cst_103 = arith.constant 0.00999999977 : f32
    %250 = vector.broadcast %cst_103 : f32 to vector<2x8x8xf32>
    %251 = arith.mulf %250, %247 : vector<2x8x8xf32>
    %252 = arith.select %249, %247, %251 : vector<2x8x8xi1>, vector<2x8x8xf32>
    %cst_104 = arith.constant -9.000000e+15 : f32
    %253 = vector.broadcast %cst_104 : f32 to vector<2x8x8xf32>
    %254 = arith.select %3, %252, %253 : vector<2x8x8xi1>, vector<2x8x8xf32>
    %cst_105 = arith.constant dense<0xFF800000> : vector<2x8xf32>
    %255 = vector.multi_reduction <maximumf>, %254, %cst_105 [2] : vector<2x8x8xf32> to vector<2x8xf32>
    %256 = vector.shape_cast %255 : vector<2x8xf32> to vector<2x8x1xf32>
    %257 = vector.broadcast %256 : vector<2x8x1xf32> to vector<2x8x8xf32>
    %258 = arith.subf %254, %257 : vector<2x8x8xf32>
    %259 = math.exp %258 : vector<2x8x8xf32>
    %cst_106 = arith.constant dense<0.000000e+00> : vector<2x8xf32>
    %260 = vector.multi_reduction <add>, %259, %cst_106 [2] : vector<2x8x8xf32> to vector<2x8xf32>
    %261 = vector.shape_cast %260 : vector<2x8xf32> to vector<2x8x1xf32>
    %262 = tpu.reciprocal %261 {approx = true} : vector<2x8x1xf32> -> vector<2x8x1xf32>
    %263 = vector.broadcast %262 : vector<2x8x1xf32> to vector<2x8x8xf32>
    %264 = arith.mulf %259, %263 : vector<2x8x8xf32>
    %cst_107 = arith.constant 0.000000e+00 : f32
    %265 = vector.broadcast %cst_107 : f32 to vector<2x8x8xf32>
    %266 = arith.select %3, %264, %265 : vector<2x8x8xi1>, vector<2x8x8xf32>
    %267 = arith.truncf %266 : vector<2x8x8xf32> to vector<2x8x8xbf16>
    %268 = arith.truncf %241 : vector<2x8x32xf32> to vector<2x8x32xbf16>
    "tpu.trace_start"() <{level = 10 : i32, message = "bqk,bkf->bqf"}> : () -> ()
    %cst_108 = arith.constant dense<0.000000e+00> : vector<2x8x32xf32>
    %269 = tpu.matmul %267, %268, %cst_108 {dimension_numbers = #tpu.dot_dimension_numbers<[2], [1], [1], [2], [0, 0, 0, 1, 1, 2], [0], [0]>} : vector<2x8x8xbf16>, vector<2x8x32xbf16>, vector<2x8x32xf32> -> vector<2x8x32xf32>
    %cst_109 = arith.constant 0.000000e+00 : f32
    "tpu.trace_stop"() : () -> ()
    %270 = vector.broadcast %cst_109 : f32 to vector<2x8x32xf32>
    %271 = arith.cmpf ogt, %269, %270 : vector<2x8x32xf32>
    %cst_110 = arith.constant 0.000000e+00 : f32
    %272 = vector.broadcast %cst_110 : f32 to vector<2x8x32xf32>
    %273 = arith.minimumf %269, %272 : vector<2x8x32xf32>
    %274 = math.exp %273 : vector<2x8x32xf32>
    %cst_111 = arith.constant 1.000000e+00 : f32
    %275 = vector.broadcast %cst_111 : f32 to vector<2x8x32xf32>
    %276 = arith.subf %274, %275 : vector<2x8x32xf32>
    %277 = arith.select %271, %269, %276 : vector<2x8x32xi1>, vector<2x8x32xf32>
    %278 = vector.shape_cast %277 : vector<2x8x32xf32> to vector<16x32xf32>
    %279 = vector.extract_strided_slice %231 {offsets = [0, 0], sizes = [32, 32], strides = [1, 1]} : vector<64x32xf32> to vector<32x32xf32>
    %280 = arith.truncf %278 : vector<16x32xf32> to vector<16x32xbf16>
    %281 = arith.truncf %279 : vector<32x32xf32> to vector<32x32xbf16>
    %cst_112 = arith.constant dense<0.000000e+00> : vector<16x32xf32>
    %282 = tpu.matmul %280, %281, %cst_112 {dimension_numbers = #tpu.dot_dimension_numbers<[1], [0], [0], [1], [0, 0, 1, 1], [], []>} : vector<16x32xbf16>, vector<32x32xbf16>, vector<16x32xf32> -> vector<16x32xf32>
    %283 = vector.extract_strided_slice %240 {offsets = [0, 0, 32], sizes = [2, 8, 32], strides = [1, 1, 1]} : vector<2x8x64xf32> to vector<2x8x32xf32>
    %284 = vector.extract_strided_slice %239 {offsets = [0, 0, 2], sizes = [2, 8, 1], strides = [1, 1, 1]} : vector<2x8x4xf32> to vector<2x8x1xf32>
    %285 = vector.extract_strided_slice %239 {offsets = [0, 0, 3], sizes = [2, 8, 1], strides = [1, 1, 1]} : vector<2x8x4xf32> to vector<2x8x1xf32>
    %286 = tpu.transpose %285, [0, 2, 1] : vector<2x8x1xf32> -> vector<2x1x8xf32>
    %287 = vector.broadcast %284 : vector<2x8x1xf32> to vector<2x8x8xf32>
    %288 = vector.broadcast %286 : vector<2x1x8xf32> to vector<2x8x8xf32>
    %289 = arith.mulf %287, %288 : vector<2x8x8xf32>
    %cst_113 = arith.constant 0.000000e+00 : f32
    %290 = vector.broadcast %cst_113 : f32 to vector<2x8x8xf32>
    %291 = arith.cmpf oge, %289, %290 : vector<2x8x8xf32>
    %cst_114 = arith.constant 0.00999999977 : f32
    %292 = vector.broadcast %cst_114 : f32 to vector<2x8x8xf32>
    %293 = arith.mulf %292, %289 : vector<2x8x8xf32>
    %294 = arith.select %291, %289, %293 : vector<2x8x8xi1>, vector<2x8x8xf32>
    %cst_115 = arith.constant -9.000000e+15 : f32
    %295 = vector.broadcast %cst_115 : f32 to vector<2x8x8xf32>
    %296 = arith.select %3, %294, %295 : vector<2x8x8xi1>, vector<2x8x8xf32>
    %cst_116 = arith.constant dense<0xFF800000> : vector<2x8xf32>
    %297 = vector.multi_reduction <maximumf>, %296, %cst_116 [2] : vector<2x8x8xf32> to vector<2x8xf32>
    %298 = vector.shape_cast %297 : vector<2x8xf32> to vector<2x8x1xf32>
    %299 = vector.broadcast %298 : vector<2x8x1xf32> to vector<2x8x8xf32>
    %300 = arith.subf %296, %299 : vector<2x8x8xf32>
    %301 = math.exp %300 : vector<2x8x8xf32>
    %cst_117 = arith.constant dense<0.000000e+00> : vector<2x8xf32>
    %302 = vector.multi_reduction <add>, %301, %cst_117 [2] : vector<2x8x8xf32> to vector<2x8xf32>
    %303 = vector.shape_cast %302 : vector<2x8xf32> to vector<2x8x1xf32>
    %304 = tpu.reciprocal %303 {approx = true} : vector<2x8x1xf32> -> vector<2x8x1xf32>
    %305 = vector.broadcast %304 : vector<2x8x1xf32> to vector<2x8x8xf32>
    %306 = arith.mulf %301, %305 : vector<2x8x8xf32>
    %cst_118 = arith.constant 0.000000e+00 : f32
    %307 = vector.broadcast %cst_118 : f32 to vector<2x8x8xf32>
    %308 = arith.select %3, %306, %307 : vector<2x8x8xi1>, vector<2x8x8xf32>
    %309 = arith.truncf %308 : vector<2x8x8xf32> to vector<2x8x8xbf16>
    %310 = arith.truncf %283 : vector<2x8x32xf32> to vector<2x8x32xbf16>
    "tpu.trace_start"() <{level = 10 : i32, message = "bqk,bkf->bqf"}> : () -> ()
    %cst_119 = arith.constant dense<0.000000e+00> : vector<2x8x32xf32>
    %311 = tpu.matmul %309, %310, %cst_119 {dimension_numbers = #tpu.dot_dimension_numbers<[2], [1], [1], [2], [0, 0, 0, 1, 1, 2], [0], [0]>} : vector<2x8x8xbf16>, vector<2x8x32xbf16>, vector<2x8x32xf32> -> vector<2x8x32xf32>
    %cst_120 = arith.constant 0.000000e+00 : f32
    "tpu.trace_stop"() : () -> ()
    %312 = vector.broadcast %cst_120 : f32 to vector<2x8x32xf32>
    %313 = arith.cmpf ogt, %311, %312 : vector<2x8x32xf32>
    %cst_121 = arith.constant 0.000000e+00 : f32
    %314 = vector.broadcast %cst_121 : f32 to vector<2x8x32xf32>
    %315 = arith.minimumf %311, %314 : vector<2x8x32xf32>
    %316 = math.exp %315 : vector<2x8x32xf32>
    %cst_122 = arith.constant 1.000000e+00 : f32
    %317 = vector.broadcast %cst_122 : f32 to vector<2x8x32xf32>
    %318 = arith.subf %316, %317 : vector<2x8x32xf32>
    %319 = arith.select %313, %311, %318 : vector<2x8x32xi1>, vector<2x8x32xf32>
    %320 = vector.shape_cast %319 : vector<2x8x32xf32> to vector<16x32xf32>
    %321 = vector.extract_strided_slice %231 {offsets = [32, 0], sizes = [32, 32], strides = [1, 1]} : vector<64x32xf32> to vector<32x32xf32>
    %322 = arith.truncf %320 : vector<16x32xf32> to vector<16x32xbf16>
    %323 = arith.truncf %321 : vector<32x32xf32> to vector<32x32xbf16>
    %cst_123 = arith.constant dense<0.000000e+00> : vector<16x32xf32>
    %324 = tpu.matmul %322, %323, %cst_123 {dimension_numbers = #tpu.dot_dimension_numbers<[1], [0], [0], [1], [0, 0, 1, 1], [], []>} : vector<16x32xbf16>, vector<32x32xbf16>, vector<16x32xf32> -> vector<16x32xf32>
    %325 = arith.addf %282, %324 : vector<16x32xf32>
    %326 = vector.broadcast %232 : vector<1x32xf32> to vector<16x32xf32>
    %327 = arith.addf %325, %326 : vector<16x32xf32>
    %328 = arith.addf %327, %228 : vector<16x32xf32>
    %cst_124 = arith.constant dense<0.000000e+00> : vector<16xf32>
    %329 = vector.multi_reduction <add>, %328, %cst_124 [1] : vector<16x32xf32> to vector<16xf32>
    %330 = vector.shape_cast %329 : vector<16xf32> to vector<16x1xf32>
    %cst_125 = arith.constant 3.200000e+01 : f32
    %331 = vector.broadcast %cst_125 : f32 to vector<16x1xf32>
    %332 = arith.divf %330, %331 : vector<16x1xf32>
    %333 = vector.broadcast %332 : vector<16x1xf32> to vector<16x32xf32>
    %334 = arith.subf %328, %333 : vector<16x32xf32>
    %335 = arith.mulf %334, %334 : vector<16x32xf32>
    %cst_126 = arith.constant dense<0.000000e+00> : vector<16xf32>
    %336 = vector.multi_reduction <add>, %335, %cst_126 [1] : vector<16x32xf32> to vector<16xf32>
    %337 = vector.shape_cast %336 : vector<16xf32> to vector<16x1xf32>
    %cst_127 = arith.constant 3.200000e+01 : f32
    %338 = vector.broadcast %cst_127 : f32 to vector<16x1xf32>
    %339 = arith.divf %337, %338 : vector<16x1xf32>
    %340 = vector.broadcast %332 : vector<16x1xf32> to vector<16x32xf32>
    %341 = arith.subf %328, %340 : vector<16x32xf32>
    %cst_128 = arith.constant 9.99999974E-6 : f32
    %342 = vector.broadcast %cst_128 : f32 to vector<16x1xf32>
    %343 = arith.addf %339, %342 : vector<16x1xf32>
    %344 = math.rsqrt %343 : vector<16x1xf32>
    %345 = vector.broadcast %344 : vector<16x1xf32> to vector<16x32xf32>
    %346 = arith.mulf %341, %345 : vector<16x32xf32>
    %c0_129 = arith.constant 0 : index
    %c0_130 = arith.constant 0 : index
    %347 = vector.load %arg23[%c0_129, %c0_130] : memref<32x64xf32, #tpu.memory_space<vmem>>, vector<32x64xf32>
    %c0_131 = arith.constant 0 : index
    %c0_132 = arith.constant 0 : index
    %348 = vector.load %arg24[%c0_131, %c0_132] : memref<64x4xf32, #tpu.memory_space<vmem>>, vector<64x4xf32>
    %c0_133 = arith.constant 0 : index
    %c0_134 = arith.constant 0 : index
    %349 = vector.load %arg25[%c0_133, %c0_134] : memref<64x32xf32, #tpu.memory_space<vmem>>, vector<64x32xf32>
    %c0_135 = arith.constant 0 : index
    %c0_136 = arith.constant 0 : index
    %350 = vector.load %arg26[%c0_135, %c0_136] : memref<1x32xf32, #tpu.memory_space<vmem>>, vector<1x32xf32>
    %351 = arith.truncf %346 : vector<16x32xf32> to vector<16x32xbf16>
    %352 = arith.truncf %347 : vector<32x64xf32> to vector<32x64xbf16>
    %cst_137 = arith.constant dense<0.000000e+00> : vector<16x64xf32>
    %353 = tpu.matmul %351, %352, %cst_137 {dimension_numbers = #tpu.dot_dimension_numbers<[1], [0], [0], [1], [0, 0, 1, 1], [], []>} : vector<16x32xbf16>, vector<32x64xbf16>, vector<16x64xf32> -> vector<16x64xf32>
    %354 = arith.truncf %353 : vector<16x64xf32> to vector<16x64xbf16>
    %355 = arith.truncf %348 : vector<64x4xf32> to vector<64x4xbf16>
    %cst_138 = arith.constant dense<0.000000e+00> : vector<16x4xf32>
    %356 = tpu.matmul %354, %355, %cst_138 {dimension_numbers = #tpu.dot_dimension_numbers<[1], [0], [0], [1], [0, 0, 1, 1], [], []>} : vector<16x64xbf16>, vector<64x4xbf16>, vector<16x4xf32> -> vector<16x4xf32>
    %357 = vector.shape_cast %356 : vector<16x4xf32> to vector<2x8x4xf32>
    %358 = vector.shape_cast %353 : vector<16x64xf32> to vector<2x8x64xf32>
    %359 = vector.extract_strided_slice %358 {offsets = [0, 0, 0], sizes = [2, 8, 32], strides = [1, 1, 1]} : vector<2x8x64xf32> to vector<2x8x32xf32>
    %360 = vector.extract_strided_slice %357 {offsets = [0, 0, 0], sizes = [2, 8, 1], strides = [1, 1, 1]} : vector<2x8x4xf32> to vector<2x8x1xf32>
    %361 = vector.extract_strided_slice %357 {offsets = [0, 0, 1], sizes = [2, 8, 1], strides = [1, 1, 1]} : vector<2x8x4xf32> to vector<2x8x1xf32>
    %362 = tpu.transpose %361, [0, 2, 1] : vector<2x8x1xf32> -> vector<2x1x8xf32>
    %363 = vector.broadcast %360 : vector<2x8x1xf32> to vector<2x8x8xf32>
    %364 = vector.broadcast %362 : vector<2x1x8xf32> to vector<2x8x8xf32>
    %365 = arith.mulf %363, %364 : vector<2x8x8xf32>
    %cst_139 = arith.constant 0.000000e+00 : f32
    %366 = vector.broadcast %cst_139 : f32 to vector<2x8x8xf32>
    %367 = arith.cmpf oge, %365, %366 : vector<2x8x8xf32>
    %cst_140 = arith.constant 0.00999999977 : f32
    %368 = vector.broadcast %cst_140 : f32 to vector<2x8x8xf32>
    %369 = arith.mulf %368, %365 : vector<2x8x8xf32>
    %370 = arith.select %367, %365, %369 : vector<2x8x8xi1>, vector<2x8x8xf32>
    %cst_141 = arith.constant -9.000000e+15 : f32
    %371 = vector.broadcast %cst_141 : f32 to vector<2x8x8xf32>
    %372 = arith.select %3, %370, %371 : vector<2x8x8xi1>, vector<2x8x8xf32>
    %cst_142 = arith.constant dense<0xFF800000> : vector<2x8xf32>
    %373 = vector.multi_reduction <maximumf>, %372, %cst_142 [2] : vector<2x8x8xf32> to vector<2x8xf32>
    %374 = vector.shape_cast %373 : vector<2x8xf32> to vector<2x8x1xf32>
    %375 = vector.broadcast %374 : vector<2x8x1xf32> to vector<2x8x8xf32>
    %376 = arith.subf %372, %375 : vector<2x8x8xf32>
    %377 = math.exp %376 : vector<2x8x8xf32>
    %cst_143 = arith.constant dense<0.000000e+00> : vector<2x8xf32>
    %378 = vector.multi_reduction <add>, %377, %cst_143 [2] : vector<2x8x8xf32> to vector<2x8xf32>
    %379 = vector.shape_cast %378 : vector<2x8xf32> to vector<2x8x1xf32>
    %380 = tpu.reciprocal %379 {approx = true} : vector<2x8x1xf32> -> vector<2x8x1xf32>
    %381 = vector.broadcast %380 : vector<2x8x1xf32> to vector<2x8x8xf32>
    %382 = arith.mulf %377, %381 : vector<2x8x8xf32>
    %cst_144 = arith.constant 0.000000e+00 : f32
    %383 = vector.broadcast %cst_144 : f32 to vector<2x8x8xf32>
    %384 = arith.select %3, %382, %383 : vector<2x8x8xi1>, vector<2x8x8xf32>
    %385 = arith.truncf %384 : vector<2x8x8xf32> to vector<2x8x8xbf16>
    %386 = arith.truncf %359 : vector<2x8x32xf32> to vector<2x8x32xbf16>
    "tpu.trace_start"() <{level = 10 : i32, message = "bqk,bkf->bqf"}> : () -> ()
    %cst_145 = arith.constant dense<0.000000e+00> : vector<2x8x32xf32>
    %387 = tpu.matmul %385, %386, %cst_145 {dimension_numbers = #tpu.dot_dimension_numbers<[2], [1], [1], [2], [0, 0, 0, 1, 1, 2], [0], [0]>} : vector<2x8x8xbf16>, vector<2x8x32xbf16>, vector<2x8x32xf32> -> vector<2x8x32xf32>
    %cst_146 = arith.constant 0.000000e+00 : f32
    "tpu.trace_stop"() : () -> ()
    %388 = vector.broadcast %cst_146 : f32 to vector<2x8x32xf32>
    %389 = arith.cmpf ogt, %387, %388 : vector<2x8x32xf32>
    %cst_147 = arith.constant 0.000000e+00 : f32
    %390 = vector.broadcast %cst_147 : f32 to vector<2x8x32xf32>
    %391 = arith.minimumf %387, %390 : vector<2x8x32xf32>
    %392 = math.exp %391 : vector<2x8x32xf32>
    %cst_148 = arith.constant 1.000000e+00 : f32
    %393 = vector.broadcast %cst_148 : f32 to vector<2x8x32xf32>
    %394 = arith.subf %392, %393 : vector<2x8x32xf32>
    %395 = arith.select %389, %387, %394 : vector<2x8x32xi1>, vector<2x8x32xf32>
    %396 = vector.shape_cast %395 : vector<2x8x32xf32> to vector<16x32xf32>
    %397 = vector.extract_strided_slice %349 {offsets = [0, 0], sizes = [32, 32], strides = [1, 1]} : vector<64x32xf32> to vector<32x32xf32>
    %398 = arith.truncf %396 : vector<16x32xf32> to vector<16x32xbf16>
    %399 = arith.truncf %397 : vector<32x32xf32> to vector<32x32xbf16>
    %cst_149 = arith.constant dense<0.000000e+00> : vector<16x32xf32>
    %400 = tpu.matmul %398, %399, %cst_149 {dimension_numbers = #tpu.dot_dimension_numbers<[1], [0], [0], [1], [0, 0, 1, 1], [], []>} : vector<16x32xbf16>, vector<32x32xbf16>, vector<16x32xf32> -> vector<16x32xf32>
    %401 = vector.extract_strided_slice %358 {offsets = [0, 0, 32], sizes = [2, 8, 32], strides = [1, 1, 1]} : vector<2x8x64xf32> to vector<2x8x32xf32>
    %402 = vector.extract_strided_slice %357 {offsets = [0, 0, 2], sizes = [2, 8, 1], strides = [1, 1, 1]} : vector<2x8x4xf32> to vector<2x8x1xf32>
    %403 = vector.extract_strided_slice %357 {offsets = [0, 0, 3], sizes = [2, 8, 1], strides = [1, 1, 1]} : vector<2x8x4xf32> to vector<2x8x1xf32>
    %404 = tpu.transpose %403, [0, 2, 1] : vector<2x8x1xf32> -> vector<2x1x8xf32>
    %405 = vector.broadcast %402 : vector<2x8x1xf32> to vector<2x8x8xf32>
    %406 = vector.broadcast %404 : vector<2x1x8xf32> to vector<2x8x8xf32>
    %407 = arith.mulf %405, %406 : vector<2x8x8xf32>
    %cst_150 = arith.constant 0.000000e+00 : f32
    %408 = vector.broadcast %cst_150 : f32 to vector<2x8x8xf32>
    %409 = arith.cmpf oge, %407, %408 : vector<2x8x8xf32>
    %cst_151 = arith.constant 0.00999999977 : f32
    %410 = vector.broadcast %cst_151 : f32 to vector<2x8x8xf32>
    %411 = arith.mulf %410, %407 : vector<2x8x8xf32>
    %412 = arith.select %409, %407, %411 : vector<2x8x8xi1>, vector<2x8x8xf32>
    %cst_152 = arith.constant -9.000000e+15 : f32
    %413 = vector.broadcast %cst_152 : f32 to vector<2x8x8xf32>
    %414 = arith.select %3, %412, %413 : vector<2x8x8xi1>, vector<2x8x8xf32>
    %cst_153 = arith.constant dense<0xFF800000> : vector<2x8xf32>
    %415 = vector.multi_reduction <maximumf>, %414, %cst_153 [2] : vector<2x8x8xf32> to vector<2x8xf32>
    %416 = vector.shape_cast %415 : vector<2x8xf32> to vector<2x8x1xf32>
    %417 = vector.broadcast %416 : vector<2x8x1xf32> to vector<2x8x8xf32>
    %418 = arith.subf %414, %417 : vector<2x8x8xf32>
    %419 = math.exp %418 : vector<2x8x8xf32>
    %cst_154 = arith.constant dense<0.000000e+00> : vector<2x8xf32>
    %420 = vector.multi_reduction <add>, %419, %cst_154 [2] : vector<2x8x8xf32> to vector<2x8xf32>
    %421 = vector.shape_cast %420 : vector<2x8xf32> to vector<2x8x1xf32>
    %422 = tpu.reciprocal %421 {approx = true} : vector<2x8x1xf32> -> vector<2x8x1xf32>
    %423 = vector.broadcast %422 : vector<2x8x1xf32> to vector<2x8x8xf32>
    %424 = arith.mulf %419, %423 : vector<2x8x8xf32>
    %cst_155 = arith.constant 0.000000e+00 : f32
    %425 = vector.broadcast %cst_155 : f32 to vector<2x8x8xf32>
    %426 = arith.select %3, %424, %425 : vector<2x8x8xi1>, vector<2x8x8xf32>
    %427 = arith.truncf %426 : vector<2x8x8xf32> to vector<2x8x8xbf16>
    %428 = arith.truncf %401 : vector<2x8x32xf32> to vector<2x8x32xbf16>
    "tpu.trace_start"() <{level = 10 : i32, message = "bqk,bkf->bqf"}> : () -> ()
    %cst_156 = arith.constant dense<0.000000e+00> : vector<2x8x32xf32>
    %429 = tpu.matmul %427, %428, %cst_156 {dimension_numbers = #tpu.dot_dimension_numbers<[2], [1], [1], [2], [0, 0, 0, 1, 1, 2], [0], [0]>} : vector<2x8x8xbf16>, vector<2x8x32xbf16>, vector<2x8x32xf32> -> vector<2x8x32xf32>
    %cst_157 = arith.constant 0.000000e+00 : f32
    "tpu.trace_stop"() : () -> ()
    %430 = vector.broadcast %cst_157 : f32 to vector<2x8x32xf32>
    %431 = arith.cmpf ogt, %429, %430 : vector<2x8x32xf32>
    %cst_158 = arith.constant 0.000000e+00 : f32
    %432 = vector.broadcast %cst_158 : f32 to vector<2x8x32xf32>
    %433 = arith.minimumf %429, %432 : vector<2x8x32xf32>
    %434 = math.exp %433 : vector<2x8x32xf32>
    %cst_159 = arith.constant 1.000000e+00 : f32
    %435 = vector.broadcast %cst_159 : f32 to vector<2x8x32xf32>
    %436 = arith.subf %434, %435 : vector<2x8x32xf32>
    %437 = arith.select %431, %429, %436 : vector<2x8x32xi1>, vector<2x8x32xf32>
    %438 = vector.shape_cast %437 : vector<2x8x32xf32> to vector<16x32xf32>
    %439 = vector.extract_strided_slice %349 {offsets = [32, 0], sizes = [32, 32], strides = [1, 1]} : vector<64x32xf32> to vector<32x32xf32>
    %440 = arith.truncf %438 : vector<16x32xf32> to vector<16x32xbf16>
    %441 = arith.truncf %439 : vector<32x32xf32> to vector<32x32xbf16>
    %cst_160 = arith.constant dense<0.000000e+00> : vector<16x32xf32>
    %442 = tpu.matmul %440, %441, %cst_160 {dimension_numbers = #tpu.dot_dimension_numbers<[1], [0], [0], [1], [0, 0, 1, 1], [], []>} : vector<16x32xbf16>, vector<32x32xbf16>, vector<16x32xf32> -> vector<16x32xf32>
    %443 = arith.addf %400, %442 : vector<16x32xf32>
    %444 = vector.broadcast %350 : vector<1x32xf32> to vector<16x32xf32>
    %445 = arith.addf %443, %444 : vector<16x32xf32>
    %446 = arith.addf %445, %346 : vector<16x32xf32>
    %cst_161 = arith.constant dense<0.000000e+00> : vector<16xf32>
    %447 = vector.multi_reduction <add>, %446, %cst_161 [1] : vector<16x32xf32> to vector<16xf32>
    %448 = vector.shape_cast %447 : vector<16xf32> to vector<16x1xf32>
    %cst_162 = arith.constant 3.200000e+01 : f32
    %449 = vector.broadcast %cst_162 : f32 to vector<16x1xf32>
    %450 = arith.divf %448, %449 : vector<16x1xf32>
    %451 = vector.broadcast %450 : vector<16x1xf32> to vector<16x32xf32>
    %452 = arith.subf %446, %451 : vector<16x32xf32>
    %453 = arith.mulf %452, %452 : vector<16x32xf32>
    %cst_163 = arith.constant dense<0.000000e+00> : vector<16xf32>
    %454 = vector.multi_reduction <add>, %453, %cst_163 [1] : vector<16x32xf32> to vector<16xf32>
    %455 = vector.shape_cast %454 : vector<16xf32> to vector<16x1xf32>
    %cst_164 = arith.constant 3.200000e+01 : f32
    %456 = vector.broadcast %cst_164 : f32 to vector<16x1xf32>
    %457 = arith.divf %455, %456 : vector<16x1xf32>
    %458 = vector.broadcast %450 : vector<16x1xf32> to vector<16x32xf32>
    %459 = arith.subf %446, %458 : vector<16x32xf32>
    %cst_165 = arith.constant 9.99999974E-6 : f32
    %460 = vector.broadcast %cst_165 : f32 to vector<16x1xf32>
    %461 = arith.addf %457, %460 : vector<16x1xf32>
    %462 = math.rsqrt %461 : vector<16x1xf32>
    %463 = vector.broadcast %462 : vector<16x1xf32> to vector<16x32xf32>
    %464 = arith.mulf %459, %463 : vector<16x32xf32>
    %c0_166 = arith.constant 0 : index
    %c0_167 = arith.constant 0 : index
    %465 = vector.load %arg27[%c0_166, %c0_167] : memref<32x32xf32, #tpu.memory_space<vmem>>, vector<32x32xf32>
    %c0_168 = arith.constant 0 : index
    %c0_169 = arith.constant 0 : index
    %466 = vector.load %arg28[%c0_168, %c0_169] : memref<32x2xf32, #tpu.memory_space<vmem>>, vector<32x2xf32>
    %467 = arith.truncf %464 : vector<16x32xf32> to vector<16x32xbf16>
    %468 = arith.truncf %465 : vector<32x32xf32> to vector<32x32xbf16>
    %cst_170 = arith.constant dense<0.000000e+00> : vector<16x32xf32>
    %469 = tpu.matmul %467, %468, %cst_170 {dimension_numbers = #tpu.dot_dimension_numbers<[1], [0], [0], [1], [0, 0, 1, 1], [], []>} : vector<16x32xbf16>, vector<32x32xbf16>, vector<16x32xf32> -> vector<16x32xf32>
    %470 = arith.truncf %469 : vector<16x32xf32> to vector<16x32xbf16>
    %471 = arith.truncf %466 : vector<32x2xf32> to vector<32x2xbf16>
    %cst_171 = arith.constant dense<0.000000e+00> : vector<16x2xf32>
    %472 = tpu.matmul %470, %471, %cst_171 {dimension_numbers = #tpu.dot_dimension_numbers<[1], [0], [0], [1], [0, 0, 1, 1], [], []>} : vector<16x32xbf16>, vector<32x2xbf16>, vector<16x2xf32> -> vector<16x2xf32>
    %473 = vector.shape_cast %472 : vector<16x2xf32> to vector<2x8x2xf32>
    %474 = vector.extract_strided_slice %473 {offsets = [0, 0, 0], sizes = [2, 8, 1], strides = [1, 1, 1]} : vector<2x8x2xf32> to vector<2x8x1xf32>
    %475 = vector.extract_strided_slice %473 {offsets = [0, 0, 1], sizes = [2, 8, 1], strides = [1, 1, 1]} : vector<2x8x2xf32> to vector<2x8x1xf32>
    %476 = tpu.transpose %475, [0, 2, 1] : vector<2x8x1xf32> -> vector<2x1x8xf32>
    %477 = vector.broadcast %474 : vector<2x8x1xf32> to vector<2x8x8xf32>
    %478 = vector.broadcast %476 : vector<2x1x8xf32> to vector<2x8x8xf32>
    %479 = arith.mulf %477, %478 : vector<2x8x8xf32>
    %cst_172 = arith.constant 0.000000e+00 : f32
    %480 = vector.broadcast %cst_172 : f32 to vector<2x8x8xf32>
    %481 = arith.cmpf oge, %479, %480 : vector<2x8x8xf32>
    %cst_173 = arith.constant 0.00999999977 : f32
    %482 = vector.broadcast %cst_173 : f32 to vector<2x8x8xf32>
    %483 = arith.mulf %482, %479 : vector<2x8x8xf32>
    %484 = arith.select %481, %479, %483 : vector<2x8x8xi1>, vector<2x8x8xf32>
    %cst_174 = arith.constant -9.000000e+15 : f32
    %485 = vector.broadcast %cst_174 : f32 to vector<2x8x8xf32>
    %486 = arith.select %3, %484, %485 : vector<2x8x8xi1>, vector<2x8x8xf32>
    %cst_175 = arith.constant dense<0xFF800000> : vector<2x8xf32>
    %487 = vector.multi_reduction <maximumf>, %486, %cst_175 [2] : vector<2x8x8xf32> to vector<2x8xf32>
    %488 = vector.shape_cast %487 : vector<2x8xf32> to vector<2x8x1xf32>
    %489 = vector.broadcast %488 : vector<2x8x1xf32> to vector<2x8x8xf32>
    %490 = arith.subf %486, %489 : vector<2x8x8xf32>
    %491 = math.exp %490 : vector<2x8x8xf32>
    %cst_176 = arith.constant dense<0.000000e+00> : vector<2x8xf32>
    %492 = vector.multi_reduction <add>, %491, %cst_176 [2] : vector<2x8x8xf32> to vector<2x8xf32>
    %493 = vector.shape_cast %492 : vector<2x8xf32> to vector<2x8x1xf32>
    %494 = tpu.reciprocal %493 {approx = true} : vector<2x8x1xf32> -> vector<2x8x1xf32>
    %495 = vector.broadcast %494 : vector<2x8x1xf32> to vector<2x8x8xf32>
    %496 = arith.mulf %491, %495 : vector<2x8x8xf32>
    %cst_177 = arith.constant 0.000000e+00 : f32
    %497 = vector.broadcast %cst_177 : f32 to vector<2x8x8xf32>
    %498 = arith.select %3, %496, %497 : vector<2x8x8xi1>, vector<2x8x8xf32>
    %499 = vector.shape_cast %469 : vector<16x32xf32> to vector<2x8x32xf32>
    %500 = arith.truncf %498 : vector<2x8x8xf32> to vector<2x8x8xbf16>
    %501 = arith.truncf %499 : vector<2x8x32xf32> to vector<2x8x32xbf16>
    "tpu.trace_start"() <{level = 10 : i32, message = "bqk,bkf->bqf"}> : () -> ()
    %cst_178 = arith.constant dense<0.000000e+00> : vector<2x8x32xf32>
    %502 = tpu.matmul %500, %501, %cst_178 {dimension_numbers = #tpu.dot_dimension_numbers<[2], [1], [1], [2], [0, 0, 0, 1, 1, 2], [0], [0]>} : vector<2x8x8xbf16>, vector<2x8x32xbf16>, vector<2x8x32xf32> -> vector<2x8x32xf32>
    "tpu.trace_stop"() : () -> ()
    %503 = vector.shape_cast %502 : vector<2x8x32xf32> to vector<16x32xf32>
    %cst_179 = arith.constant 0.000000e+00 : f32
    %504 = vector.broadcast %cst_179 : f32 to vector<16x32xf32>
    %505 = arith.cmpf oge, %503, %504 : vector<16x32xf32>
    %cst_180 = arith.constant 0.00999999977 : f32
    %506 = vector.broadcast %cst_180 : f32 to vector<16x32xf32>
    %507 = arith.mulf %506, %503 : vector<16x32xf32>
    %508 = arith.select %505, %503, %507 : vector<16x32xi1>, vector<16x32xf32>
    %c0_181 = arith.constant 0 : index
    %c0_182 = arith.constant 0 : index
    %c0_183 = arith.constant 0 : index
    %509 = vector.load %arg2[%c0_181, %c0_182, %c0_183] : memref<2x8x8xi8, #tpu.memory_space<vmem>>, vector<2x8x8xi8>
    %510 = arith.sitofp %509 : vector<2x8x8xi8> to vector<2x8x8xf32>
    %511 = tpu.transpose %510, [0, 2, 1] : vector<2x8x8xf32> -> vector<2x8x8xf32>
    %cst_184 = arith.constant 0.000000e+00 : f32
    %512 = vector.broadcast %cst_184 : f32 to vector<2x8x8xf32>
    %513 = arith.cmpf ogt, %511, %512 : vector<2x8x8xf32>
    %c0_185 = arith.constant 0 : index
    %c0_186 = arith.constant 0 : index
    %514 = vector.load %arg29[%c0_185, %c0_186] : memref<32x32xf32, #tpu.memory_space<vmem>>, vector<32x32xf32>
    %c0_187 = arith.constant 0 : index
    %c0_188 = arith.constant 0 : index
    %515 = vector.load %arg30[%c0_187, %c0_188] : memref<32x4xf32, #tpu.memory_space<vmem>>, vector<32x4xf32>
    %c0_189 = arith.constant 0 : index
    %c0_190 = arith.constant 0 : index
    %516 = vector.load %arg31[%c0_189, %c0_190] : memref<32x16xf32, #tpu.memory_space<vmem>>, vector<32x16xf32>
    %c0_191 = arith.constant 0 : index
    %c0_192 = arith.constant 0 : index
    %517 = vector.load %arg32[%c0_191, %c0_192] : memref<1x16xf32, #tpu.memory_space<vmem>>, vector<1x16xf32>
    %518 = arith.truncf %508 : vector<16x32xf32> to vector<16x32xbf16>
    %519 = arith.truncf %514 : vector<32x32xf32> to vector<32x32xbf16>
    %cst_193 = arith.constant dense<0.000000e+00> : vector<16x32xf32>
    %520 = tpu.matmul %518, %519, %cst_193 {dimension_numbers = #tpu.dot_dimension_numbers<[1], [0], [0], [1], [0, 0, 1, 1], [], []>} : vector<16x32xbf16>, vector<32x32xbf16>, vector<16x32xf32> -> vector<16x32xf32>
    %521 = arith.truncf %520 : vector<16x32xf32> to vector<16x32xbf16>
    %522 = arith.truncf %515 : vector<32x4xf32> to vector<32x4xbf16>
    %cst_194 = arith.constant dense<0.000000e+00> : vector<16x4xf32>
    %523 = tpu.matmul %521, %522, %cst_194 {dimension_numbers = #tpu.dot_dimension_numbers<[1], [0], [0], [1], [0, 0, 1, 1], [], []>} : vector<16x32xbf16>, vector<32x4xbf16>, vector<16x4xf32> -> vector<16x4xf32>
    %524 = vector.shape_cast %523 : vector<16x4xf32> to vector<2x8x4xf32>
    %525 = vector.shape_cast %520 : vector<16x32xf32> to vector<2x8x32xf32>
    %526 = vector.extract_strided_slice %525 {offsets = [0, 0, 0], sizes = [2, 8, 16], strides = [1, 1, 1]} : vector<2x8x32xf32> to vector<2x8x16xf32>
    %527 = vector.extract_strided_slice %524 {offsets = [0, 0, 0], sizes = [2, 8, 1], strides = [1, 1, 1]} : vector<2x8x4xf32> to vector<2x8x1xf32>
    %528 = vector.extract_strided_slice %524 {offsets = [0, 0, 1], sizes = [2, 8, 1], strides = [1, 1, 1]} : vector<2x8x4xf32> to vector<2x8x1xf32>
    %529 = tpu.transpose %528, [0, 2, 1] : vector<2x8x1xf32> -> vector<2x1x8xf32>
    %530 = vector.broadcast %527 : vector<2x8x1xf32> to vector<2x8x8xf32>
    %531 = vector.broadcast %529 : vector<2x1x8xf32> to vector<2x8x8xf32>
    %532 = arith.mulf %530, %531 : vector<2x8x8xf32>
    %cst_195 = arith.constant 0.000000e+00 : f32
    %533 = vector.broadcast %cst_195 : f32 to vector<2x8x8xf32>
    %534 = arith.cmpf oge, %532, %533 : vector<2x8x8xf32>
    %cst_196 = arith.constant 0.00999999977 : f32
    %535 = vector.broadcast %cst_196 : f32 to vector<2x8x8xf32>
    %536 = arith.mulf %535, %532 : vector<2x8x8xf32>
    %537 = arith.select %534, %532, %536 : vector<2x8x8xi1>, vector<2x8x8xf32>
    %cst_197 = arith.constant -9.000000e+15 : f32
    %538 = vector.broadcast %cst_197 : f32 to vector<2x8x8xf32>
    %539 = arith.select %513, %537, %538 : vector<2x8x8xi1>, vector<2x8x8xf32>
    %cst_198 = arith.constant dense<0xFF800000> : vector<2x8xf32>
    %540 = vector.multi_reduction <maximumf>, %539, %cst_198 [2] : vector<2x8x8xf32> to vector<2x8xf32>
    %541 = vector.shape_cast %540 : vector<2x8xf32> to vector<2x8x1xf32>
    %542 = vector.broadcast %541 : vector<2x8x1xf32> to vector<2x8x8xf32>
    %543 = arith.subf %539, %542 : vector<2x8x8xf32>
    %544 = math.exp %543 : vector<2x8x8xf32>
    %cst_199 = arith.constant dense<0.000000e+00> : vector<2x8xf32>
    %545 = vector.multi_reduction <add>, %544, %cst_199 [2] : vector<2x8x8xf32> to vector<2x8xf32>
    %546 = vector.shape_cast %545 : vector<2x8xf32> to vector<2x8x1xf32>
    %547 = tpu.reciprocal %546 {approx = true} : vector<2x8x1xf32> -> vector<2x8x1xf32>
    %548 = vector.broadcast %547 : vector<2x8x1xf32> to vector<2x8x8xf32>
    %549 = arith.mulf %544, %548 : vector<2x8x8xf32>
    %cst_200 = arith.constant 0.000000e+00 : f32
    %550 = vector.broadcast %cst_200 : f32 to vector<2x8x8xf32>
    %551 = arith.select %513, %549, %550 : vector<2x8x8xi1>, vector<2x8x8xf32>
    %552 = arith.truncf %551 : vector<2x8x8xf32> to vector<2x8x8xbf16>
    %553 = arith.truncf %526 : vector<2x8x16xf32> to vector<2x8x16xbf16>
    "tpu.trace_start"() <{level = 10 : i32, message = "bqk,bkf->bqf"}> : () -> ()
    %cst_201 = arith.constant dense<0.000000e+00> : vector<2x8x16xf32>
    %554 = tpu.matmul %552, %553, %cst_201 {dimension_numbers = #tpu.dot_dimension_numbers<[2], [1], [1], [2], [0, 0, 0, 1, 1, 2], [0], [0]>} : vector<2x8x8xbf16>, vector<2x8x16xbf16>, vector<2x8x16xf32> -> vector<2x8x16xf32>
    %cst_202 = arith.constant 0.000000e+00 : f32
    "tpu.trace_stop"() : () -> ()
    %555 = vector.broadcast %cst_202 : f32 to vector<2x8x16xf32>
    %556 = arith.cmpf ogt, %554, %555 : vector<2x8x16xf32>
    %cst_203 = arith.constant 0.000000e+00 : f32
    %557 = vector.broadcast %cst_203 : f32 to vector<2x8x16xf32>
    %558 = arith.minimumf %554, %557 : vector<2x8x16xf32>
    %559 = math.exp %558 : vector<2x8x16xf32>
    %cst_204 = arith.constant 1.000000e+00 : f32
    %560 = vector.broadcast %cst_204 : f32 to vector<2x8x16xf32>
    %561 = arith.subf %559, %560 : vector<2x8x16xf32>
    %562 = arith.select %556, %554, %561 : vector<2x8x16xi1>, vector<2x8x16xf32>
    %563 = vector.shape_cast %562 : vector<2x8x16xf32> to vector<16x16xf32>
    %564 = vector.extract_strided_slice %516 {offsets = [0, 0], sizes = [16, 16], strides = [1, 1]} : vector<32x16xf32> to vector<16x16xf32>
    %565 = arith.truncf %563 : vector<16x16xf32> to vector<16x16xbf16>
    %566 = arith.truncf %564 : vector<16x16xf32> to vector<16x16xbf16>
    %cst_205 = arith.constant dense<0.000000e+00> : vector<16x16xf32>
    %567 = tpu.matmul %565, %566, %cst_205 {dimension_numbers = #tpu.dot_dimension_numbers<[1], [0], [0], [1], [0, 0, 1, 1], [], []>} : vector<16x16xbf16>, vector<16x16xbf16>, vector<16x16xf32> -> vector<16x16xf32>
    %568 = vector.extract_strided_slice %525 {offsets = [0, 0, 16], sizes = [2, 8, 16], strides = [1, 1, 1]} : vector<2x8x32xf32> to vector<2x8x16xf32>
    %569 = vector.extract_strided_slice %524 {offsets = [0, 0, 2], sizes = [2, 8, 1], strides = [1, 1, 1]} : vector<2x8x4xf32> to vector<2x8x1xf32>
    %570 = vector.extract_strided_slice %524 {offsets = [0, 0, 3], sizes = [2, 8, 1], strides = [1, 1, 1]} : vector<2x8x4xf32> to vector<2x8x1xf32>
    %571 = tpu.transpose %570, [0, 2, 1] : vector<2x8x1xf32> -> vector<2x1x8xf32>
    %572 = vector.broadcast %569 : vector<2x8x1xf32> to vector<2x8x8xf32>
    %573 = vector.broadcast %571 : vector<2x1x8xf32> to vector<2x8x8xf32>
    %574 = arith.mulf %572, %573 : vector<2x8x8xf32>
    %cst_206 = arith.constant 0.000000e+00 : f32
    %575 = vector.broadcast %cst_206 : f32 to vector<2x8x8xf32>
    %576 = arith.cmpf oge, %574, %575 : vector<2x8x8xf32>
    %cst_207 = arith.constant 0.00999999977 : f32
    %577 = vector.broadcast %cst_207 : f32 to vector<2x8x8xf32>
    %578 = arith.mulf %577, %574 : vector<2x8x8xf32>
    %579 = arith.select %576, %574, %578 : vector<2x8x8xi1>, vector<2x8x8xf32>
    %cst_208 = arith.constant -9.000000e+15 : f32
    %580 = vector.broadcast %cst_208 : f32 to vector<2x8x8xf32>
    %581 = arith.select %513, %579, %580 : vector<2x8x8xi1>, vector<2x8x8xf32>
    %cst_209 = arith.constant dense<0xFF800000> : vector<2x8xf32>
    %582 = vector.multi_reduction <maximumf>, %581, %cst_209 [2] : vector<2x8x8xf32> to vector<2x8xf32>
    %583 = vector.shape_cast %582 : vector<2x8xf32> to vector<2x8x1xf32>
    %584 = vector.broadcast %583 : vector<2x8x1xf32> to vector<2x8x8xf32>
    %585 = arith.subf %581, %584 : vector<2x8x8xf32>
    %586 = math.exp %585 : vector<2x8x8xf32>
    %cst_210 = arith.constant dense<0.000000e+00> : vector<2x8xf32>
    %587 = vector.multi_reduction <add>, %586, %cst_210 [2] : vector<2x8x8xf32> to vector<2x8xf32>
    %588 = vector.shape_cast %587 : vector<2x8xf32> to vector<2x8x1xf32>
    %589 = tpu.reciprocal %588 {approx = true} : vector<2x8x1xf32> -> vector<2x8x1xf32>
    %590 = vector.broadcast %589 : vector<2x8x1xf32> to vector<2x8x8xf32>
    %591 = arith.mulf %586, %590 : vector<2x8x8xf32>
    %cst_211 = arith.constant 0.000000e+00 : f32
    %592 = vector.broadcast %cst_211 : f32 to vector<2x8x8xf32>
    %593 = arith.select %513, %591, %592 : vector<2x8x8xi1>, vector<2x8x8xf32>
    %594 = arith.truncf %593 : vector<2x8x8xf32> to vector<2x8x8xbf16>
    %595 = arith.truncf %568 : vector<2x8x16xf32> to vector<2x8x16xbf16>
    "tpu.trace_start"() <{level = 10 : i32, message = "bqk,bkf->bqf"}> : () -> ()
    %cst_212 = arith.constant dense<0.000000e+00> : vector<2x8x16xf32>
    %596 = tpu.matmul %594, %595, %cst_212 {dimension_numbers = #tpu.dot_dimension_numbers<[2], [1], [1], [2], [0, 0, 0, 1, 1, 2], [0], [0]>} : vector<2x8x8xbf16>, vector<2x8x16xbf16>, vector<2x8x16xf32> -> vector<2x8x16xf32>
    %cst_213 = arith.constant 0.000000e+00 : f32
    "tpu.trace_stop"() : () -> ()
    %597 = vector.broadcast %cst_213 : f32 to vector<2x8x16xf32>
    %598 = arith.cmpf ogt, %596, %597 : vector<2x8x16xf32>
    %cst_214 = arith.constant 0.000000e+00 : f32
    %599 = vector.broadcast %cst_214 : f32 to vector<2x8x16xf32>
    %600 = arith.minimumf %596, %599 : vector<2x8x16xf32>
    %601 = math.exp %600 : vector<2x8x16xf32>
    %cst_215 = arith.constant 1.000000e+00 : f32
    %602 = vector.broadcast %cst_215 : f32 to vector<2x8x16xf32>
    %603 = arith.subf %601, %602 : vector<2x8x16xf32>
    %604 = arith.select %598, %596, %603 : vector<2x8x16xi1>, vector<2x8x16xf32>
    %605 = vector.shape_cast %604 : vector<2x8x16xf32> to vector<16x16xf32>
    %606 = vector.extract_strided_slice %516 {offsets = [16, 0], sizes = [16, 16], strides = [1, 1]} : vector<32x16xf32> to vector<16x16xf32>
    %607 = arith.truncf %605 : vector<16x16xf32> to vector<16x16xbf16>
    %608 = arith.truncf %606 : vector<16x16xf32> to vector<16x16xbf16>
    %cst_216 = arith.constant dense<0.000000e+00> : vector<16x16xf32>
    %609 = tpu.matmul %607, %608, %cst_216 {dimension_numbers = #tpu.dot_dimension_numbers<[1], [0], [0], [1], [0, 0, 1, 1], [], []>} : vector<16x16xbf16>, vector<16x16xbf16>, vector<16x16xf32> -> vector<16x16xf32>
    %610 = arith.addf %567, %609 : vector<16x16xf32>
    %611 = vector.broadcast %517 : vector<1x16xf32> to vector<16x16xf32>
    %612 = arith.addf %610, %611 : vector<16x16xf32>
    %cst_217 = arith.constant dense<0.000000e+00> : vector<16xf32>
    %613 = vector.multi_reduction <add>, %612, %cst_217 [1] : vector<16x16xf32> to vector<16xf32>
    %614 = vector.shape_cast %613 : vector<16xf32> to vector<16x1xf32>
    %cst_218 = arith.constant 1.600000e+01 : f32
    %615 = vector.broadcast %cst_218 : f32 to vector<16x1xf32>
    %616 = arith.divf %614, %615 : vector<16x1xf32>
    %617 = vector.broadcast %616 : vector<16x1xf32> to vector<16x16xf32>
    %618 = arith.subf %612, %617 : vector<16x16xf32>
    %619 = arith.mulf %618, %618 : vector<16x16xf32>
    %cst_219 = arith.constant dense<0.000000e+00> : vector<16xf32>
    %620 = vector.multi_reduction <add>, %619, %cst_219 [1] : vector<16x16xf32> to vector<16xf32>
    %621 = vector.shape_cast %620 : vector<16xf32> to vector<16x1xf32>
    %cst_220 = arith.constant 1.600000e+01 : f32
    %622 = vector.broadcast %cst_220 : f32 to vector<16x1xf32>
    %623 = arith.divf %621, %622 : vector<16x1xf32>
    %624 = vector.broadcast %616 : vector<16x1xf32> to vector<16x16xf32>
    %625 = arith.subf %612, %624 : vector<16x16xf32>
    %cst_221 = arith.constant 9.99999974E-6 : f32
    %626 = vector.broadcast %cst_221 : f32 to vector<16x1xf32>
    %627 = arith.addf %623, %626 : vector<16x1xf32>
    %628 = math.rsqrt %627 : vector<16x1xf32>
    %629 = vector.broadcast %628 : vector<16x1xf32> to vector<16x16xf32>
    %630 = arith.mulf %625, %629 : vector<16x16xf32>
    %c0_222 = arith.constant 0 : index
    %c0_223 = arith.constant 0 : index
    %631 = vector.load %arg33[%c0_222, %c0_223] : memref<16x32xf32, #tpu.memory_space<vmem>>, vector<16x32xf32>
    %c0_224 = arith.constant 0 : index
    %c0_225 = arith.constant 0 : index
    %632 = vector.load %arg34[%c0_224, %c0_225] : memref<32x4xf32, #tpu.memory_space<vmem>>, vector<32x4xf32>
    %c0_226 = arith.constant 0 : index
    %c0_227 = arith.constant 0 : index
    %633 = vector.load %arg35[%c0_226, %c0_227] : memref<32x16xf32, #tpu.memory_space<vmem>>, vector<32x16xf32>
    %c0_228 = arith.constant 0 : index
    %c0_229 = arith.constant 0 : index
    %634 = vector.load %arg36[%c0_228, %c0_229] : memref<1x16xf32, #tpu.memory_space<vmem>>, vector<1x16xf32>
    %635 = arith.truncf %630 : vector<16x16xf32> to vector<16x16xbf16>
    %636 = arith.truncf %631 : vector<16x32xf32> to vector<16x32xbf16>
    %cst_230 = arith.constant dense<0.000000e+00> : vector<16x32xf32>
    %637 = tpu.matmul %635, %636, %cst_230 {dimension_numbers = #tpu.dot_dimension_numbers<[1], [0], [0], [1], [0, 0, 1, 1], [], []>} : vector<16x16xbf16>, vector<16x32xbf16>, vector<16x32xf32> -> vector<16x32xf32>
    %638 = arith.truncf %637 : vector<16x32xf32> to vector<16x32xbf16>
    %639 = arith.truncf %632 : vector<32x4xf32> to vector<32x4xbf16>
    %cst_231 = arith.constant dense<0.000000e+00> : vector<16x4xf32>
    %640 = tpu.matmul %638, %639, %cst_231 {dimension_numbers = #tpu.dot_dimension_numbers<[1], [0], [0], [1], [0, 0, 1, 1], [], []>} : vector<16x32xbf16>, vector<32x4xbf16>, vector<16x4xf32> -> vector<16x4xf32>
    %641 = vector.shape_cast %640 : vector<16x4xf32> to vector<2x8x4xf32>
    %642 = vector.shape_cast %637 : vector<16x32xf32> to vector<2x8x32xf32>
    %643 = vector.extract_strided_slice %642 {offsets = [0, 0, 0], sizes = [2, 8, 16], strides = [1, 1, 1]} : vector<2x8x32xf32> to vector<2x8x16xf32>
    %644 = vector.extract_strided_slice %641 {offsets = [0, 0, 0], sizes = [2, 8, 1], strides = [1, 1, 1]} : vector<2x8x4xf32> to vector<2x8x1xf32>
    %645 = vector.extract_strided_slice %641 {offsets = [0, 0, 1], sizes = [2, 8, 1], strides = [1, 1, 1]} : vector<2x8x4xf32> to vector<2x8x1xf32>
    %646 = tpu.transpose %645, [0, 2, 1] : vector<2x8x1xf32> -> vector<2x1x8xf32>
    %647 = vector.broadcast %644 : vector<2x8x1xf32> to vector<2x8x8xf32>
    %648 = vector.broadcast %646 : vector<2x1x8xf32> to vector<2x8x8xf32>
    %649 = arith.mulf %647, %648 : vector<2x8x8xf32>
    %cst_232 = arith.constant 0.000000e+00 : f32
    %650 = vector.broadcast %cst_232 : f32 to vector<2x8x8xf32>
    %651 = arith.cmpf oge, %649, %650 : vector<2x8x8xf32>
    %cst_233 = arith.constant 0.00999999977 : f32
    %652 = vector.broadcast %cst_233 : f32 to vector<2x8x8xf32>
    %653 = arith.mulf %652, %649 : vector<2x8x8xf32>
    %654 = arith.select %651, %649, %653 : vector<2x8x8xi1>, vector<2x8x8xf32>
    %cst_234 = arith.constant -9.000000e+15 : f32
    %655 = vector.broadcast %cst_234 : f32 to vector<2x8x8xf32>
    %656 = arith.select %513, %654, %655 : vector<2x8x8xi1>, vector<2x8x8xf32>
    %cst_235 = arith.constant dense<0xFF800000> : vector<2x8xf32>
    %657 = vector.multi_reduction <maximumf>, %656, %cst_235 [2] : vector<2x8x8xf32> to vector<2x8xf32>
    %658 = vector.shape_cast %657 : vector<2x8xf32> to vector<2x8x1xf32>
    %659 = vector.broadcast %658 : vector<2x8x1xf32> to vector<2x8x8xf32>
    %660 = arith.subf %656, %659 : vector<2x8x8xf32>
    %661 = math.exp %660 : vector<2x8x8xf32>
    %cst_236 = arith.constant dense<0.000000e+00> : vector<2x8xf32>
    %662 = vector.multi_reduction <add>, %661, %cst_236 [2] : vector<2x8x8xf32> to vector<2x8xf32>
    %663 = vector.shape_cast %662 : vector<2x8xf32> to vector<2x8x1xf32>
    %664 = tpu.reciprocal %663 {approx = true} : vector<2x8x1xf32> -> vector<2x8x1xf32>
    %665 = vector.broadcast %664 : vector<2x8x1xf32> to vector<2x8x8xf32>
    %666 = arith.mulf %661, %665 : vector<2x8x8xf32>
    %cst_237 = arith.constant 0.000000e+00 : f32
    %667 = vector.broadcast %cst_237 : f32 to vector<2x8x8xf32>
    %668 = arith.select %513, %666, %667 : vector<2x8x8xi1>, vector<2x8x8xf32>
    %669 = arith.truncf %668 : vector<2x8x8xf32> to vector<2x8x8xbf16>
    %670 = arith.truncf %643 : vector<2x8x16xf32> to vector<2x8x16xbf16>
    "tpu.trace_start"() <{level = 10 : i32, message = "bqk,bkf->bqf"}> : () -> ()
    %cst_238 = arith.constant dense<0.000000e+00> : vector<2x8x16xf32>
    %671 = tpu.matmul %669, %670, %cst_238 {dimension_numbers = #tpu.dot_dimension_numbers<[2], [1], [1], [2], [0, 0, 0, 1, 1, 2], [0], [0]>} : vector<2x8x8xbf16>, vector<2x8x16xbf16>, vector<2x8x16xf32> -> vector<2x8x16xf32>
    %cst_239 = arith.constant 0.000000e+00 : f32
    "tpu.trace_stop"() : () -> ()
    %672 = vector.broadcast %cst_239 : f32 to vector<2x8x16xf32>
    %673 = arith.cmpf ogt, %671, %672 : vector<2x8x16xf32>
    %cst_240 = arith.constant 0.000000e+00 : f32
    %674 = vector.broadcast %cst_240 : f32 to vector<2x8x16xf32>
    %675 = arith.minimumf %671, %674 : vector<2x8x16xf32>
    %676 = math.exp %675 : vector<2x8x16xf32>
    %cst_241 = arith.constant 1.000000e+00 : f32
    %677 = vector.broadcast %cst_241 : f32 to vector<2x8x16xf32>
    %678 = arith.subf %676, %677 : vector<2x8x16xf32>
    %679 = arith.select %673, %671, %678 : vector<2x8x16xi1>, vector<2x8x16xf32>
    %680 = vector.shape_cast %679 : vector<2x8x16xf32> to vector<16x16xf32>
    %681 = vector.extract_strided_slice %633 {offsets = [0, 0], sizes = [16, 16], strides = [1, 1]} : vector<32x16xf32> to vector<16x16xf32>
    %682 = arith.truncf %680 : vector<16x16xf32> to vector<16x16xbf16>
    %683 = arith.truncf %681 : vector<16x16xf32> to vector<16x16xbf16>
    %cst_242 = arith.constant dense<0.000000e+00> : vector<16x16xf32>
    %684 = tpu.matmul %682, %683, %cst_242 {dimension_numbers = #tpu.dot_dimension_numbers<[1], [0], [0], [1], [0, 0, 1, 1], [], []>} : vector<16x16xbf16>, vector<16x16xbf16>, vector<16x16xf32> -> vector<16x16xf32>
    %685 = vector.extract_strided_slice %642 {offsets = [0, 0, 16], sizes = [2, 8, 16], strides = [1, 1, 1]} : vector<2x8x32xf32> to vector<2x8x16xf32>
    %686 = vector.extract_strided_slice %641 {offsets = [0, 0, 2], sizes = [2, 8, 1], strides = [1, 1, 1]} : vector<2x8x4xf32> to vector<2x8x1xf32>
    %687 = vector.extract_strided_slice %641 {offsets = [0, 0, 3], sizes = [2, 8, 1], strides = [1, 1, 1]} : vector<2x8x4xf32> to vector<2x8x1xf32>
    %688 = tpu.transpose %687, [0, 2, 1] : vector<2x8x1xf32> -> vector<2x1x8xf32>
    %689 = vector.broadcast %686 : vector<2x8x1xf32> to vector<2x8x8xf32>
    %690 = vector.broadcast %688 : vector<2x1x8xf32> to vector<2x8x8xf32>
    %691 = arith.mulf %689, %690 : vector<2x8x8xf32>
    %cst_243 = arith.constant 0.000000e+00 : f32
    %692 = vector.broadcast %cst_243 : f32 to vector<2x8x8xf32>
    %693 = arith.cmpf oge, %691, %692 : vector<2x8x8xf32>
    %cst_244 = arith.constant 0.00999999977 : f32
    %694 = vector.broadcast %cst_244 : f32 to vector<2x8x8xf32>
    %695 = arith.mulf %694, %691 : vector<2x8x8xf32>
    %696 = arith.select %693, %691, %695 : vector<2x8x8xi1>, vector<2x8x8xf32>
    %cst_245 = arith.constant -9.000000e+15 : f32
    %697 = vector.broadcast %cst_245 : f32 to vector<2x8x8xf32>
    %698 = arith.select %513, %696, %697 : vector<2x8x8xi1>, vector<2x8x8xf32>
    %cst_246 = arith.constant dense<0xFF800000> : vector<2x8xf32>
    %699 = vector.multi_reduction <maximumf>, %698, %cst_246 [2] : vector<2x8x8xf32> to vector<2x8xf32>
    %700 = vector.shape_cast %699 : vector<2x8xf32> to vector<2x8x1xf32>
    %701 = vector.broadcast %700 : vector<2x8x1xf32> to vector<2x8x8xf32>
    %702 = arith.subf %698, %701 : vector<2x8x8xf32>
    %703 = math.exp %702 : vector<2x8x8xf32>
    %cst_247 = arith.constant dense<0.000000e+00> : vector<2x8xf32>
    %704 = vector.multi_reduction <add>, %703, %cst_247 [2] : vector<2x8x8xf32> to vector<2x8xf32>
    %705 = vector.shape_cast %704 : vector<2x8xf32> to vector<2x8x1xf32>
    %706 = tpu.reciprocal %705 {approx = true} : vector<2x8x1xf32> -> vector<2x8x1xf32>
    %707 = vector.broadcast %706 : vector<2x8x1xf32> to vector<2x8x8xf32>
    %708 = arith.mulf %703, %707 : vector<2x8x8xf32>
    %cst_248 = arith.constant 0.000000e+00 : f32
    %709 = vector.broadcast %cst_248 : f32 to vector<2x8x8xf32>
    %710 = arith.select %513, %708, %709 : vector<2x8x8xi1>, vector<2x8x8xf32>
    %711 = arith.truncf %710 : vector<2x8x8xf32> to vector<2x8x8xbf16>
    %712 = arith.truncf %685 : vector<2x8x16xf32> to vector<2x8x16xbf16>
    "tpu.trace_start"() <{level = 10 : i32, message = "bqk,bkf->bqf"}> : () -> ()
    %cst_249 = arith.constant dense<0.000000e+00> : vector<2x8x16xf32>
    %713 = tpu.matmul %711, %712, %cst_249 {dimension_numbers = #tpu.dot_dimension_numbers<[2], [1], [1], [2], [0, 0, 0, 1, 1, 2], [0], [0]>} : vector<2x8x8xbf16>, vector<2x8x16xbf16>, vector<2x8x16xf32> -> vector<2x8x16xf32>
    %cst_250 = arith.constant 0.000000e+00 : f32
    "tpu.trace_stop"() : () -> ()
    %714 = vector.broadcast %cst_250 : f32 to vector<2x8x16xf32>
    %715 = arith.cmpf ogt, %713, %714 : vector<2x8x16xf32>
    %cst_251 = arith.constant 0.000000e+00 : f32
    %716 = vector.broadcast %cst_251 : f32 to vector<2x8x16xf32>
    %717 = arith.minimumf %713, %716 : vector<2x8x16xf32>
    %718 = math.exp %717 : vector<2x8x16xf32>
    %cst_252 = arith.constant 1.000000e+00 : f32
    %719 = vector.broadcast %cst_252 : f32 to vector<2x8x16xf32>
    %720 = arith.subf %718, %719 : vector<2x8x16xf32>
    %721 = arith.select %715, %713, %720 : vector<2x8x16xi1>, vector<2x8x16xf32>
    %722 = vector.shape_cast %721 : vector<2x8x16xf32> to vector<16x16xf32>
    %723 = vector.extract_strided_slice %633 {offsets = [16, 0], sizes = [16, 16], strides = [1, 1]} : vector<32x16xf32> to vector<16x16xf32>
    %724 = arith.truncf %722 : vector<16x16xf32> to vector<16x16xbf16>
    %725 = arith.truncf %723 : vector<16x16xf32> to vector<16x16xbf16>
    %cst_253 = arith.constant dense<0.000000e+00> : vector<16x16xf32>
    %726 = tpu.matmul %724, %725, %cst_253 {dimension_numbers = #tpu.dot_dimension_numbers<[1], [0], [0], [1], [0, 0, 1, 1], [], []>} : vector<16x16xbf16>, vector<16x16xbf16>, vector<16x16xf32> -> vector<16x16xf32>
    %727 = arith.addf %684, %726 : vector<16x16xf32>
    %728 = vector.broadcast %634 : vector<1x16xf32> to vector<16x16xf32>
    %729 = arith.addf %727, %728 : vector<16x16xf32>
    %730 = arith.addf %729, %630 : vector<16x16xf32>
    %cst_254 = arith.constant dense<0.000000e+00> : vector<16xf32>
    %731 = vector.multi_reduction <add>, %730, %cst_254 [1] : vector<16x16xf32> to vector<16xf32>
    %732 = vector.shape_cast %731 : vector<16xf32> to vector<16x1xf32>
    %cst_255 = arith.constant 1.600000e+01 : f32
    %733 = vector.broadcast %cst_255 : f32 to vector<16x1xf32>
    %734 = arith.divf %732, %733 : vector<16x1xf32>
    %735 = vector.broadcast %734 : vector<16x1xf32> to vector<16x16xf32>
    %736 = arith.subf %730, %735 : vector<16x16xf32>
    %737 = arith.mulf %736, %736 : vector<16x16xf32>
    %cst_256 = arith.constant dense<0.000000e+00> : vector<16xf32>
    %738 = vector.multi_reduction <add>, %737, %cst_256 [1] : vector<16x16xf32> to vector<16xf32>
    %739 = vector.shape_cast %738 : vector<16xf32> to vector<16x1xf32>
    %cst_257 = arith.constant 1.600000e+01 : f32
    %740 = vector.broadcast %cst_257 : f32 to vector<16x1xf32>
    %741 = arith.divf %739, %740 : vector<16x1xf32>
    %742 = vector.broadcast %734 : vector<16x1xf32> to vector<16x16xf32>
    %743 = arith.subf %730, %742 : vector<16x16xf32>
    %cst_258 = arith.constant 9.99999974E-6 : f32
    %744 = vector.broadcast %cst_258 : f32 to vector<16x1xf32>
    %745 = arith.addf %741, %744 : vector<16x1xf32>
    %746 = math.rsqrt %745 : vector<16x1xf32>
    %747 = vector.broadcast %746 : vector<16x1xf32> to vector<16x16xf32>
    %748 = arith.mulf %743, %747 : vector<16x16xf32>
    %c0_259 = arith.constant 0 : index
    %c0_260 = arith.constant 0 : index
    %749 = vector.load %arg37[%c0_259, %c0_260] : memref<16x32xf32, #tpu.memory_space<vmem>>, vector<16x32xf32>
    %c0_261 = arith.constant 0 : index
    %c0_262 = arith.constant 0 : index
    %750 = vector.load %arg38[%c0_261, %c0_262] : memref<32x4xf32, #tpu.memory_space<vmem>>, vector<32x4xf32>
    %c0_263 = arith.constant 0 : index
    %c0_264 = arith.constant 0 : index
    %751 = vector.load %arg39[%c0_263, %c0_264] : memref<32x16xf32, #tpu.memory_space<vmem>>, vector<32x16xf32>
    %c0_265 = arith.constant 0 : index
    %c0_266 = arith.constant 0 : index
    %752 = vector.load %arg40[%c0_265, %c0_266] : memref<1x16xf32, #tpu.memory_space<vmem>>, vector<1x16xf32>
    %753 = arith.truncf %748 : vector<16x16xf32> to vector<16x16xbf16>
    %754 = arith.truncf %749 : vector<16x32xf32> to vector<16x32xbf16>
    %cst_267 = arith.constant dense<0.000000e+00> : vector<16x32xf32>
    %755 = tpu.matmul %753, %754, %cst_267 {dimension_numbers = #tpu.dot_dimension_numbers<[1], [0], [0], [1], [0, 0, 1, 1], [], []>} : vector<16x16xbf16>, vector<16x32xbf16>, vector<16x32xf32> -> vector<16x32xf32>
    %756 = arith.truncf %755 : vector<16x32xf32> to vector<16x32xbf16>
    %757 = arith.truncf %750 : vector<32x4xf32> to vector<32x4xbf16>
    %cst_268 = arith.constant dense<0.000000e+00> : vector<16x4xf32>
    %758 = tpu.matmul %756, %757, %cst_268 {dimension_numbers = #tpu.dot_dimension_numbers<[1], [0], [0], [1], [0, 0, 1, 1], [], []>} : vector<16x32xbf16>, vector<32x4xbf16>, vector<16x4xf32> -> vector<16x4xf32>
    %759 = vector.shape_cast %758 : vector<16x4xf32> to vector<2x8x4xf32>
    %760 = vector.shape_cast %755 : vector<16x32xf32> to vector<2x8x32xf32>
    %761 = vector.extract_strided_slice %760 {offsets = [0, 0, 0], sizes = [2, 8, 16], strides = [1, 1, 1]} : vector<2x8x32xf32> to vector<2x8x16xf32>
    %762 = vector.extract_strided_slice %759 {offsets = [0, 0, 0], sizes = [2, 8, 1], strides = [1, 1, 1]} : vector<2x8x4xf32> to vector<2x8x1xf32>
    %763 = vector.extract_strided_slice %759 {offsets = [0, 0, 1], sizes = [2, 8, 1], strides = [1, 1, 1]} : vector<2x8x4xf32> to vector<2x8x1xf32>
    %764 = tpu.transpose %763, [0, 2, 1] : vector<2x8x1xf32> -> vector<2x1x8xf32>
    %765 = vector.broadcast %762 : vector<2x8x1xf32> to vector<2x8x8xf32>
    %766 = vector.broadcast %764 : vector<2x1x8xf32> to vector<2x8x8xf32>
    %767 = arith.mulf %765, %766 : vector<2x8x8xf32>
    %cst_269 = arith.constant 0.000000e+00 : f32
    %768 = vector.broadcast %cst_269 : f32 to vector<2x8x8xf32>
    %769 = arith.cmpf oge, %767, %768 : vector<2x8x8xf32>
    %cst_270 = arith.constant 0.00999999977 : f32
    %770 = vector.broadcast %cst_270 : f32 to vector<2x8x8xf32>
    %771 = arith.mulf %770, %767 : vector<2x8x8xf32>
    %772 = arith.select %769, %767, %771 : vector<2x8x8xi1>, vector<2x8x8xf32>
    %cst_271 = arith.constant -9.000000e+15 : f32
    %773 = vector.broadcast %cst_271 : f32 to vector<2x8x8xf32>
    %774 = arith.select %513, %772, %773 : vector<2x8x8xi1>, vector<2x8x8xf32>
    %cst_272 = arith.constant dense<0xFF800000> : vector<2x8xf32>
    %775 = vector.multi_reduction <maximumf>, %774, %cst_272 [2] : vector<2x8x8xf32> to vector<2x8xf32>
    %776 = vector.shape_cast %775 : vector<2x8xf32> to vector<2x8x1xf32>
    %777 = vector.broadcast %776 : vector<2x8x1xf32> to vector<2x8x8xf32>
    %778 = arith.subf %774, %777 : vector<2x8x8xf32>
    %779 = math.exp %778 : vector<2x8x8xf32>
    %cst_273 = arith.constant dense<0.000000e+00> : vector<2x8xf32>
    %780 = vector.multi_reduction <add>, %779, %cst_273 [2] : vector<2x8x8xf32> to vector<2x8xf32>
    %781 = vector.shape_cast %780 : vector<2x8xf32> to vector<2x8x1xf32>
    %782 = tpu.reciprocal %781 {approx = true} : vector<2x8x1xf32> -> vector<2x8x1xf32>
    %783 = vector.broadcast %782 : vector<2x8x1xf32> to vector<2x8x8xf32>
    %784 = arith.mulf %779, %783 : vector<2x8x8xf32>
    %cst_274 = arith.constant 0.000000e+00 : f32
    %785 = vector.broadcast %cst_274 : f32 to vector<2x8x8xf32>
    %786 = arith.select %513, %784, %785 : vector<2x8x8xi1>, vector<2x8x8xf32>
    %787 = arith.truncf %786 : vector<2x8x8xf32> to vector<2x8x8xbf16>
    %788 = arith.truncf %761 : vector<2x8x16xf32> to vector<2x8x16xbf16>
    "tpu.trace_start"() <{level = 10 : i32, message = "bqk,bkf->bqf"}> : () -> ()
    %cst_275 = arith.constant dense<0.000000e+00> : vector<2x8x16xf32>
    %789 = tpu.matmul %787, %788, %cst_275 {dimension_numbers = #tpu.dot_dimension_numbers<[2], [1], [1], [2], [0, 0, 0, 1, 1, 2], [0], [0]>} : vector<2x8x8xbf16>, vector<2x8x16xbf16>, vector<2x8x16xf32> -> vector<2x8x16xf32>
    %cst_276 = arith.constant 0.000000e+00 : f32
    "tpu.trace_stop"() : () -> ()
    %790 = vector.broadcast %cst_276 : f32 to vector<2x8x16xf32>
    %791 = arith.cmpf ogt, %789, %790 : vector<2x8x16xf32>
    %cst_277 = arith.constant 0.000000e+00 : f32
    %792 = vector.broadcast %cst_277 : f32 to vector<2x8x16xf32>
    %793 = arith.minimumf %789, %792 : vector<2x8x16xf32>
    %794 = math.exp %793 : vector<2x8x16xf32>
    %cst_278 = arith.constant 1.000000e+00 : f32
    %795 = vector.broadcast %cst_278 : f32 to vector<2x8x16xf32>
    %796 = arith.subf %794, %795 : vector<2x8x16xf32>
    %797 = arith.select %791, %789, %796 : vector<2x8x16xi1>, vector<2x8x16xf32>
    %798 = vector.shape_cast %797 : vector<2x8x16xf32> to vector<16x16xf32>
    %799 = vector.extract_strided_slice %751 {offsets = [0, 0], sizes = [16, 16], strides = [1, 1]} : vector<32x16xf32> to vector<16x16xf32>
    %800 = arith.truncf %798 : vector<16x16xf32> to vector<16x16xbf16>
    %801 = arith.truncf %799 : vector<16x16xf32> to vector<16x16xbf16>
    %cst_279 = arith.constant dense<0.000000e+00> : vector<16x16xf32>
    %802 = tpu.matmul %800, %801, %cst_279 {dimension_numbers = #tpu.dot_dimension_numbers<[1], [0], [0], [1], [0, 0, 1, 1], [], []>} : vector<16x16xbf16>, vector<16x16xbf16>, vector<16x16xf32> -> vector<16x16xf32>
    %803 = vector.extract_strided_slice %760 {offsets = [0, 0, 16], sizes = [2, 8, 16], strides = [1, 1, 1]} : vector<2x8x32xf32> to vector<2x8x16xf32>
    %804 = vector.extract_strided_slice %759 {offsets = [0, 0, 2], sizes = [2, 8, 1], strides = [1, 1, 1]} : vector<2x8x4xf32> to vector<2x8x1xf32>
    %805 = vector.extract_strided_slice %759 {offsets = [0, 0, 3], sizes = [2, 8, 1], strides = [1, 1, 1]} : vector<2x8x4xf32> to vector<2x8x1xf32>
    %806 = tpu.transpose %805, [0, 2, 1] : vector<2x8x1xf32> -> vector<2x1x8xf32>
    %807 = vector.broadcast %804 : vector<2x8x1xf32> to vector<2x8x8xf32>
    %808 = vector.broadcast %806 : vector<2x1x8xf32> to vector<2x8x8xf32>
    %809 = arith.mulf %807, %808 : vector<2x8x8xf32>
    %cst_280 = arith.constant 0.000000e+00 : f32
    %810 = vector.broadcast %cst_280 : f32 to vector<2x8x8xf32>
    %811 = arith.cmpf oge, %809, %810 : vector<2x8x8xf32>
    %cst_281 = arith.constant 0.00999999977 : f32
    %812 = vector.broadcast %cst_281 : f32 to vector<2x8x8xf32>
    %813 = arith.mulf %812, %809 : vector<2x8x8xf32>
    %814 = arith.select %811, %809, %813 : vector<2x8x8xi1>, vector<2x8x8xf32>
    %cst_282 = arith.constant -9.000000e+15 : f32
    %815 = vector.broadcast %cst_282 : f32 to vector<2x8x8xf32>
    %816 = arith.select %513, %814, %815 : vector<2x8x8xi1>, vector<2x8x8xf32>
    %cst_283 = arith.constant dense<0xFF800000> : vector<2x8xf32>
    %817 = vector.multi_reduction <maximumf>, %816, %cst_283 [2] : vector<2x8x8xf32> to vector<2x8xf32>
    %818 = vector.shape_cast %817 : vector<2x8xf32> to vector<2x8x1xf32>
    %819 = vector.broadcast %818 : vector<2x8x1xf32> to vector<2x8x8xf32>
    %820 = arith.subf %816, %819 : vector<2x8x8xf32>
    %821 = math.exp %820 : vector<2x8x8xf32>
    %cst_284 = arith.constant dense<0.000000e+00> : vector<2x8xf32>
    %822 = vector.multi_reduction <add>, %821, %cst_284 [2] : vector<2x8x8xf32> to vector<2x8xf32>
    %823 = vector.shape_cast %822 : vector<2x8xf32> to vector<2x8x1xf32>
    %824 = tpu.reciprocal %823 {approx = true} : vector<2x8x1xf32> -> vector<2x8x1xf32>
    %825 = vector.broadcast %824 : vector<2x8x1xf32> to vector<2x8x8xf32>
    %826 = arith.mulf %821, %825 : vector<2x8x8xf32>
    %cst_285 = arith.constant 0.000000e+00 : f32
    %827 = vector.broadcast %cst_285 : f32 to vector<2x8x8xf32>
    %828 = arith.select %513, %826, %827 : vector<2x8x8xi1>, vector<2x8x8xf32>
    %829 = arith.truncf %828 : vector<2x8x8xf32> to vector<2x8x8xbf16>
    %830 = arith.truncf %803 : vector<2x8x16xf32> to vector<2x8x16xbf16>
    "tpu.trace_start"() <{level = 10 : i32, message = "bqk,bkf->bqf"}> : () -> ()
    %cst_286 = arith.constant dense<0.000000e+00> : vector<2x8x16xf32>
    %831 = tpu.matmul %829, %830, %cst_286 {dimension_numbers = #tpu.dot_dimension_numbers<[2], [1], [1], [2], [0, 0, 0, 1, 1, 2], [0], [0]>} : vector<2x8x8xbf16>, vector<2x8x16xbf16>, vector<2x8x16xf32> -> vector<2x8x16xf32>
    %cst_287 = arith.constant 0.000000e+00 : f32
    "tpu.trace_stop"() : () -> ()
    %832 = vector.broadcast %cst_287 : f32 to vector<2x8x16xf32>
    %833 = arith.cmpf ogt, %831, %832 : vector<2x8x16xf32>
    %cst_288 = arith.constant 0.000000e+00 : f32
    %834 = vector.broadcast %cst_288 : f32 to vector<2x8x16xf32>
    %835 = arith.minimumf %831, %834 : vector<2x8x16xf32>
    %836 = math.exp %835 : vector<2x8x16xf32>
    %cst_289 = arith.constant 1.000000e+00 : f32
    %837 = vector.broadcast %cst_289 : f32 to vector<2x8x16xf32>
    %838 = arith.subf %836, %837 : vector<2x8x16xf32>
    %839 = arith.select %833, %831, %838 : vector<2x8x16xi1>, vector<2x8x16xf32>
    %840 = vector.shape_cast %839 : vector<2x8x16xf32> to vector<16x16xf32>
    %841 = vector.extract_strided_slice %751 {offsets = [16, 0], sizes = [16, 16], strides = [1, 1]} : vector<32x16xf32> to vector<16x16xf32>
    %842 = arith.truncf %840 : vector<16x16xf32> to vector<16x16xbf16>
    %843 = arith.truncf %841 : vector<16x16xf32> to vector<16x16xbf16>
    %cst_290 = arith.constant dense<0.000000e+00> : vector<16x16xf32>
    %844 = tpu.matmul %842, %843, %cst_290 {dimension_numbers = #tpu.dot_dimension_numbers<[1], [0], [0], [1], [0, 0, 1, 1], [], []>} : vector<16x16xbf16>, vector<16x16xbf16>, vector<16x16xf32> -> vector<16x16xf32>
    %845 = arith.addf %802, %844 : vector<16x16xf32>
    %846 = vector.broadcast %752 : vector<1x16xf32> to vector<16x16xf32>
    %847 = arith.addf %845, %846 : vector<16x16xf32>
    %848 = arith.addf %847, %748 : vector<16x16xf32>
    %cst_291 = arith.constant dense<0.000000e+00> : vector<16xf32>
    %849 = vector.multi_reduction <add>, %848, %cst_291 [1] : vector<16x16xf32> to vector<16xf32>
    %850 = vector.shape_cast %849 : vector<16xf32> to vector<16x1xf32>
    %cst_292 = arith.constant 1.600000e+01 : f32
    %851 = vector.broadcast %cst_292 : f32 to vector<16x1xf32>
    %852 = arith.divf %850, %851 : vector<16x1xf32>
    %853 = vector.broadcast %852 : vector<16x1xf32> to vector<16x16xf32>
    %854 = arith.subf %848, %853 : vector<16x16xf32>
    %855 = arith.mulf %854, %854 : vector<16x16xf32>
    %cst_293 = arith.constant dense<0.000000e+00> : vector<16xf32>
    %856 = vector.multi_reduction <add>, %855, %cst_293 [1] : vector<16x16xf32> to vector<16xf32>
    %857 = vector.shape_cast %856 : vector<16xf32> to vector<16x1xf32>
    %cst_294 = arith.constant 1.600000e+01 : f32
    %858 = vector.broadcast %cst_294 : f32 to vector<16x1xf32>
    %859 = arith.divf %857, %858 : vector<16x1xf32>
    %860 = vector.broadcast %852 : vector<16x1xf32> to vector<16x16xf32>
    %861 = arith.subf %848, %860 : vector<16x16xf32>
    %cst_295 = arith.constant 9.99999974E-6 : f32
    %862 = vector.broadcast %cst_295 : f32 to vector<16x1xf32>
    %863 = arith.addf %859, %862 : vector<16x1xf32>
    %864 = math.rsqrt %863 : vector<16x1xf32>
    %865 = vector.broadcast %864 : vector<16x1xf32> to vector<16x16xf32>
    %866 = arith.mulf %861, %865 : vector<16x16xf32>
    %c0_296 = arith.constant 0 : index
    %c0_297 = arith.constant 0 : index
    %867 = vector.load %arg41[%c0_296, %c0_297] : memref<16x16xf32, #tpu.memory_space<vmem>>, vector<16x16xf32>
    %c0_298 = arith.constant 0 : index
    %c0_299 = arith.constant 0 : index
    %868 = vector.load %arg42[%c0_298, %c0_299] : memref<16x2xf32, #tpu.memory_space<vmem>>, vector<16x2xf32>
    %869 = arith.truncf %866 : vector<16x16xf32> to vector<16x16xbf16>
    %870 = arith.truncf %867 : vector<16x16xf32> to vector<16x16xbf16>
    %cst_300 = arith.constant dense<0.000000e+00> : vector<16x16xf32>
    %871 = tpu.matmul %869, %870, %cst_300 {dimension_numbers = #tpu.dot_dimension_numbers<[1], [0], [0], [1], [0, 0, 1, 1], [], []>} : vector<16x16xbf16>, vector<16x16xbf16>, vector<16x16xf32> -> vector<16x16xf32>
    %872 = arith.truncf %871 : vector<16x16xf32> to vector<16x16xbf16>
    %873 = arith.truncf %868 : vector<16x2xf32> to vector<16x2xbf16>
    %cst_301 = arith.constant dense<0.000000e+00> : vector<16x2xf32>
    %874 = tpu.matmul %872, %873, %cst_301 {dimension_numbers = #tpu.dot_dimension_numbers<[1], [0], [0], [1], [0, 0, 1, 1], [], []>} : vector<16x16xbf16>, vector<16x2xbf16>, vector<16x2xf32> -> vector<16x2xf32>
    %875 = vector.shape_cast %874 : vector<16x2xf32> to vector<2x8x2xf32>
    %876 = vector.extract_strided_slice %875 {offsets = [0, 0, 0], sizes = [2, 8, 1], strides = [1, 1, 1]} : vector<2x8x2xf32> to vector<2x8x1xf32>
    %877 = vector.extract_strided_slice %875 {offsets = [0, 0, 1], sizes = [2, 8, 1], strides = [1, 1, 1]} : vector<2x8x2xf32> to vector<2x8x1xf32>
    %878 = tpu.transpose %877, [0, 2, 1] : vector<2x8x1xf32> -> vector<2x1x8xf32>
    %879 = vector.broadcast %876 : vector<2x8x1xf32> to vector<2x8x8xf32>
    %880 = vector.broadcast %878 : vector<2x1x8xf32> to vector<2x8x8xf32>
    %881 = arith.mulf %879, %880 : vector<2x8x8xf32>
    %cst_302 = arith.constant 0.000000e+00 : f32
    %882 = vector.broadcast %cst_302 : f32 to vector<2x8x8xf32>
    %883 = arith.cmpf oge, %881, %882 : vector<2x8x8xf32>
    %cst_303 = arith.constant 0.00999999977 : f32
    %884 = vector.broadcast %cst_303 : f32 to vector<2x8x8xf32>
    %885 = arith.mulf %884, %881 : vector<2x8x8xf32>
    %886 = arith.select %883, %881, %885 : vector<2x8x8xi1>, vector<2x8x8xf32>
    %cst_304 = arith.constant -9.000000e+15 : f32
    %887 = vector.broadcast %cst_304 : f32 to vector<2x8x8xf32>
    %888 = arith.select %513, %886, %887 : vector<2x8x8xi1>, vector<2x8x8xf32>
    %cst_305 = arith.constant dense<0xFF800000> : vector<2x8xf32>
    %889 = vector.multi_reduction <maximumf>, %888, %cst_305 [2] : vector<2x8x8xf32> to vector<2x8xf32>
    %890 = vector.shape_cast %889 : vector<2x8xf32> to vector<2x8x1xf32>
    %891 = vector.broadcast %890 : vector<2x8x1xf32> to vector<2x8x8xf32>
    %892 = arith.subf %888, %891 : vector<2x8x8xf32>
    %893 = math.exp %892 : vector<2x8x8xf32>
    %cst_306 = arith.constant dense<0.000000e+00> : vector<2x8xf32>
    %894 = vector.multi_reduction <add>, %893, %cst_306 [2] : vector<2x8x8xf32> to vector<2x8xf32>
    %895 = vector.shape_cast %894 : vector<2x8xf32> to vector<2x8x1xf32>
    %896 = tpu.reciprocal %895 {approx = true} : vector<2x8x1xf32> -> vector<2x8x1xf32>
    %897 = vector.broadcast %896 : vector<2x8x1xf32> to vector<2x8x8xf32>
    %898 = arith.mulf %893, %897 : vector<2x8x8xf32>
    %cst_307 = arith.constant 0.000000e+00 : f32
    %899 = vector.broadcast %cst_307 : f32 to vector<2x8x8xf32>
    %900 = arith.select %513, %898, %899 : vector<2x8x8xi1>, vector<2x8x8xf32>
    %901 = vector.shape_cast %871 : vector<16x16xf32> to vector<2x8x16xf32>
    %902 = arith.truncf %900 : vector<2x8x8xf32> to vector<2x8x8xbf16>
    %903 = arith.truncf %901 : vector<2x8x16xf32> to vector<2x8x16xbf16>
    "tpu.trace_start"() <{level = 10 : i32, message = "bqk,bkf->bqf"}> : () -> ()
    %cst_308 = arith.constant dense<0.000000e+00> : vector<2x8x16xf32>
    %904 = tpu.matmul %902, %903, %cst_308 {dimension_numbers = #tpu.dot_dimension_numbers<[2], [1], [1], [2], [0, 0, 0, 1, 1, 2], [0], [0]>} : vector<2x8x8xbf16>, vector<2x8x16xbf16>, vector<2x8x16xf32> -> vector<2x8x16xf32>
    "tpu.trace_stop"() : () -> ()
    %905 = vector.shape_cast %904 : vector<2x8x16xf32> to vector<16x16xf32>
    %cst_309 = arith.constant 0.000000e+00 : f32
    %906 = vector.broadcast %cst_309 : f32 to vector<16x16xf32>
    %907 = arith.cmpf oge, %905, %906 : vector<16x16xf32>
    %cst_310 = arith.constant 0.00999999977 : f32
    %908 = vector.broadcast %cst_310 : f32 to vector<16x16xf32>
    %909 = arith.mulf %908, %905 : vector<16x16xf32>
    %910 = arith.select %907, %905, %909 : vector<16x16xi1>, vector<16x16xf32>
    %911 = vector.shape_cast %508 : vector<16x32xf32> to vector<2x8x32xf32>
    %cst_311 = arith.constant dense<0.000000e+00> : vector<2x32xf32>
    %912 = vector.multi_reduction <add>, %911, %cst_311 [1] : vector<2x8x32xf32> to vector<2x32xf32>
    %cst_312 = arith.constant 1.250000e-01 : f32
    %913 = vector.broadcast %cst_312 : f32 to vector<2x32xf32>
    %914 = arith.mulf %912, %913 : vector<2x32xf32>
    %915 = vector.shape_cast %910 : vector<16x16xf32> to vector<2x8x16xf32>
    %cst_313 = arith.constant dense<0.000000e+00> : vector<2x16xf32>
    %916 = vector.multi_reduction <add>, %915, %cst_313 [1] : vector<2x8x16xf32> to vector<2x16xf32>
    %cst_314 = arith.constant 1.250000e-01 : f32
    %917 = vector.broadcast %cst_314 : f32 to vector<2x16xf32>
    %918 = arith.mulf %916, %917 : vector<2x16xf32>
    %c0_315 = arith.constant 0 : index
    %c0_316 = arith.constant 0 : index
    %919 = vector.load %arg43[%c0_315, %c0_316] : memref<1x32xf32, #tpu.memory_space<vmem>>, vector<1x32xf32>
    %c0_317 = arith.constant 0 : index
    %c0_318 = arith.constant 0 : index
    %920 = vector.load %arg44[%c0_317, %c0_318] : memref<1x16xf32, #tpu.memory_space<vmem>>, vector<1x16xf32>
    %c0_319 = arith.constant 0 : index
    %c0_320 = arith.constant 0 : index
    %921 = vector.load %arg45[%c0_319, %c0_320] : memref<1x1xf32, #tpu.memory_space<vmem>>, vector<1x1xf32>
    %922 = vector.broadcast %919 : vector<1x32xf32> to vector<2x32xf32>
    %923 = arith.mulf %914, %922 : vector<2x32xf32>
    %cst_321 = arith.constant dense<0.000000e+00> : vector<2xf32>
    %924 = vector.multi_reduction <add>, %923, %cst_321 [1] : vector<2x32xf32> to vector<2xf32>
    %925 = vector.shape_cast %924 : vector<2xf32> to vector<2x1xf32>
    %926 = vector.broadcast %920 : vector<1x16xf32> to vector<2x16xf32>
    %927 = arith.mulf %918, %926 : vector<2x16xf32>
    %cst_322 = arith.constant dense<0.000000e+00> : vector<2xf32>
    %928 = vector.multi_reduction <add>, %927, %cst_322 [1] : vector<2x16xf32> to vector<2xf32>
    %929 = vector.shape_cast %928 : vector<2xf32> to vector<2x1xf32>
    %930 = arith.addf %925, %929 : vector<2x1xf32>
    %931 = vector.broadcast %921 : vector<1x1xf32> to vector<2x1xf32>
    %932 = arith.addf %930, %931 : vector<2x1xf32>
    %933 = tpu.transpose %932, [1, 0] : vector<2x1xf32> -> vector<1x2xf32>
    %c0_323 = arith.constant 0 : index
    %c0_324 = arith.constant 0 : index
    %c0_325 = arith.constant 0 : index
    %934 = vector.load %arg46[%c0_323, %c0_324, %c0_325] : memref<1x1x2xf32, #tpu.memory_space<vmem>>, vector<1x1x2xf32>
    %935 = vector.shape_cast %934 : vector<1x1x2xf32> to vector<1x2xf32>
    %936 = vector.shape_cast %933 : vector<1x2xf32> to vector<1x1x2xf32>
    tpu.vector_store %arg46[%c0_323, %c0_324, %c0_325], %936 {strides = array<i32>} : memref<1x1x2xf32, #tpu.memory_space<vmem>>, vector<1x1x2xf32>,
    return
  }
  func.func @transform_0(%arg0: i32) -> (i32, i32, i32) {
    %c0_i32 = arith.constant 0 : i32
    %c0_i32_0 = arith.constant 0 : i32
    %c0_i32_1 = arith.constant 0 : i32
    return %arg0, %c0_i32, %c0_i32_0 : i32, i32, i32
  }
  func.func @transform_1(%arg0: i32) -> (i32, i32, i32) {
    %c0_i32 = arith.constant 0 : i32
    %c0_i32_0 = arith.constant 0 : i32
    %c0_i32_1 = arith.constant 0 : i32
    return %arg0, %c0_i32, %c0_i32_0 : i32, i32, i32
  }
  func.func @transform_2(%arg0: i32) -> (i32, i32) {
    %c0_i32 = arith.constant 0 : i32
    %c0_i32_0 = arith.constant 0 : i32
    %c0_i32_1 = arith.constant 0 : i32
    return %c0_i32, %c0_i32_0 : i32, i32
  }
  func.func @transform_3(%arg0: i32) -> (i32, i32) {
    %c0_i32 = arith.constant 0 : i32
    %c0_i32_0 = arith.constant 0 : i32
    %c0_i32_1 = arith.constant 0 : i32
    return %c0_i32, %c0_i32_0 : i32, i32
  }
  func.func @transform_4(%arg0: i32) -> (i32, i32) {
    %c0_i32 = arith.constant 0 : i32
    %c0_i32_0 = arith.constant 0 : i32
    %c0_i32_1 = arith.constant 0 : i32
    return %c0_i32, %c0_i32_0 : i32, i32
  }
  func.func @transform_5(%arg0: i32) -> (i32, i32) {
    %c0_i32 = arith.constant 0 : i32
    %c0_i32_0 = arith.constant 0 : i32
    %c0_i32_1 = arith.constant 0 : i32
    return %c0_i32, %c0_i32_0 : i32, i32
  }
  func.func @transform_6(%arg0: i32) -> (i32, i32) {
    %c0_i32 = arith.constant 0 : i32
    %c0_i32_0 = arith.constant 0 : i32
    %c0_i32_1 = arith.constant 0 : i32
    return %c0_i32, %c0_i32_0 : i32, i32
  }
  func.func @transform_7(%arg0: i32) -> (i32, i32) {
    %c0_i32 = arith.constant 0 : i32
    %c0_i32_0 = arith.constant 0 : i32
    %c0_i32_1 = arith.constant 0 : i32
    return %c0_i32, %c0_i32_0 : i32, i32
  }
  func.func @transform_8(%arg0: i32) -> (i32, i32) {
    %c0_i32 = arith.constant 0 : i32
    %c0_i32_0 = arith.constant 0 : i32
    %c0_i32_1 = arith.constant 0 : i32
    return %c0_i32, %c0_i32_0 : i32, i32
  }
  func.func @transform_9(%arg0: i32) -> (i32, i32) {
    %c0_i32 = arith.constant 0 : i32
    %c0_i32_0 = arith.constant 0 : i32
    %c0_i32_1 = arith.constant 0 : i32
    return %c0_i32, %c0_i32_0 : i32, i32
  }
  func.func @transform_10(%arg0: i32) -> (i32, i32) {
    %c0_i32 = arith.constant 0 : i32
    %c0_i32_0 = arith.constant 0 : i32
    %c0_i32_1 = arith.constant 0 : i32
    return %c0_i32, %c0_i32_0 : i32, i32
  }
  func.func @transform_11(%arg0: i32) -> (i32, i32) {
    %c0_i32 = arith.constant 0 : i32
    %c0_i32_0 = arith.constant 0 : i32
    %c0_i32_1 = arith.constant 0 : i32
    return %c0_i32, %c0_i32_0 : i32, i32
  }
  func.func @transform_12(%arg0: i32) -> (i32, i32) {
    %c0_i32 = arith.constant 0 : i32
    %c0_i32_0 = arith.constant 0 : i32
    %c0_i32_1 = arith.constant 0 : i32
    return %c0_i32, %c0_i32_0 : i32, i32
  }
  func.func @transform_13(%arg0: i32) -> (i32, i32) {
    %c0_i32 = arith.constant 0 : i32
    %c0_i32_0 = arith.constant 0 : i32
    %c0_i32_1 = arith.constant 0 : i32
    return %c0_i32, %c0_i32_0 : i32, i32
  }
  func.func @transform_14(%arg0: i32) -> (i32, i32) {
    %c0_i32 = arith.constant 0 : i32
    %c0_i32_0 = arith.constant 0 : i32
    %c0_i32_1 = arith.constant 0 : i32
    return %c0_i32, %c0_i32_0 : i32, i32
  }
  func.func @transform_15(%arg0: i32) -> (i32, i32) {
    %c0_i32 = arith.constant 0 : i32
    %c0_i32_0 = arith.constant 0 : i32
    %c0_i32_1 = arith.constant 0 : i32
    return %c0_i32, %c0_i32_0 : i32, i32
  }
  func.func @transform_16(%arg0: i32) -> (i32, i32) {
    %c0_i32 = arith.constant 0 : i32
    %c0_i32_0 = arith.constant 0 : i32
    %c0_i32_1 = arith.constant 0 : i32
    return %c0_i32, %c0_i32_0 : i32, i32
  }
  func.func @transform_17(%arg0: i32) -> (i32, i32) {
    %c0_i32 = arith.constant 0 : i32
    %c0_i32_0 = arith.constant 0 : i32
    %c0_i32_1 = arith.constant 0 : i32
    return %c0_i32, %c0_i32_0 : i32, i32
  }
  func.func @transform_18(%arg0: i32) -> (i32, i32) {
    %c0_i32 = arith.constant 0 : i32
    %c0_i32_0 = arith.constant 0 : i32
    %c0_i32_1 = arith.constant 0 : i32
    return %c0_i32, %c0_i32_0 : i32, i32
  }
  func.func @transform_19(%arg0: i32) -> (i32, i32) {
    %c0_i32 = arith.constant 0 : i32
    %c0_i32_0 = arith.constant 0 : i32
    %c0_i32_1 = arith.constant 0 : i32
    return %c0_i32, %c0_i32_0 : i32, i32
  }
  func.func @transform_20(%arg0: i32) -> (i32, i32) {
    %c0_i32 = arith.constant 0 : i32
    %c0_i32_0 = arith.constant 0 : i32
    %c0_i32_1 = arith.constant 0 : i32
    return %c0_i32, %c0_i32_0 : i32, i32
  }
  func.func @transform_21(%arg0: i32) -> (i32, i32) {
    %c0_i32 = arith.constant 0 : i32
    %c0_i32_0 = arith.constant 0 : i32
    %c0_i32_1 = arith.constant 0 : i32
    return %c0_i32, %c0_i32_0 : i32, i32
  }
  func.func @transform_22(%arg0: i32) -> (i32, i32) {
    %c0_i32 = arith.constant 0 : i32
    %c0_i32_0 = arith.constant 0 : i32
    %c0_i32_1 = arith.constant 0 : i32
    return %c0_i32, %c0_i32_0 : i32, i32
  }
  func.func @transform_23(%arg0: i32) -> (i32, i32) {
    %c0_i32 = arith.constant 0 : i32
    %c0_i32_0 = arith.constant 0 : i32
    %c0_i32_1 = arith.constant 0 : i32
    return %c0_i32, %c0_i32_0 : i32, i32
  }
  func.func @transform_24(%arg0: i32) -> (i32, i32) {
    %c0_i32 = arith.constant 0 : i32
    %c0_i32_0 = arith.constant 0 : i32
    %c0_i32_1 = arith.constant 0 : i32
    return %c0_i32, %c0_i32_0 : i32, i32
  }
  func.func @transform_25(%arg0: i32) -> (i32, i32) {
    %c0_i32 = arith.constant 0 : i32
    %c0_i32_0 = arith.constant 0 : i32
    %c0_i32_1 = arith.constant 0 : i32
    return %c0_i32, %c0_i32_0 : i32, i32
  }
  func.func @transform_26(%arg0: i32) -> (i32, i32) {
    %c0_i32 = arith.constant 0 : i32
    %c0_i32_0 = arith.constant 0 : i32
    %c0_i32_1 = arith.constant 0 : i32
    return %c0_i32, %c0_i32_0 : i32, i32
  }
  func.func @transform_27(%arg0: i32) -> (i32, i32) {
    %c0_i32 = arith.constant 0 : i32
    %c0_i32_0 = arith.constant 0 : i32
    %c0_i32_1 = arith.constant 0 : i32
    return %c0_i32, %c0_i32_0 : i32, i32
  }
  func.func @transform_28(%arg0: i32) -> (i32, i32) {
    %c0_i32 = arith.constant 0 : i32
    %c0_i32_0 = arith.constant 0 : i32
    %c0_i32_1 = arith.constant 0 : i32
    return %c0_i32, %c0_i32_0 : i32, i32
  }
  func.func @transform_29(%arg0: i32) -> (i32, i32) {
    %c0_i32 = arith.constant 0 : i32
    %c0_i32_0 = arith.constant 0 : i32
    %c0_i32_1 = arith.constant 0 : i32
    return %c0_i32, %c0_i32_0 : i32, i32
  }
  func.func @transform_30(%arg0: i32) -> (i32, i32) {
    %c0_i32 = arith.constant 0 : i32
    %c0_i32_0 = arith.constant 0 : i32
    %c0_i32_1 = arith.constant 0 : i32
    return %c0_i32, %c0_i32_0 : i32, i32
  }
  func.func @transform_31(%arg0: i32) -> (i32, i32) {
    %c0_i32 = arith.constant 0 : i32
    %c0_i32_0 = arith.constant 0 : i32
    %c0_i32_1 = arith.constant 0 : i32
    return %c0_i32, %c0_i32_0 : i32, i32
  }
  func.func @transform_32(%arg0: i32) -> (i32, i32) {
    %c0_i32 = arith.constant 0 : i32
    %c0_i32_0 = arith.constant 0 : i32
    %c0_i32_1 = arith.constant 0 : i32
    return %c0_i32, %c0_i32_0 : i32, i32
  }
  func.func @transform_33(%arg0: i32) -> (i32, i32) {
    %c0_i32 = arith.constant 0 : i32
    %c0_i32_0 = arith.constant 0 : i32
    %c0_i32_1 = arith.constant 0 : i32
    return %c0_i32, %c0_i32_0 : i32, i32
  }
  func.func @transform_34(%arg0: i32) -> (i32, i32) {
    %c0_i32 = arith.constant 0 : i32
    %c0_i32_0 = arith.constant 0 : i32
    %c0_i32_1 = arith.constant 0 : i32
    return %c0_i32, %c0_i32_0 : i32, i32
  }
  func.func @transform_35(%arg0: i32) -> (i32, i32) {
    %c0_i32 = arith.constant 0 : i32
    %c0_i32_0 = arith.constant 0 : i32
    %c0_i32_1 = arith.constant 0 : i32
    return %c0_i32, %c0_i32_0 : i32, i32
  }
  func.func @transform_36(%arg0: i32) -> (i32, i32) {
    %c0_i32 = arith.constant 0 : i32
    %c0_i32_0 = arith.constant 0 : i32
    %c0_i32_1 = arith.constant 0 : i32
    return %c0_i32, %c0_i32_0 : i32, i32
  }
  func.func @transform_37(%arg0: i32) -> (i32, i32) {
    %c0_i32 = arith.constant 0 : i32
    %c0_i32_0 = arith.constant 0 : i32
    %c0_i32_1 = arith.constant 0 : i32
    return %c0_i32, %c0_i32_0 : i32, i32
  }
  func.func @transform_38(%arg0: i32) -> (i32, i32) {
    %c0_i32 = arith.constant 0 : i32
    %c0_i32_0 = arith.constant 0 : i32
    %c0_i32_1 = arith.constant 0 : i32
    return %c0_i32, %c0_i32_0 : i32, i32
  }
  func.func @transform_39(%arg0: i32) -> (i32, i32) {
    %c0_i32 = arith.constant 0 : i32
    %c0_i32_0 = arith.constant 0 : i32
    %c0_i32_1 = arith.constant 0 : i32
    return %c0_i32, %c0_i32_0 : i32, i32
  }
  func.func @transform_40(%arg0: i32) -> (i32, i32) {
    %c0_i32 = arith.constant 0 : i32
    %c0_i32_0 = arith.constant 0 : i32
    %c0_i32_1 = arith.constant 0 : i32
    return %c0_i32, %c0_i32_0 : i32, i32
  }
  func.func @transform_41(%arg0: i32) -> (i32, i32) {
    %c0_i32 = arith.constant 0 : i32
    %c0_i32_0 = arith.constant 0 : i32
    %c0_i32_1 = arith.constant 0 : i32
    return %c0_i32, %c0_i32_0 : i32, i32
  }
  func.func @transform_42(%arg0: i32) -> (i32, i32) {
    %c0_i32 = arith.constant 0 : i32
    %c0_i32_0 = arith.constant 0 : i32
    %c0_i32_1 = arith.constant 0 : i32
    return %c0_i32, %c0_i32_0 : i32, i32
  }
  func.func @transform_43(%arg0: i32) -> (i32, i32) {
    %c0_i32 = arith.constant 0 : i32
    %c0_i32_0 = arith.constant 0 : i32
    %c0_i32_1 = arith.constant 0 : i32
    return %c0_i32, %c0_i32_0 : i32, i32
  }
  func.func @transform_44(%arg0: i32) -> (i32, i32) {
    %c0_i32 = arith.constant 0 : i32
    %c0_i32_0 = arith.constant 0 : i32
    %c0_i32_1 = arith.constant 0 : i32
    return %c0_i32, %c0_i32_0 : i32, i32
  }
  func.func @transform_45(%arg0: i32) -> (i32, i32, i32) {
    %c0_i32 = arith.constant 0 : i32
    %c0_i32_0 = arith.constant 0 : i32
    %c0_i32_1 = arith.constant 0 : i32
    return %arg0, %c0_i32, %c0_i32_0 : i32, i32, i32
  }
}

</mosaic_0001>

<bundles_post_ra>
// kernel: bignn_forward.1
= control target key start
LH: loop header
LB: loop body
LE: loop exit
PB: predicated region body
PF: predicated region fallthrough
CT: control target
= control target key end

     0   :  { %s6746_s6 = smov 1   ;;  %s6747_s10 = smov 2   ;;  %s7902_s0 = inlined_call_operand.smem [shape: u32[46], index: -1, kind: input, shape index: {}] }
   0x1   :  { %s6808_s5 = sld [smem:[%s7902_s0]]   ;;  %s6748_s14 = smov 3  }
   0x2   :  { %s6813_s9 = sld [smem:[%s7902_s0 + %s6746_s6]]   ;;  %s6749_s18 = smov 4  }
   0x3   :  { %s6818_s13 = sld [smem:[%s7902_s0 + %s6747_s10]]   ;;  %s6750_s22 = smov 5  }
   0x4   :  { %s6823_s17 = sld [smem:[%s7902_s0 + %s6748_s14]]   ;;  %s6751_s26 = smov 6  }
   0x5   :  { %s6828_s21 = sld [smem:[%s7902_s0 + %s6749_s18]]   ;;  %s6752_s30 = smov 7  }
   0x6   :  { %s6833_s25 = sld [smem:[%s7902_s0 + %s6750_s22]]   ;;  %s6753_s4 = smov 8  }
   0x7   :  { %s6838_s29 = sld [smem:[%s7902_s0 + %s6751_s26]]   ;;  %s6754_s10 = smov 9  }
   0x8   :  { %7925 = sst [smem:[#allocation6_spill]] %s6813_s9  ;;  %s6755_s15 = smov 10  }
   0x9   :  { %s6843_s3 = sld [smem:[%s7902_s0 + %s6752_s30]]   ;;  %s6756_s20 = smov 11  }
   0xa   :  { %s6848_s8 = sld [smem:[%s7902_s0 + %s6753_s4]]   ;;  %s6757_s26 = smov 12  }
   0xb   :  { %s6853_s14 = sld [smem:[%s7902_s0 + %s6754_s10]]   ;;  %s6758_s1 = smov 13  }
   0xc   :  { %s6858_s19 = sld [smem:[%s7902_s0 + %s6755_s15]]   ;;  %s6759_s7 = smov 14  }
   0xd   :  { %s6863_s24 = sld [smem:[%s7902_s0 + %s6756_s20]]   ;;  %s6760_s15 = smov 15  }
   0xe   :  { %s6868_s30 = sld [smem:[%s7902_s0 + %s6757_s26]]   ;;  %s6761_s22 = smov 16  }
   0xf   :  { %s6873_s6 = sld [smem:[%s7902_s0 + %s6758_s1]]   ;;  %s6762_s28 = smov 17  }
  0x10   :  { %s6878_s12 = sld [smem:[%s7902_s0 + %s6759_s7]]   ;;  %s6763_s7 = smov 18  }
  0x11   :  { %s6883_s20 = sld [smem:[%s7902_s0 + %s6760_s15]]   ;;  %s6764_s15 = smov 19  }
  0x12   :  { %s6888_s27 = sld [smem:[%s7902_s0 + %s6761_s22]]   ;;  %s6765_s22 = smov 20  }
  0x13   :  { %s6893_s4 = sld [smem:[%s7902_s0 + %s6762_s28]]   ;;  %s6766_s28 = smov 21  }
  0x14   :  { %s6898_s9 = sld [smem:[%s7902_s0 + %s6763_s7]]   ;;  %s6767_s7 = smov 22  }
  0x15   :  { %s6790_s1 = smov 45  }
  0x17   :  { %7926 = sst [smem:[#allocation7_spill]] %s6883_s20 }
  0x18   :  { %7927 = sst [smem:[#allocation8_spill]] %s6888_s27 }
  0x19   :  { %7928 = sst [smem:[#allocation9_spill]] %s6893_s4 }
  0x1a   :  { %7929 = sst [smem:[#allocation10_spill]] %s6898_s9 }
  0x1b   :  { %s6903_s20 = sld [smem:[%s7902_s0 + %s6764_s15]]   ;;  %s6768_s15 = smov 23  }
  0x1c   :  { %s6908_s27 = sld [smem:[%s7902_s0 + %s6765_s22]]   ;;  %s6769_s22 = smov 24  }
  0x1d   :  { %s6913_s4 = sld [smem:[%s7902_s0 + %s6766_s28]]   ;;  %s6770_s28 = smov 25  }
  0x1e   :  { %s6918_s9 = sld [smem:[%s7902_s0 + %s6767_s7]]   ;;  %s6771_s7 = smov 26  }
  0x21   :  { %7930 = sst [smem:[#allocation11_spill]] %s6903_s20 }
  0x22   :  { %7931 = sst [smem:[#allocation12_spill]] %s6908_s27 }
  0x23   :  { %7932 = sst [smem:[#allocation13_spill]] %s6913_s4 }
  0x24   :  { %7933 = sst [smem:[#allocation14_spill]] %s6918_s9 }
  0x25   :  { %s6923_s20 = sld [smem:[%s7902_s0 + %s6768_s15]]   ;;  %s6772_s15 = smov 27  }
  0x26   :  { %s6928_s27 = sld [smem:[%s7902_s0 + %s6769_s22]]   ;;  %s6773_s22 = smov 28  }
  0x27   :  { %s6933_s4 = sld [smem:[%s7902_s0 + %s6770_s28]]   ;;  %s6774_s28 = smov 29  }
  0x28   :  { %s6938_s9 = sld [smem:[%s7902_s0 + %s6771_s7]]   ;;  %s6775_s7 = smov 30  }
  0x2b   :  { %7934 = sst [smem:[#allocation15_spill]] %s6923_s20 }
  0x2c   :  { %7935 = sst [smem:[#allocation16_spill]] %s6928_s27 }
  0x2d   :  { %7936 = sst [smem:[#allocation17_spill]] %s6933_s4 }
  0x2e   :  { %7937 = sst [smem:[#allocation18_spill]] %s6938_s9 }
  0x2f   :  { %s6943_s20 = sld [smem:[%s7902_s0 + %s6772_s15]]   ;;  %s6776_s15 = smov 31  }
  0x30   :  { %s6948_s27 = sld [smem:[%s7902_s0 + %s6773_s22]]   ;;  %s6777_s22 = smov 32  }
  0x31   :  { %s6953_s4 = sld [smem:[%s7902_s0 + %s6774_s28]]   ;;  %s6778_s28 = smov 33  }
  0x32   :  { %s6958_s9 = sld [smem:[%s7902_s0 + %s6775_s7]]   ;;  %s6779_s7 = smov 34  }
  0x35   :  { %7938 = sst [smem:[#allocation19_spill]] %s6943_s20 }
  0x36   :  { %7939 = sst [smem:[#allocation20_spill]] %s6948_s27 }
  0x37   :  { %7940 = sst [smem:[#allocation21_spill]] %s6953_s4 }
  0x38   :  { %7941 = sst [smem:[#allocation22_spill]] %s6958_s9 }
  0x39   :  { %s6963_s20 = sld [smem:[%s7902_s0 + %s6776_s15]]   ;;  %s6780_s15 = smov 35  }
  0x3a   :  { %s6968_s27 = sld [smem:[%s7902_s0 + %s6777_s22]]   ;;  %s6781_s22 = smov 36  }
  0x3b   :  { %s6973_s4 = sld [smem:[%s7902_s0 + %s6778_s28]]   ;;  %s6782_s28 = smov 37  }
  0x3c   :  { %s6978_s9 = sld [smem:[%s7902_s0 + %s6779_s7]]   ;;  %s6783_s7 = smov 38  }
  0x3f   :  { %7942 = sst [smem:[#allocation23_spill]] %s6963_s20 }
  0x40   :  { %7943 = sst [smem:[#allocation24_spill]] %s6968_s27 }
  0x41   :  { %7944 = sst [smem:[#allocation25_spill]] %s6973_s4 }
  0x42   :  { %7945 = sst [smem:[#allocation26_spill]] %s6978_s9 }
  0x43   :  { %s6983_s20 = sld [smem:[%s7902_s0 + %s6780_s15]]   ;;  %s6784_s15 = smov 39  }
  0x44   :  { %s6988_s27 = sld [smem:[%s7902_s0 + %s6781_s22]]   ;;  %s6785_s22 = smov 40  }
  0x45   :  { %s6993_s4 = sld [smem:[%s7902_s0 + %s6782_s28]]   ;;  %s6786_s28 = smov 41  }
  0x46   :  { %s6998_s9 = sld [smem:[%s7902_s0 + %s6783_s7]]   ;;  %s6787_s7 = smov 42  }
  0x49   :  { %7946 = sst [smem:[#allocation27_spill]] %s6983_s20 }
  0x4a   :  { %7947 = sst [smem:[#allocation28_spill]] %s6988_s27 }
  0x4b   :  { %7948 = sst [smem:[#allocation29_spill]] %s6993_s4 }
  0x4c   :  { %7949 = sst [smem:[#allocation30_spill]] %s6998_s9 }
  0x4d   :  { %s7003_s20 = sld [smem:[%s7902_s0 + %s6784_s15]]   ;;  %s6788_s15 = smov 43  }
  0x4e   :  { %s7008_s27 = sld [smem:[%s7902_s0 + %s6785_s22]]   ;;  %s6789_s22 = smov 44  }
  0x4f   :  { %s7013_s4 = sld [smem:[%s7902_s0 + %s6786_s28]]  }
  0x50   :  { %s7018_s9 = sld [smem:[%s7902_s0 + %s6787_s7]]  }
  0x53   :  { %7950 = sst [smem:[#allocation31_spill]] %s7003_s20 }
  0x54   :  { %7951 = sst [smem:[#allocation32_spill]] %s7008_s27 }
  0x55   :  { %7952 = sst [smem:[#allocation33_spill]] %s7013_s4 }
  0x56   :  { %s7023_s20 = sld [smem:[%s7902_s0 + %s6788_s15]]  }
  0x57   :  { %s5747_s27 = sld [smem:[%s7902_s0 + %s6789_s22]]  }
  0x58   :  { %s7031_s4 = sld [smem:[%s7902_s0 + %s6790_s1]]  }
  0x5d   :  { %v96_v0 = vstv %s5747_s27 }
  0x5e   :  { %97 = vst [vmem:[#allocation2] sm:$0x1] %v96_v0 }
  0x5f   :  { %v200_v1 = vld [vmem:[%s6818_s13] sm:$0xff]  ;;  %v201_v2 = vld [vmem:[%s6818_s13 + $0x8] sm:$0xff]  ;;  %v6791_v4 = vmov 0.0   ;;  %vm6792_vm0 = vmmov 0  }
  0x60   :  { %v198_v3 = vld [vmem:[%s6808_s5] sm:$0xff]  ;;  %6015 = vmatprep.subr.bf16.mxu0 %v6791_v4  ;;  %v237_v5 = vpack.c.bf16 %v201_v2, %v200_v1  ;;  %6017 = vmatprep.mubr.msk.bf16.mxu0 %vm6792_vm0, %v6791_v4  ;;  %v199_v6 = vld [vmem:[%s6808_s5 + $0x8] sm:$0xff] }
  0x61   :  { %98 = vsyncpa [#allocation4], 0  ;;  %v236_v7 = vpack.c.bf16 %v199_v6, %v198_v3  ;;  %6021 = vmatprep.subr.bf16.mxu1 %v6791_v4  ;;  %6025 = vmatprep.mubr.msk.bf16.mxu1 %vm6792_vm0, %v6791_v4  ;;  %vm244_vm1 = vcmask 130048   ;;  %v205_v8 = vld [vmem:[%s6828_s21 + $0x10] sm:$0xff]  ;;  %v206_v9 = vld [vmem:[%s6828_s21 + $0x18] sm:$0xff]  ;;  %vm304_vm4 = vcmask 261120  }
  0x62   :  { %6016 = vmatpush3.bf16.msra.mxu0 %v237_v5  ;;  %v297_v10 = vpack.c.bf16 %v206_v9, %v205_v8  ;;  %v203_v11 = vld [vmem:[%s6828_s21] sm:$0xff]  ;;  %v204_v12 = vld [vmem:[%s6828_s21 + $0x8] sm:$0xff]  ;;  %v210_v26 = vld [vmem:[%s6838_s29 + $0x10] sm:$0xff]  ;;  %vm425_vm9 = vcmask 523264   ;;  %s7953_s0 = sld [smem:[#allocation7_spill]]  ;;  %vm894_vm14 = vcmask 1043456  }
  0x63   :  { %6029 = vmatprep.subr.bf16.mxu0 %v6791_v4  ;;  %v296_v13 = vpack.c.bf16 %v204_v12, %v203_v11  ;;  %v5749_v14 = vld [vmem:[%s6823_s17] ss:$0 sm:$0xff]  ;;  %v211_v27 = vld [vmem:[%s6838_s29 + $0x18] sm:$0xff]  ;;  %v209_v30 = vld [vmem:[%s6838_s29 + $0x8] sm:$0xff]  ;;  %s6795_s5 = smov 125   ;;  %s6796_s13 = smov 127  }
  0x64   :  { %6022 = vmatpush3.bf16.msra.mxu1 %v297_v10  ;;  %v357_v28 = vpack.c.bf16 %v211_v27, %v210_v26  ;;  %v208_v29 = vld [vmem:[%s6838_s29] sm:$0xff]  ;;  %v219_v32 = vld [vmem:[%s6848_s8 + $0x30] sm:$0xff]  ;;  %v220_v33 = vld [vmem:[%s6848_s8 + $0x38] sm:$0xff]  ;;  %s7954_s17 = sld [smem:[#allocation6_spill]]  ;;  %s6797_s21 = smov 96  }
  0x65   :  { %6018 = vmatmul.mubr.msk.bf16.vlgmr.msra.gmra.mxu0 %vm244_vm1, %v236_v7  ;;  %6023 = vmatprep.subr.bf16.mxu1 %v6791_v4  ;;  %v356_v31 = vpack.c.bf16 %v209_v30, %v208_v29  ;;  %v418_v34 = vpack.c.bf16 %v220_v33, %v219_v32  ;;  %v5751_v35 = vld [vmem:[%s6833_s25] ss:$0 sm:$0xff]  ;;  %v218_v48 = vld [vmem:[%s6848_s8 + $0x28] sm:$0xff]  ;;  %v215_v50 = vld [vmem:[%s6848_s8 + $0x10] sm:$0xff]  ;;  %s7955_s25 = sld [smem:[#allocation8_spill]] }
  0x66   :  { %6033 = vmatprep.mubr.msk.bf16.mxu0 %vm6792_vm0, %v6791_v4  ;;  %6030 = vmatpush3.bf16.msra.mxu0 %v357_v28  ;;  %v217_v47 = vld [vmem:[%s6848_s8 + $0x20] sm:$0xff]  ;;  %v216_v51 = vld [vmem:[%s6848_s8 + $0x18] sm:$0xff]  ;;  %v214_v54 = vld [vmem:[%s6848_s8 + $0x8] sm:$0xff]  ;;  %s7956_s29 = sld [smem:[#allocation9_spill]] }
  0x67   :  { %6031 = vmatprep.subr.bf16.mxu0 %v6791_v4  ;;  %v417_v49 = vpack.c.bf16 %v218_v48, %v217_v47  ;;  %v416_v52 = vpack.c.bf16 %v216_v51, %v215_v50  ;;  %v213_v53 = vld [vmem:[%s6848_s8] sm:$0xff]  ;;  %v224_v30 = vld [vmem:[%s6858_s19 + $0x10] sm:$0xff]  ;;  %v232_v51 = vld [vmem:[%s6868_s30 + $0x28] sm:$0xff]  ;;  %s7958_s8 = sld [smem:[#allocation11_spill]] }
  0x68   :  { %6024 = vmatpush3.bf16.msra.mxu1 %v296_v13  ;;  %v415_v55 = vpack.c.bf16 %v214_v54, %v213_v53  ;;  %v5753_v56 = vld [vmem:[%s6843_s3] ss:$0 sm:$0xff]  ;;  %v229_v53 = vld [vmem:[%s6868_s30 + $0x10] sm:$0xff]  ;;  %v230_v54 = vld [vmem:[%s6868_s30 + $0x18] sm:$0xff]  ;;  %s7957_s3 = sld [smem:[#allocation10_spill]] }
  0x69   :  { %6037 = vmatprep.subr.bf16.mxu1 %v6791_v4  ;;  %v5755_v5 = vld [vmem:[%s6853_s14] ss:$0 sm:$0xff]  ;;  %s7959_s14 = sld [smem:[#allocation12_spill]] }
  0x6a   :  { %6032 = vmatpush3.bf16.msra.mxu0 %v356_v31  ;;  %v225_v31 = vld [vmem:[%s6858_s19 + $0x18] sm:$0xff]  ;;  %v222_v32 = vld [vmem:[%s6858_s19] sm:$0xff]  ;;  %s7965_s27 = sld [smem:[#allocation18_spill]] }
  0x6b   :  { %6049 = vmatprep.subr.bf16.mxu0 %v6791_v4  ;;  %v507_v33 = vpack.c.bf16 %v225_v31, %v224_v30  ;;  %v231_v50 = vld [vmem:[%s6868_s30 + $0x20] sm:$0xff]  ;;  %v650_v30 = vld [vmem:[%s6878_s12 + $0x18] sm:$0xff]  ;;  %s7966_s7 = sld [smem:[#allocation19_spill]] }
  0x6c   :  { %v647_v31 = vld [vmem:[%s6878_s12] sm:$0xff]  ;;  %s7967_s10 = sld [smem:[#allocation20_spill]] }
  0x6d   :  { %s7968_s11 = sld [smem:[#allocation21_spill]] }
  0x6e   :  { %s7969_s15 = sld [smem:[#allocation22_spill]] }
  0x6f   :  { %s7970_s16 = sld [smem:[#allocation23_spill]] }
  0x70   :  { %s7971_s18 = sld [smem:[#allocation24_spill]] }
  0x71   :  { %s7972_s22 = sld [smem:[#allocation25_spill]] }
  0x72   :  { %s7973_s23 = sld [smem:[#allocation26_spill]] }
  0x73   :  { %s7974_s26 = sld [smem:[#allocation27_spill]] }
  0x74   :  { %s7975_s1 = sld [smem:[#allocation28_spill]] }
  0x75   :  { %s7976_s28 = sld [smem:[#allocation29_spill]] }
  0x76   :  { %s7977_s2 = sld [smem:[#allocation30_spill]] }
 0x125   :  { %v282_v15 = vpop.f32.mrf.mxu0 }
 0x126   :  { %v283_v16 = vadd.f32 %v5749_v14, %v282_v15 }
 0x127   :  { %v6019_v17 = vpop.f32.mrf.mxu0 }
 0x128   :  { %v291_v19 = vmul.f32 0.01, %v283_v16  ;;  %vm289_vm2 = vcmp.ge.f32.partialorder %v283_v16, 0.0 }
 0x129   :  { %v285_v18 = vpop.f32.mrf.mxu0 }
 0x12a   :  { %v286_v20 = vadd.f32 %v5749_v14, %v285_v18  ;;  %v293_v23 = vsel %vm289_vm2, %v283_v16, %v291_v19 }
 0x12b   :  { %v6020_v21 = vpop.f32.mrf.mxu0 }
 0x12c   :  { %vm290_vm3 = vcmp.ge.f32.partialorder %v286_v20, 0.0  ;;  %v292_v22 = vmul.f32 0.01, %v286_v20 }
 0x12e   :  { %v294_v24 = vsel %vm290_vm3, %v286_v20, %v292_v22 }
 0x12f   :  { %v295_v25 = vpack.c.bf16 %v294_v24, %v293_v23 }
 0x131   :  { %6026 = vmatmul.mubr.msk.bf16.vlgmr.msra.gmra.mxu1 %vm304_vm4, %v295_v25 }
 0x132   :  { %6045 = vmatprep.mubr.msk.bf16.mxu1 %vm6792_vm0, %v6791_v4  ;;  %6038 = vmatpush3.bf16.msra.mxu1 %v418_v34  ;;  %v223_v34 = vld [vmem:[%s6858_s19 + $0x8] sm:$0xff]  ;;  %s7960_s19 = sld [smem:[#allocation13_spill]] }
 0x133   :  { %6039 = vmatprep.subr.bf16.mxu1 %v6791_v4 }
 0x136   :  { %6040 = vmatpush3.bf16.msra.mxu1 %v417_v49 }
 0x137   :  { %6041 = vmatprep.subr.bf16.mxu1 %v6791_v4 }
 0x13a   :  { %6042 = vmatpush3.bf16.msra.mxu1 %v416_v52  ;;  %v567_v52 = vpack.c.bf16 %v232_v51, %v231_v50  ;;  %v656_v50 = vld [vmem:[%s7953_s0 + $0x28] sm:$0xff] }
 0x13b   :  { %6043 = vmatprep.subr.bf16.mxu1 %v6791_v4 }
 0x13e   :  { %6044 = vmatpush3.bf16.msra.mxu1 %v415_v55  ;;  %v566_v55 = vpack.c.bf16 %v230_v54, %v229_v53  ;;  %v654_v53 = vld [vmem:[%s7953_s0 + $0x18] sm:$0xff] }
 0x13f   :  { %6069 = vmatprep.subr.bf16.mxu1 %v6791_v4 }
 0x1f1   :  { %v342_v36 = vpop.f32.mrf.mxu1 }
 0x1f2   :  { %v343_v37 = vadd.f32 %v5751_v35, %v342_v36 }
 0x1f3   :  { %v6027_v38 = vpop.f32.mrf.mxu1 }
 0x1f4   :  { %v351_v40 = vmul.f32 0.01, %v343_v37  ;;  %vm349_vm5 = vcmp.ge.f32.partialorder %v343_v37, 0.0 }
 0x1f5   :  { %v345_v39 = vpop.f32.mrf.mxu1 }
 0x1f6   :  { %v346_v41 = vadd.f32 %v5751_v35, %v345_v39  ;;  %v353_v44 = vsel %vm349_vm5, %v343_v37, %v351_v40  ;;  %v506_v35 = vpack.c.bf16 %v223_v34, %v222_v32  ;;  %vm862_vm5 = vcmask 64512  }
 0x1f7   :  { %v6028_v42 = vpop.f32.mrf.mxu1 }
 0x1f8   :  { %vm350_vm6 = vcmp.ge.f32.partialorder %v346_v41, 0.0  ;;  %v352_v43 = vmul.f32 0.01, %v346_v41 }
 0x1fa   :  { %v354_v45 = vsel %vm350_vm6, %v346_v41, %v352_v43  ;;  %v233_v43 = vld [vmem:[%s6868_s30 + $0x30] sm:$0xff] }
 0x1fb   :  { %v355_v46 = vpack.c.bf16 %v354_v45, %v353_v44 }
 0x1fd   :  { %6034 = vmatmul.mubr.msk.bf16.vlgmr.msra.gmra.mxu0 %vm304_vm4, %v355_v46 }
 0x1fe   :  { %6053 = vmatprep.mubr.msk.bf16.mxu0 %vm6792_vm0, %v6791_v4  ;;  %6050 = vmatpush3.bf16.msra.mxu0 %v507_v33  ;;  %v648_v33 = vld [vmem:[%s6878_s12 + $0x8] sm:$0xff] }
 0x1ff   :  { %6051 = vmatprep.subr.bf16.mxu0 %v6791_v4  ;;  %v669_v34 = vpack.c.bf16 %v648_v33, %v647_v31 }
 0x202   :  { %6052 = vmatpush3.bf16.msra.mxu0 %v506_v35 }
 0x203   :  { %6057 = vmatprep.subr.bf16.mxu0 %v6791_v4 }
 0x2bd   :  { %v401_v57 = vpop.f32.mrf.mxu0 }
 0x2be   :  { %v402_v58 = vadd.f32 %v5753_v56, %v401_v57  ;;  %v228_v57 = vld [vmem:[%s6868_s30 + $0x8] sm:$0xff] }
 0x2bf   :  { %v6035_v59 = vpop.f32.mrf.mxu0 }
 0x2c0   :  { %v410_v61 = vmul.f32 0.01, %v402_v58  ;;  %vm408_vm7 = vcmp.ge.f32.partialorder %v402_v58, 0.0  ;;  %v5757_v59 = vld [vmem:[%s6863_s24] ss:$0 sm:$0xff]  ;;  %s7961_s24 = sld [smem:[#allocation14_spill]] }
 0x2c1   :  { %v404_v60 = vpop.f32.mrf.mxu0 }
 0x2c2   :  { %v405_v62 = vadd.f32 %v5753_v56, %v404_v60  ;;  %v412_v1 = vsel %vm408_vm7, %v402_v58, %v410_v61  ;;  %v227_v56 = vld [vmem:[%s6868_s30] sm:$0xff] }
 0x2c3   :  { %v6036_v63 = vpop.f32.mrf.mxu0  ;;  %v565_v58 = vpack.c.bf16 %v228_v57, %v227_v56  ;;  %v652_v56 = vld [vmem:[%s7953_s0 + $0x8] sm:$0xff] }
 0x2c4   :  { %vm409_vm8 = vcmp.ge.f32.partialorder %v405_v62, 0.0  ;;  %v411_v0 = vmul.f32 0.01, %v405_v62 }
 0x2c6   :  { %v413_v2 = vsel %vm409_vm8, %v405_v62, %v411_v0 }
 0x2c7   :  { %v414_v3 = vpack.c.bf16 %v413_v2, %v412_v1 }
 0x2c9   :  { %6046 = vmatmul.mubr.msk.bf16.vlgmr.msra.gmra.mxu1 %vm425_vm9, %v414_v3 }
 0x2ca   :  { %6073 = vmatprep.mubr.msk.bf16.mxu1 %vm6792_vm0, %v6791_v4 }
 0x389   :  { %v463_v6 = vpop.f32.mrf.mxu1 }
 0x38a   :  { %v464_v7 = vadd.f32 %v5755_v5, %v463_v6 }
 0x38b   :  { %v6047_v8 = vpop.f32.mrf.mxu1 }
 0x38c   :  { %v472_v9 = vmul.f32 0.01, %v464_v7  ;;  %vm470_vm10 = vcmp.ge.f32.partialorder %v464_v7, 0.0  ;;  %v5759_v8 = vld [vmem:[%s6873_s6] ss:$0 sm:$0xff]  ;;  %s7963_s6 = sld [smem:[#allocation16_spill]] }
 0x38d   :  { %v466_v10 = vpop.f32.mrf.mxu1 }
 0x38e   :  { %v467_v11 = vadd.f32 %v5755_v5, %v466_v10  ;;  %v474_v12 = vsel %vm470_vm10, %v464_v7, %v472_v9 }
 0x38f   :  { %v6048_v13 = vpop.f32.mrf.mxu1  ;;  %v476_v14 = vadd.f32 %v474_v12, %v353_v44  ;;  %v234_v44 = vld [vmem:[%s6868_s30 + $0x38] sm:$0xff]  ;;  %s7962_s30 = sld [smem:[#allocation15_spill]] }
 0x390   :  { %vm471_vm11 = vcmp.ge.f32.partialorder %v467_v11, 0.0  ;;  %v473_v15 = vmul.f32 0.01, %v467_v11  ;;  %v568_v48 = vpack.c.bf16 %v234_v44, %v233_v43  ;;  %v658_v43 = vld [vmem:[%s7953_s0 + $0x38] sm:$0xff] }
 0x391   :  { %v478_v16 = vsel %vm304_vm4, %v476_v14, 0.0 }
 0x392   :  { %479 = vadd.xlane.f32.xlu0 %v478_v16  ;;  %v475_v17 = vsel %vm471_vm11, %v467_v11, %v473_v15 }
 0x393   :  { %v477_v18 = vadd.f32 %v475_v17, %v354_v45 }
 0x395   :  { %v481_v19 = vsel %vm304_vm4, %v477_v18, 0.0 }
 0x396   :  { %482 = vadd.xlane.f32.xlu0 %v481_v19 }
 0x41b   :  { %v480_v20 = vpop.xlane.xlu0 %479 }
 0x41c   :  { %v485_v21 = vmul.f32 0.03125, %v480_v20 }
 0x41e   :  { %v487_v22 = vsub.f32 %v476_v14, %v485_v21 }
 0x41f   :  { %v483_v23 = vpop.xlane.xlu0 %482 }
 0x420   :  { %v486_v24 = vmul.f32 0.03125, %v483_v23  ;;  %v489_v25 = vmul.f32 %v487_v22, %v487_v22 }
 0x422   :  { %v488_v26 = vsub.f32 %v477_v18, %v486_v24  ;;  %v491_v27 = vsel %vm304_vm4, %v489_v25, 0.0 }
 0x423   :  { %492 = vadd.xlane.f32.xlu1 %v491_v27 }
 0x424   :  { %v490_v28 = vmul.f32 %v488_v26, %v488_v26 }
 0x426   :  { %v494_v29 = vsel %vm304_vm4, %v490_v28, 0.0 }
 0x427   :  { %495 = vadd.xlane.f32.xlu1 %v494_v29  ;;  %v649_v29 = vld [vmem:[%s6878_s12 + $0x10] sm:$0xff]  ;;  %s7964_s12 = sld [smem:[#allocation17_spill]] }
 0x428   :  { %v670_v32 = vpack.c.bf16 %v650_v30, %v649_v29 }
 0x42a   :  { %6070 = vmatpush3.bf16.msra.mxu1 %v670_v32 }
 0x42b   :  { %6071 = vmatprep.subr.bf16.mxu1 %v6791_v4 }
 0x42e   :  { %6072 = vmatpush3.bf16.msra.mxu1 %v669_v34 }
 0x42f   :  { %6077 = vmatprep.subr.bf16.mxu1 %v6791_v4 }
 0x4ac   :  { %v493_v36 = vpop.xlane.xlu1 %492 }
 0x4ad   :  { %v497_v37 = vmul.f32 0.03125, %v493_v36 }
 0x4af   :  { %v499_v38 = vadd.f32 1e-05, %v497_v37 }
 0x4b0   :  { %v496_v39 = vpop.xlane.xlu1 %495 }
 0x4b1   :  { %v498_v40 = vmul.f32 0.03125, %v496_v39  ;;  %6532 = vrsqrt.f32 %v499_v38 }
 0x4b3   :  { %v500_v41 = vadd.f32 1e-05, %v498_v40 }
 0x4b5   :  { %6534 = vrsqrt.f32 %v500_v41 }
 0x4be   :  { %v6533_v42 = vpop.eup %6532 }
 0x4bf   :  { %v503_v46 = vmul.f32 %v6533_v42, %v487_v22  ;;  %v657_v42 = vld [vmem:[%s7953_s0 + $0x30] sm:$0xff] }
 0x4c2   :  { %v6535_v45 = vpop.eup %6534 }
 0x4c3   :  { %v504_v47 = vmul.f32 %v6535_v45, %v488_v26 }
 0x4c5   :  { %v505_v49 = vpack.c.bf16 %v504_v47, %v503_v46 }
 0x4c7   :  { %6054 = vmatmul.mubr.msk.bf16.vlgmr.msra.gmra.mxu0 %vm304_vm4, %v505_v49  ;;  %v655_v49 = vld [vmem:[%s7953_s0 + $0x20] sm:$0xff] }
 0x4c8   :  { %6058 = vmatpush3.bf16.msra.mxu0 %v568_v48  ;;  %6065 = vmatprep.mubr.msk.bf16.mxu0 %vm6792_vm0, %v6791_v4  ;;  %v718_v51 = vpack.c.bf16 %v656_v50, %v655_v49 }
 0x4c9   :  { %6059 = vmatprep.subr.bf16.mxu0 %v6791_v4 }
 0x4cc   :  { %6060 = vmatpush3.bf16.msra.mxu0 %v567_v52  ;;  %v653_v52 = vld [vmem:[%s7953_s0 + $0x10] sm:$0xff] }
 0x4cd   :  { %6061 = vmatprep.subr.bf16.mxu0 %v6791_v4  ;;  %v717_v54 = vpack.c.bf16 %v654_v53, %v653_v52 }
 0x4d0   :  { %6062 = vmatpush3.bf16.msra.mxu0 %v566_v55  ;;  %v651_v55 = vld [vmem:[%s7953_s0] sm:$0xff]  ;;  %s7978_s0 = sld [smem:[#allocation31_spill]] }
 0x4d1   :  { %6063 = vmatprep.subr.bf16.mxu0 %v6791_v4  ;;  %v716_v57 = vpack.c.bf16 %v652_v56, %v651_v55 }
 0x4d4   :  { %6064 = vmatpush3.bf16.msra.mxu0 %v565_v58 }
 0x4d5   :  { %6089 = vmatprep.subr.bf16.mxu0 %v6791_v4 }
 0x587   :  { %v551_v60 = vpop.f32.mrf.mxu0 }
 0x588   :  { %v552_v61 = vadd.f32 %v5757_v59, %v551_v60 }
 0x589   :  { %v6055_v62 = vpop.f32.mrf.mxu0 }
 0x58a   :  { %v560_v0 = vmul.f32 0.01, %v552_v61  ;;  %vm558_vm12 = vcmp.ge.f32.partialorder %v552_v61, 0.0 }
 0x58b   :  { %v554_v63 = vpop.f32.mrf.mxu0 }
 0x58c   :  { %v555_v1 = vadd.f32 %v5757_v59, %v554_v63  ;;  %v562_v5 = vsel %vm558_vm12, %v552_v61, %v560_v0 }
 0x58d   :  { %v6056_v2 = vpop.f32.mrf.mxu0 }
 0x58e   :  { %vm559_vm13 = vcmp.ge.f32.partialorder %v555_v1, 0.0  ;;  %v561_v3 = vmul.f32 0.01, %v555_v1  ;;  %v6794_v2 = vmov 2  }
 0x58f   :  { %6508 = vset.pattern.permute.xlu1 %v6794_v2 }
 0x590   :  { %v563_v6 = vsel %vm559_vm13, %v555_v1, %v561_v3  ;;  %v6793_v1 = vmov 0  }
 0x591   :  { %v564_v7 = vpack.c.bf16 %v563_v6, %v562_v5  ;;  %6507 = vset.pattern.permute.xlu0 %v6793_v1 }
 0x593   :  { %6066 = vmatmul.mubr.msk.bf16.vlgmr.msra.gmra.mxu0 %vm425_vm9, %v564_v7 }
 0x594   :  { %6091 = vmatprep.mubr.msk.bf16.mxu0 %vm6792_vm0, %v6791_v4 }
 0x653   :  { %v612_v9 = vpop.f32.mrf.mxu0 }
 0x654   :  { %v613_v10 = vadd.f32 %v5759_v8, %v612_v9 }
 0x655   :  { %v6067_v11 = vpop.f32.mrf.mxu0 }
 0x656   :  { %v619_v12 = vadd.f32 %v613_v10, %v503_v46 }
 0x657   :  { %v615_v13 = vpop.f32.mrf.mxu0 }
 0x658   :  { %v616_v14 = vadd.f32 %v5759_v8, %v615_v13  ;;  %v621_v15 = vsel %vm304_vm4, %v619_v12, 0.0  ;;  %v844_v13 = vlaneseq }
 0x659   :  { %622 = vadd.xlane.f32.xlu0 %v621_v15  ;;  %v6068_v16 = vpop.f32.mrf.mxu0 }
 0x65a   :  { %v620_v17 = vadd.f32 %v616_v14, %v504_v47  ;;  %v719_v47 = vpack.c.bf16 %v658_v43, %v657_v42  ;;  %v845_v15 = vshrl.u32 %v844_v13, 7  ;;  %v5851_v16 = vld [vmem:[%s7954_s17] sm:$0xf]  }
 0x65c   :  { %v624_v18 = vsel %vm304_vm4, %v620_v17, 0.0 }
 0x65d   :  { %625 = vadd.xlane.f32.xlu1 %v624_v18 }
 0x6e2   :  { %v623_v19 = vpop.xlane.xlu0 %622 }
 0x6e3   :  { %v627_v20 = vmul.f32 0.03125, %v623_v19  ;;  %v5852_v19 = vunpack.c.0.s8 %v5851_v16 }
 0x6e5   :  { %v629_v21 = vsub.f32 %v619_v12, %v627_v20  ;;  %v7167_v20 = vsub.s32 0, %v845_v15 }
 0x6e6   :  { %v626_v22 = vpop.xlane.xlu1 %625 }
 0x6e7   :  { %v628_v23 = vmul.f32 0.03125, %v626_v22  ;;  %v631_v24 = vmul.f32 %v629_v21, %v629_v21 }
 0x6e9   :  { %v630_v25 = vsub.f32 %v620_v17, %v628_v23  ;;  %v633_v26 = vsel %vm304_vm4, %v631_v24, 0.0  ;;  %v7169_v23 = vcvt.s32.f32 %v5852_v19  ;;  %v5853_v24 = vunpack.c.1.s8 %v5851_v16 }
 0x6ea   :  { %634 = vadd.xlane.f32.xlu0 %v633_v26 }
 0x6eb   :  { %v632_v27 = vmul.f32 %v630_v25, %v630_v25  ;;  %vm196_vm15 = vcmp.gt.f32.partialorder %v7169_v23, 0.0  ;;  %v7174_v30 = vcvt.s32.f32 %v5853_v24  ;;  %v3176_v23 = vld [vmem:[%s7967_s10 + $0x10] sm:$0xff] }
 0x6ed   :  { %v636_v28 = vsel %vm304_vm4, %v632_v27, 0.0  ;;  %vm197_vm6 = vcmp.gt.f32.partialorder %v7174_v30, 0.0  ;;  %v3175_v30 = vld [vmem:[%s7967_s10 + $0x8] sm:$0xff] }
 0x6ee   :  { %637 = vadd.xlane.f32.xlu1 %v636_v28 }
 0x773   :  { %v635_v35 = vpop.xlane.xlu0 %634 }
 0x774   :  { %v639_v36 = vmul.f32 0.03125, %v635_v35 }
 0x776   :  { %v641_v37 = vadd.f32 1e-05, %v639_v36 }
 0x777   :  { %v638_v38 = vpop.xlane.xlu1 %637 }
 0x778   :  { %v640_v39 = vmul.f32 0.03125, %v638_v38  ;;  %6536 = vrsqrt.f32 %v641_v37 }
 0x77a   :  { %v642_v40 = vadd.f32 1e-05, %v640_v39 }
 0x77c   :  { %6538 = vrsqrt.f32 %v642_v40 }
 0x785   :  { %v6537_v41 = vpop.eup %6536 }
 0x786   :  { %v7126_v45 = vmul.f32 %v6537_v41, %v629_v21 }
 0x789   :  { %v6539_v44 = vpop.eup %6538 }
 0x78a   :  { %v7128_v46 = vmul.f32 %v6539_v44, %v630_v25 }
 0x78c   :  { %v668_v48 = vpack.c.bf16 %v7128_v46, %v7126_v45 }
 0x78e   :  { %6074 = vmatmul.mubr.msk.bf16.vlgmr.msra.gmra.mxu1 %vm304_vm4, %v668_v48 }
 0x78f   :  { %6078 = vmatpush3.bf16.msra.mxu1 %v719_v47  ;;  %6085 = vmatprep.mubr.msk.bf16.mxu1 %vm6792_vm0, %v6791_v4 }
 0x790   :  { %6079 = vmatprep.subr.bf16.mxu1 %v6791_v4 }
 0x793   :  { %6080 = vmatpush3.bf16.msra.mxu1 %v718_v51 }
 0x794   :  { %6081 = vmatprep.subr.bf16.mxu1 %v6791_v4 }
 0x797   :  { %6082 = vmatpush3.bf16.msra.mxu1 %v717_v54 }
 0x798   :  { %6083 = vmatprep.subr.bf16.mxu1 %v6791_v4 }
 0x79b   :  { %6084 = vmatpush3.bf16.msra.mxu1 %v716_v57 }
 0x79c   :  { %6101 = vmatprep.subr.bf16.mxu1 %v6791_v4 }
 0x84e   :  { %v708_v58 = vpop.f32.mrf.mxu1 }
 0x84f   :  { %v7145_v59 = vpack.c.bf16 %v708_v58, %v708_v58 }
 0x850   :  { %v6075_v60 = vpop.f32.mrf.mxu1 }
 0x851   :  { %v896_v61 = vsel %vm894_vm14, %v7145_v59, 0 }
 0x852   :  { %v7149_v62 = vpop.f32.mrf.mxu1  ;;  %6090 = vmatpush3.bf16.msra.mxu0 %v896_v61 }
 0x853   :  { %v715_v63 = vpack.c.bf16 %v7149_v62, %v708_v58  ;;  %6095 = vmatprep.subr.bf16.mxu0 %v6791_v4  ;;  %v890_v15 = vpack.c.bf16 %v7149_v62, %v7149_v62 }
 0x854   :  { %v6076_v0 = vpop.f32.mrf.mxu1 }
 0x855   :  { %6086 = vmatmul.mubr.msk.bf16.vlgmr.msra.gmra.mxu1 %vm425_vm9, %v715_v63 }
 0x856   :  { %6103 = vmatprep.mubr.msk.bf16.mxu1 %vm6792_vm0, %v6791_v4 }
 0x915   :  { %v757_v3 = vpop.f32.mrf.mxu1 }
 0x916   :  { %999 = vrot.lane.b32.xlu1 %v757_v3, %s6795_s5  ;;  %766 = vrot.lane.b32.xlu0 %v757_v3, %s6796_s13 }
 0x917   :  { %v6087_v5 = vpop.f32.mrf.mxu1 }
 0x919   :  { %v760_v6 = vpop.f32.mrf.mxu1 }
 0x91a   :  { %837 = vperm.xlu0 %6507, %v757_v3   ;;  %768 = vrot.lane.b32.xlu1 %v760_v6, %s6796_s13 }
 0x91b   :  { %v6088_v7 = vpop.f32.mrf.mxu1 }
 0x91e   :  { %6510 = vset.pattern.permute.xlu0 %v6794_v2  ;;  %1070 = vperm.xlu1 %6508, %v757_v3  }
 0x91f   :  { %1074 = vperm.xlu0 %6510, %v760_v6  }
 0x922   :  { %1001 = vrot.lane.b32.xlu1 %v760_v6, %s6795_s5 }
 0x923   :  { %6509 = vset.pattern.permute.xlu1 %v6793_v1 }
 0x926   :  { %841 = vperm.xlu1 %6509, %v760_v6  }
 0x988   :  { %v1000_v8 = vpop.permute.xlu1 %999  ;;  %v767_v9 = vpop.permute.xlu0 %766 }
 0x989   :  { %1005 = vxpose.xlu0.b32.start.end [1/1] (short) (narrow) %v1000_v8, 8  ;;  %772 = vxpose.xlu1.b32.start.end [1/1] (short) (narrow) %v767_v9, 8 }
 0x98c   :  { %v769_v10 = vpop.permute.xlu1 %768 }
 0x98d   :  { %804 = vxpose.xlu0.b32.start.end [1/1] (short) (narrow) %v769_v10, 8 }
 0x995   :  { %v838_v14 = vpop.permute.xlu0 %837 }
 0x999   :  { %v1071_v11 = vpop.permute.xlu1 %1070 }
 0x99a   :  { %v1075_v17 = vpop.permute.xlu0 %1074 }
 0x99d   :  { %v1002_v12 = vpop.permute.xlu1 %1001 }
 0x99e   :  { %1037 = vxpose.xlu0.b32.start.end [1/1] (short) (narrow) %v1002_v12, 8 }
 0x9a1   :  { %v842_v18 = vpop.permute.xlu1 %841 }
 0x9a7   :  { %6512 = vset.pattern.permute.xlu1 %v6794_v2 }
 0x9c7   :  { %6511 = vset.pattern.permute.xlu0 %v6793_v1 }
 0xa05   :  { %v1021_v21 = vpop.trf.xlu0  ;;  %v788_v22 = vpop.trf.xlu1 }
 0xa06   :  { %v1080_v25 = vrot.slane %v1021_v21, %v7167_v20  ;;  %v847_v26 = vrot.slane %v788_v22, %v7167_v20 }
 0xa08   :  { %v1085_v27 = vmul.f32 %v1080_v25, %v1071_v11  ;;  %v852_v28 = vmul.f32 %v847_v26, %v838_v14 }
 0xa09   :  { %v820_v29 = vpop.trf.xlu0 }
 0xa0a   :  { %v851_v31 = vrot.slane %v820_v29, %v7167_v20  ;;  %vm854_vm2 = vcmp.ge.f32.partialorder %v852_v28, 0.0  ;;  %v856_v32 = vmul.f32 0.01, %v852_v28  ;;  %vm1087_vm3 = vcmp.ge.f32.partialorder %v1085_v27, 0.0 }
 0xa0b   :  { %v1089_v33 = vmul.f32 0.01, %v1085_v27 }
 0xa0c   :  { %v853_v34 = vmul.f32 %v851_v31, %v842_v18  ;;  %v858_v35 = vsel %vm854_vm2, %v852_v28, %v856_v32  ;;  %v942_v28 = vsel %vm894_vm14, %v890_v15, 0 }
 0xa0d   :  { %v860_v36 = vsel %vm196_vm15, %v858_v35, -9e+15  ;;  %v1091_v37 = vsel %vm1087_vm3, %v1085_v27, %v1089_v33 }
 0xa0e   :  { %v863_v38 = vsel %vm862_vm5, %v860_v36, -inf  ;;  %vm855_vm7 = vcmp.ge.f32.partialorder %v853_v34, 0.0  ;;  %v857_v39 = vmul.f32 0.01, %v853_v34  ;;  %v1093_v40 = vsel %vm196_vm15, %v1091_v37, -9e+15 }
 0xa0f   :  { %864 = vmax.xlane.f32.xlu1 %v863_v38  ;;  %v1095_v44 = vsel %vm862_vm5, %v1093_v40, -inf }
 0xa10   :  { %v859_v41 = vsel %vm855_vm7, %v853_v34, %v857_v39 }
 0xa11   :  { %v861_v42 = vsel %vm197_vm6, %v859_v41, -9e+15 }
 0xa12   :  { %v866_v43 = vsel %vm862_vm5, %v861_v42, -inf }
 0xa13   :  { %867 = vmax.xlane.f32.xlu0 %v866_v43  ;;  %1096 = vmax.xlane.f32.xlu1 %v1095_v44  ;;  %v662_v43 = vld [vmem:[%s7955_s25 + $0x18] sm:$0xff] }
 0xa1a   :  { %v1053_v47 = vpop.trf.xlu0 }
 0xa1b   :  { %v1084_v48 = vrot.slane %v1053_v47, %v7167_v20  ;;  %v659_v47 = vld [vmem:[%s7955_s25] sm:$0xff] }
 0xa1d   :  { %v1086_v49 = vmul.f32 %v1084_v48, %v1075_v17  ;;  %v660_v48 = vld [vmem:[%s7955_s25 + $0x8] sm:$0xff] }
 0xa1f   :  { %vm1088_vm8 = vcmp.ge.f32.partialorder %v1086_v49, 0.0  ;;  %v1090_v50 = vmul.f32 0.01, %v1086_v49 }
 0xa21   :  { %v1092_v51 = vsel %vm1088_vm8, %v1086_v49, %v1090_v50  ;;  %v997_v49 = vpack.c.bf16 %v660_v48, %v659_v47  ;;  %v665_v50 = vld [vmem:[%s7955_s25 + $0x30] sm:$0xff] }
 0xa22   :  { %v1094_v52 = vsel %vm197_vm6, %v1092_v51, -9e+15  ;;  %v666_v51 = vld [vmem:[%s7955_s25 + $0x38] sm:$0xff] }
 0xa23   :  { %v1098_v53 = vsel %vm862_vm5, %v1094_v52, -inf }
 0xa24   :  { %1099 = vmax.xlane.f32.xlu1 %v1098_v53  ;;  %v663_v53 = vld [vmem:[%s7955_s25 + $0x20] sm:$0xff] }
 0xa98   :  { %v865_v54 = vpop.xlane.xlu1 %864 }
 0xa99   :  { %v869_v55 = vsub.f32 %v860_v36, %v865_v54  ;;  %v664_v54 = vld [vmem:[%s7955_s25 + $0x28] sm:$0xff] }
 0xa9b   :  { %v871_v56 = vmul.f32 1.442695, %v869_v55  ;;  %v1232_v55 = vpack.c.bf16 %v664_v54, %v663_v53 }
 0xa9c   :  { %v868_v57 = vpop.xlane.xlu0 %867  ;;  %v1097_v58 = vpop.xlane.xlu1 %1096 }
 0xa9d   :  { %6540 = vpow2.f32 %v871_v56  ;;  %v870_v60 = vsub.f32 %v861_v42, %v868_v57  ;;  %v1101_v61 = vsub.f32 %v1093_v40, %v1097_v58  ;;  %v661_v42 = vld [vmem:[%s7955_s25 + $0x10] sm:$0xff] }
 0xa9e   :  { %v998_v44 = vpack.c.bf16 %v662_v43, %v661_v42 }
 0xa9f   :  { %v873_v63 = vmul.f32 1.442695, %v870_v60  ;;  %v1103_v0 = vmul.f32 1.442695, %v1101_v61 }
 0xaa1   :  { %6542 = vpow2.f32 %v873_v63 }
 0xaa2   :  { %6544 = vpow2.f32 %v1103_v0 }
 0xaaa   :  { %v6541_v3 = vpop.eup %6540 }
 0xaab   :  { %v875_v5 = vsel %vm862_vm5, %v6541_v3, 0.0 }
 0xaac   :  { %876 = vadd.xlane.f32.xlu0 %v875_v5 }
 0xaad   :  { %v1100_v6 = vpop.xlane.xlu1 %1099 }
 0xaae   :  { %v6543_v7 = vpop.eup %6542  ;;  %v1102_v8 = vsub.f32 %v1094_v52, %v1100_v6  ;;  %v1233_v52 = vpack.c.bf16 %v666_v51, %v665_v50 }
 0xaaf   :  { %v6545_v9 = vpop.eup %6544  ;;  %v878_v10 = vsel %vm862_vm5, %v6543_v7, 0.0 }
 0xab0   :  { %v1105_v11 = vmul.f32 1.442695, %v1102_v8  ;;  %879 = vadd.xlane.f32.xlu1 %v878_v10  ;;  %v1107_v12 = vsel %vm862_vm5, %v6545_v9, 0.0 }
 0xab1   :  { %1108 = vadd.xlane.f32.xlu0 %v1107_v12 }
 0xab2   :  { %6546 = vpow2.f32 %v1105_v11 }
 0xabf   :  { %v6547_v13 = vpop.eup %6546 }
 0xac0   :  { %v1110_v14 = vsel %vm862_vm5, %v6547_v13, 0.0 }
 0xac1   :  { %1111 = vadd.xlane.f32.xlu1 %v1110_v14 }
 0xac7   :  { %1122 = vrot.lane.b32.xlu0 %v7145_v59, %s6797_s21 }
 0xad2   :  { %1171 = vrot.lane.b32.xlu1 %v890_v15, %s6797_s21 }
 0xb35   :  { %v877_v16 = vpop.xlane.xlu0 %876 }
 0xb36   :  { %6548 = vrcp.f32 %v877_v16 }
 0xb39   :  { %v880_v17 = vpop.xlane.xlu1 %879 }
 0xb3a   :  { %v1109_v18 = vpop.xlane.xlu0 %1108  ;;  %6550 = vrcp.f32 %v880_v17 }
 0xb3b   :  { %6552 = vrcp.f32 %v1109_v18 }
 0xb3e   :  { %v1123_v19 = vpop.permute.xlu0 %1122 }
 0xb3f   :  { %v1128_v21 = vsel %vm894_vm14, %v1123_v19, 0 }
 0xb40   :  { %6102 = vmatpush3.bf16.msra.mxu1 %v1128_v21 }
 0xb41   :  { %6113 = vmatprep.subr.bf16.mxu1 %v6791_v4 }
 0xb43   :  { %v6549_v22 = vpop.eup %6548 }
 0xb44   :  { %v883_v24 = vmul.f32 %v6549_v22, %v6541_v3 }
 0xb46   :  { %v885_v59 = vsel %vm196_vm15, %v883_v24, 0.0 }
 0xb47   :  { %v6551_v62 = vpop.eup %6550  ;;  %v887_v25 = vpack.c.bf16 %v885_v59, %v885_v59 }
 0xb48   :  { %v6553_v26 = vpop.eup %6552  ;;  %v884_v27 = vmul.f32 %v6551_v62, %v6543_v7 }
 0xb49   :  { %6092 = vmatmul.mubr.msk.bf16.vlgmr.msra.gmra.mxu0 %vm862_vm5, %v887_v25  ;;  %v1115_v29 = vmul.f32 %v6553_v26, %v6545_v9 }
 0xb4a   :  { %6096 = vmatpush3.bf16.msra.mxu0 %v942_v28  ;;  %v1112_v31 = vpop.xlane.xlu1 %1111  ;;  %6097 = vmatprep.mubr.msk.bf16.mxu0 %vm6792_vm0, %v6791_v4  ;;  %v886_v34 = vsel %vm197_vm6, %v884_v27, 0.0 }
 0xb4b   :  { %6554 = vrcp.f32 %v1112_v31  ;;  %v1117_v32 = vsel %vm196_vm15, %v1115_v29, 0.0  ;;  %6107 = vmatprep.subr.bf16.mxu0 %v6791_v4  ;;  %v888_v37 = vpack.c.bf16 %v886_v34, %v886_v34 }
 0xb4c   :  { %v1119_v33 = vpack.c.bf16 %v1117_v32, %v1117_v32 }
 0xb4e   :  { %6104 = vmatmul.mubr.msk.bf16.vlgmr.msra.gmra.mxu1 %vm862_vm5, %v1119_v33  ;;  %v1172_v35 = vpop.permute.xlu1 %1171 }
 0xb4f   :  { %v1177_v36 = vsel %vm894_vm14, %v1172_v35, 0  ;;  %6117 = vmatprep.mubr.msk.bf16.mxu1 %vm6792_vm0, %v6791_v4  ;;  %6114 = vmatpush3.bf16.msra.mxu1 %v1233_v52 }
 0xb50   :  { %6115 = vmatprep.subr.bf16.mxu1 %v6791_v4 }
 0xb51   :  { %6098 = vmatmul.mubr.msk.bf16.vlgmr.msra.gmra.mxu0 %vm862_vm5, %v888_v37 }
 0xb52   :  { %6108 = vmatpush3.bf16.msra.mxu0 %v1177_v36  ;;  %6109 = vmatprep.mubr.msk.bf16.mxu0 %vm6792_vm0, %v6791_v4 }
 0xb53   :  { %6121 = vmatprep.subr.bf16.mxu0 %v6791_v4  ;;  %6116 = vmatpush3.bf16.msra.mxu1 %v1232_v55 }
 0xb54   :  { %6129 = vmatprep.subr.bf16.mxu1 %v6791_v4 }
 0xb58   :  { %v6555_v38 = vpop.eup %6554 }
 0xb59   :  { %v1116_v39 = vmul.f32 %v6555_v38, %v6547_v13 }
 0xb5b   :  { %v1118_v40 = vsel %vm197_vm6, %v1116_v39, 0.0 }
 0xb5c   :  { %v1120_v41 = vpack.c.bf16 %v1118_v40, %v1118_v40  ;;  %v5773_v40 = vld [vmem:[%s7956_s29] ss:$0 sm:$0xff] }
 0xb5e   :  { %6110 = vmatmul.mubr.msk.bf16.vlgmr.msra.gmra.mxu0 %vm862_vm5, %v1120_v41 }
 0xb5f   :  { %6125 = vmatprep.mubr.msk.bf16.mxu0 %vm6792_vm0, %v6791_v4  ;;  %6122 = vmatpush3.bf16.msra.mxu0 %v998_v44 }
 0xb60   :  { %6123 = vmatprep.subr.bf16.mxu0 %v6791_v4 }
 0xb63   :  { %6124 = vmatpush3.bf16.msra.mxu0 %v997_v49 }
 0xb64   :  { %6137 = vmatprep.subr.bf16.mxu0 %v6791_v4 }
 0xc09   :  { %v932_v56 = vpop.f32.mrf.mxu0 }
 0xc0a   :  { %v986_v57 = vmin.f32 %v932_v56, 0.0  ;;  %vm984_vm10 = vcmp.gt.f32.partialorder %v932_v56, 0.0 }
 0xc0b   :  { %v6093_v58 = vpop.f32.mrf.mxu0 }
 0xc0c   :  { %v988_v61 = vmul.f32 1.442695, %v986_v57 }
 0xc0d   :  { %v935_v60 = vpop.f32.mrf.mxu0 }
 0xc0e   :  { %v1164_v63 = vpop.f32.mrf.mxu1  ;;  %6556 = vpow2.f32 %v988_v61 }
 0xc0f   :  { %v6094_v0 = vpop.f32.mrf.mxu0  ;;  %v1221_v12 = vmin.f32 %v1164_v63, 0.0  ;;  %vm1219_vm12 = vcmp.gt.f32.partialorder %v1164_v63, 0.0 }
 0xc10   :  { %v6105_v3 = vpop.f32.mrf.mxu1 }
 0xc11   :  { %v978_v5 = vpop.f32.mrf.mxu0  ;;  %v1223_v14 = vmul.f32 1.442695, %v1221_v12  ;;  %v1360_v3 = vld [vmem:[%s7957_s3 + $0x10] sm:$0xff]  ;;  %v1366_v12 = vld [vmem:[%s7958_s8 + $0x20] sm:$0xff] }
 0xc12   :  { %v987_v6 = vmin.f32 %v978_v5, 0.0  ;;  %v1167_v7 = vpop.f32.mrf.mxu1  ;;  %vm985_vm11 = vcmp.gt.f32.partialorder %v978_v5, 0.0 }
 0xc13   :  { %v6099_v8 = vpop.f32.mrf.mxu0 }
 0xc14   :  { %v990_v9 = vmul.f32 1.442695, %v987_v6  ;;  %v6106_v10 = vpop.f32.mrf.mxu1  ;;  %v1358_v6 = vld [vmem:[%s7957_s3] sm:$0xff]  ;;  %v1359_v8 = vld [vmem:[%s7957_s3 + $0x8] sm:$0xff] }
 0xc15   :  { %v981_v11 = vpop.f32.mrf.mxu0  ;;  %v1368_v10 = vld [vmem:[%s7958_s8 + $0x30] sm:$0xff] }
 0xc16   :  { %6558 = vpow2.f32 %v990_v9  ;;  %v1380_v9 = vpack.c.bf16 %v1359_v8, %v1358_v6  ;;  %v1369_v11 = vld [vmem:[%s7958_s8 + $0x38] sm:$0xff] }
 0xc17   :  { %v6100_v13 = vpop.f32.mrf.mxu0  ;;  %6560 = vpow2.f32 %v1223_v14  ;;  %v1367_v14 = vld [vmem:[%s7958_s8 + $0x28] sm:$0xff] }
 0xc18   :  { %v1430_v13 = vpack.c.bf16 %v1369_v11, %v1368_v10 }
 0xc1b   :  { %v6557_v16 = vpop.eup %6556 }
 0xc1c   :  { %v5765_v21 = vadd.f32 -1.0, %v6557_v16 }
 0xc1e   :  { %v1213_v15 = vpop.f32.mrf.mxu0  ;;  %v994_v25 = vsel %vm984_vm10, %v932_v56, %v5765_v21 }
 0xc1f   :  { %v1222_v17 = vmin.f32 %v1213_v15, 0.0  ;;  %vm1220_vm13 = vcmp.gt.f32.partialorder %v1213_v15, 0.0 }
 0xc20   :  { %v6111_v18 = vpop.f32.mrf.mxu0 }
 0xc21   :  { %v1225_v19 = vmul.f32 1.442695, %v1222_v17 }
 0xc22   :  { %v1216_v22 = vpop.f32.mrf.mxu0 }
 0xc23   :  { %v6559_v24 = vpop.eup %6558  ;;  %6562 = vpow2.f32 %v1225_v19 }
 0xc24   :  { %v5766_v59 = vadd.f32 -1.0, %v6559_v24  ;;  %v6112_v62 = vpop.f32.mrf.mxu0  ;;  %v6561_v28 = vpop.eup %6560 }
 0xc25   :  { %v5769_v29 = vadd.f32 -1.0, %v6561_v28  ;;  %v1365_v28 = vld [vmem:[%s7958_s8 + $0x18] sm:$0xff] }
 0xc26   :  { %v995_v26 = vsel %vm985_vm11, %v978_v5, %v5766_v59  ;;  %v1361_v5 = vld [vmem:[%s7957_s3 + $0x18] sm:$0xff] }
 0xc27   :  { %v996_v27 = vpack.c.bf16 %v995_v26, %v994_v25  ;;  %v1229_v33 = vsel %vm1219_vm12, %v1164_v63, %v5769_v29  ;;  %v1381_v7 = vpack.c.bf16 %v1361_v5, %v1360_v3 }
 0xc29   :  { %6126 = vmatmul.mubr.msk.bf16.vlgmr.msra.gmra.mxu0 %vm304_vm4, %v996_v27  ;;  %v1364_v27 = vld [vmem:[%s7958_s8 + $0x10] sm:$0xff] }
 0xc2a   :  { %6145 = vmatprep.mubr.msk.bf16.mxu0 %vm6792_vm0, %v6791_v4  ;;  %6138 = vmatpush3.bf16.msra.mxu0 %v1430_v13  ;;  %v1428_v29 = vpack.c.bf16 %v1365_v28, %v1364_v27 }
 0xc2b   :  { %6139 = vmatprep.subr.bf16.mxu0 %v6791_v4 }
 0xc30   :  { %v6563_v31 = vpop.eup %6562 }
 0xc31   :  { %v5770_v32 = vadd.f32 -1.0, %v6563_v31  ;;  %v1362_v31 = vld [vmem:[%s7958_s8] sm:$0xff] }
 0xc33   :  { %v1230_v34 = vsel %vm1220_vm13, %v1213_v15, %v5770_v32  ;;  %v1429_v15 = vpack.c.bf16 %v1367_v14, %v1366_v12  ;;  %v1363_v32 = vld [vmem:[%s7958_s8 + $0x8] sm:$0xff] }
 0xc34   :  { %v1231_v35 = vpack.c.bf16 %v1230_v34, %v1229_v33  ;;  %v1427_v33 = vpack.c.bf16 %v1363_v32, %v1362_v31 }
 0xc35   :  { %6140 = vmatpush3.bf16.msra.mxu0 %v1429_v15 }
 0xc36   :  { %6118 = vmatmul.mubr.msk.bf16.vlgmr.msra.gmra.mxu1 %vm304_vm4, %v1231_v35  ;;  %6141 = vmatprep.subr.bf16.mxu0 %v6791_v4 }
 0xc37   :  { %6133 = vmatprep.mubr.msk.bf16.mxu1 %vm6792_vm0, %v6791_v4  ;;  %6130 = vmatpush3.bf16.msra.mxu1 %v1381_v7 }
 0xc38   :  { %6131 = vmatprep.subr.bf16.mxu1 %v6791_v4 }
 0xc39   :  { %6142 = vmatpush3.bf16.msra.mxu0 %v1428_v29 }
 0xc3a   :  { %6143 = vmatprep.subr.bf16.mxu0 %v6791_v4 }
 0xc3b   :  { %6132 = vmatpush3.bf16.msra.mxu1 %v1380_v9 }
 0xc3c   :  { %6149 = vmatprep.subr.bf16.mxu1 %v6791_v4 }
 0xc3d   :  { %6144 = vmatpush3.bf16.msra.mxu0 %v1427_v33 }
 0xc3e   :  { %6161 = vmatprep.subr.bf16.mxu0 %v6791_v4 }
 0xce9   :  { %v1315_v36 = vpop.f32.mrf.mxu0 }
 0xceb   :  { %v6127_v37 = vpop.f32.mrf.mxu0 }
 0xced   :  { %v1318_v38 = vpop.f32.mrf.mxu0 }
 0xcef   :  { %v6128_v39 = vpop.f32.mrf.mxu0 }
 0xcf6   :  { %v1271_v41 = vpop.f32.mrf.mxu1 }
 0xcf7   :  { %v1316_v42 = vadd.f32 %v1315_v36, %v1271_v41 }
 0xcf8   :  { %v6119_v43 = vpop.f32.mrf.mxu1 }
 0xcf9   :  { %v1328_v44 = vadd.f32 %v5773_v40, %v1316_v42 }
 0xcfa   :  { %v1274_v47 = vpop.f32.mrf.mxu1 }
 0xcfb   :  { %v1319_v48 = vadd.f32 %v1318_v38, %v1274_v47  ;;  %v1330_v49 = vadd.f32 %v1328_v44, %v7126_v45 }
 0xcfc   :  { %v6120_v50 = vpop.f32.mrf.mxu1 }
 0xcfd   :  { %v1329_v51 = vadd.f32 %v5773_v40, %v1319_v48  ;;  %v1332_v52 = vsel %vm304_vm4, %v1330_v49, 0.0 }
 0xcfe   :  { %1333 = vadd.xlane.f32.xlu1 %v1332_v52 }
 0xcff   :  { %v1331_v53 = vadd.f32 %v1329_v51, %v7128_v46 }
 0xd01   :  { %v1335_v54 = vsel %vm304_vm4, %v1331_v53, 0.0 }
 0xd02   :  { %1336 = vadd.xlane.f32.xlu0 %v1335_v54 }
 0xd87   :  { %v1334_v55 = vpop.xlane.xlu1 %1333 }
 0xd88   :  { %v1338_v56 = vmul.f32 0.03125, %v1334_v55 }
 0xd8a   :  { %v1340_v57 = vsub.f32 %v1330_v49, %v1338_v56 }
 0xd8b   :  { %v1337_v58 = vpop.xlane.xlu0 %1336 }
 0xd8c   :  { %v1339_v60 = vmul.f32 0.03125, %v1337_v58  ;;  %v1342_v45 = vmul.f32 %v1340_v57, %v1340_v57 }
 0xd8e   :  { %v1341_v61 = vsub.f32 %v1331_v53, %v1339_v60  ;;  %v1344_v63 = vsel %vm304_vm4, %v1342_v45, 0.0 }
 0xd8f   :  { %1345 = vadd.xlane.f32.xlu0 %v1344_v63 }
 0xd90   :  { %v1343_v46 = vmul.f32 %v1341_v61, %v1341_v61 }
 0xd92   :  { %v1347_v0 = vsel %vm304_vm4, %v1343_v46, 0.0 }
 0xd93   :  { %1348 = vadd.xlane.f32.xlu1 %v1347_v0 }
 0xe18   :  { %v1346_v16 = vpop.xlane.xlu0 %1345 }
 0xe19   :  { %v1350_v17 = vmul.f32 0.03125, %v1346_v16 }
 0xe1b   :  { %v1352_v18 = vadd.f32 1e-05, %v1350_v17 }
 0xe1c   :  { %v1349_v19 = vpop.xlane.xlu1 %1348 }
 0xe1d   :  { %v1351_v21 = vmul.f32 0.03125, %v1349_v19  ;;  %6564 = vrsqrt.f32 %v1352_v18 }
 0xe1f   :  { %v1353_v22 = vadd.f32 1e-05, %v1351_v21 }
 0xe21   :  { %6566 = vrsqrt.f32 %v1353_v22 }
 0xe2a   :  { %v6565_v24 = vpop.eup %6564 }
 0xe2b   :  { %v7263_v62 = vmul.f32 %v6565_v24, %v1340_v57 }
 0xe2e   :  { %v6567_v59 = vpop.eup %6566 }
 0xe2f   :  { %v7265_v25 = vmul.f32 %v6567_v59, %v1341_v61 }
 0xe31   :  { %v1379_v26 = vpack.c.bf16 %v7265_v25, %v7263_v62 }
 0xe33   :  { %6134 = vmatmul.mubr.msk.bf16.vlgmr.msra.gmra.mxu1 %vm304_vm4, %v1379_v26 }
 0xe34   :  { %6151 = vmatprep.mubr.msk.bf16.mxu1 %vm6792_vm0, %v6791_v4 }
 0xef3   :  { %v1419_v34 = vpop.f32.mrf.mxu1 }
 0xef4   :  { %v7278_v35 = vpack.c.bf16 %v1419_v34, %v1419_v34 }
 0xef5   :  { %v6135_v36 = vpop.f32.mrf.mxu1 }
 0xef6   :  { %v1605_v37 = vsel %vm894_vm14, %v7278_v35, 0 }
 0xef7   :  { %v7282_v38 = vpop.f32.mrf.mxu1  ;;  %6150 = vmatpush3.bf16.msra.mxu1 %v1605_v37 }
 0xef8   :  { %v1426_v39 = vpack.c.bf16 %v7282_v38, %v1419_v34  ;;  %6155 = vmatprep.subr.bf16.mxu1 %v6791_v4 }
 0xef9   :  { %v6136_v40 = vpop.f32.mrf.mxu1 }
 0xefa   :  { %6146 = vmatmul.mubr.msk.bf16.vlgmr.msra.gmra.mxu0 %vm425_vm9, %v1426_v39 }
 0xefb   :  { %6163 = vmatprep.mubr.msk.bf16.mxu0 %vm6792_vm0, %v6791_v4 }
 0xfba   :  { %v1468_v41 = vpop.f32.mrf.mxu0 }
 0xfbb   :  { %1708 = vrot.lane.b32.xlu1 %v1468_v41, %s6795_s5  ;;  %1477 = vrot.lane.b32.xlu0 %v1468_v41, %s6796_s13 }
 0xfbc   :  { %v6147_v42 = vpop.f32.mrf.mxu0 }
 0xfbe   :  { %v1471_v43 = vpop.f32.mrf.mxu0 }
 0xfbf   :  { %1548 = vperm.xlu0 %6511, %v1468_v41   ;;  %1479 = vrot.lane.b32.xlu1 %v1471_v43, %s6796_s13 }
 0xfc0   :  { %v6148_v44 = vpop.f32.mrf.mxu0 }
 0xfc3   :  { %6514 = vset.pattern.permute.xlu0 %v6794_v2  ;;  %1779 = vperm.xlu1 %6512, %v1468_v41  }
 0xfc4   :  { %1783 = vperm.xlu0 %6514, %v1471_v43  }
 0xfc7   :  { %1710 = vrot.lane.b32.xlu1 %v1471_v43, %s6795_s5 }
 0xfc8   :  { %6513 = vset.pattern.permute.xlu1 %v6793_v1 }
 0xfcb   :  { %1552 = vperm.xlu1 %6513, %v1471_v43  }
0x102d   :  { %v1709_v47 = vpop.permute.xlu1 %1708  ;;  %v1478_v48 = vpop.permute.xlu0 %1477 }
0x102e   :  { %1714 = vxpose.xlu0.b32.start.end [1/1] (short) (narrow) %v1709_v47, 8  ;;  %1483 = vxpose.xlu1.b32.start.end [1/1] (short) (narrow) %v1478_v48, 8 }
0x1031   :  { %v1480_v49 = vpop.permute.xlu1 %1479 }
0x1032   :  { %1515 = vxpose.xlu0.b32.start.end [1/1] (short) (narrow) %v1480_v49, 8  ;;  %v1600_v49 = vpack.c.bf16 %v7282_v38, %v7282_v38 }
0x103a   :  { %v1549_v52 = vpop.permute.xlu0 %1548 }
0x103e   :  { %v1780_v50 = vpop.permute.xlu1 %1779 }
0x103f   :  { %v1784_v53 = vpop.permute.xlu0 %1783 }
0x1042   :  { %v1711_v51 = vpop.permute.xlu1 %1710 }
0x1043   :  { %1746 = vxpose.xlu0.b32.start.end [1/1] (short) (narrow) %v1711_v51, 8 }
0x1046   :  { %v1553_v54 = vpop.permute.xlu1 %1552 }
0x104c   :  { %6516 = vset.pattern.permute.xlu1 %v6794_v2 }
0x106c   :  { %6515 = vset.pattern.permute.xlu0 %v6793_v1 }
0x10aa   :  { %v1730_v55 = vpop.trf.xlu0  ;;  %v1499_v56 = vpop.trf.xlu1 }
0x10ab   :  { %v1789_v57 = vrot.slane %v1730_v55, %v7167_v20  ;;  %v1558_v58 = vrot.slane %v1499_v56, %v7167_v20 }
0x10ad   :  { %v1794_v60 = vmul.f32 %v1789_v57, %v1780_v50  ;;  %v1563_v45 = vmul.f32 %v1558_v58, %v1549_v52 }
0x10ae   :  { %v1531_v61 = vpop.trf.xlu0 }
0x10af   :  { %v1562_v63 = vrot.slane %v1531_v61, %v7167_v20  ;;  %vm1565_vm2 = vcmp.ge.f32.partialorder %v1563_v45, 0.0  ;;  %v1567_v46 = vmul.f32 0.01, %v1563_v45  ;;  %vm1796_vm3 = vcmp.ge.f32.partialorder %v1794_v60, 0.0 }
0x10b0   :  { %v1798_v0 = vmul.f32 0.01, %v1794_v60 }
0x10b1   :  { %v1564_v3 = vmul.f32 %v1562_v63, %v1553_v54  ;;  %v1569_v5 = vsel %vm1565_vm2, %v1563_v45, %v1567_v46  ;;  %v1651_v45 = vsel %vm894_vm14, %v1600_v49, 0 }
0x10b2   :  { %v1571_v6 = vsel %vm196_vm15, %v1569_v5, -9e+15  ;;  %v1800_v7 = vsel %vm1796_vm3, %v1794_v60, %v1798_v0 }
0x10b3   :  { %v1573_v8 = vsel %vm862_vm5, %v1571_v6, -inf  ;;  %vm1566_vm7 = vcmp.ge.f32.partialorder %v1564_v3, 0.0  ;;  %v1568_v9 = vmul.f32 0.01, %v1564_v3  ;;  %v1802_v10 = vsel %vm196_vm15, %v1800_v7, -9e+15 }
0x10b4   :  { %1574 = vmax.xlane.f32.xlu1 %v1573_v8  ;;  %v1804_v14 = vsel %vm862_vm5, %v1802_v10, -inf }
0x10b5   :  { %v1570_v11 = vsel %vm1566_vm7, %v1564_v3, %v1568_v9 }
0x10b6   :  { %v1572_v12 = vsel %vm197_vm6, %v1570_v11, -9e+15 }
0x10b7   :  { %v1576_v13 = vsel %vm862_vm5, %v1572_v12, -inf }
0x10b8   :  { %1577 = vmax.xlane.f32.xlu0 %v1576_v13  ;;  %1805 = vmax.xlane.f32.xlu1 %v1804_v14  ;;  %v1373_v13 = vld [vmem:[%s7959_s14 + $0x18] sm:$0xff] }
0x10bf   :  { %v1762_v15 = vpop.trf.xlu0 }
0x10c0   :  { %v1793_v16 = vrot.slane %v1762_v15, %v7167_v20  ;;  %v1370_v15 = vld [vmem:[%s7959_s14] sm:$0xff] }
0x10c2   :  { %v1795_v17 = vmul.f32 %v1793_v16, %v1784_v53  ;;  %v1371_v16 = vld [vmem:[%s7959_s14 + $0x8] sm:$0xff] }
0x10c4   :  { %vm1797_vm8 = vcmp.ge.f32.partialorder %v1795_v17, 0.0  ;;  %v1799_v18 = vmul.f32 0.01, %v1795_v17 }
0x10c6   :  { %v1801_v19 = vsel %vm1797_vm8, %v1795_v17, %v1799_v18  ;;  %v1706_v17 = vpack.c.bf16 %v1371_v16, %v1370_v15  ;;  %v1376_v18 = vld [vmem:[%s7959_s14 + $0x30] sm:$0xff] }
0x10c7   :  { %v1803_v21 = vsel %vm197_vm6, %v1801_v19, -9e+15  ;;  %v1377_v19 = vld [vmem:[%s7959_s14 + $0x38] sm:$0xff] }
0x10c8   :  { %v1807_v22 = vsel %vm862_vm5, %v1803_v21, -inf }
0x10c9   :  { %1808 = vmax.xlane.f32.xlu1 %v1807_v22  ;;  %v1374_v22 = vld [vmem:[%s7959_s14 + $0x20] sm:$0xff] }
0x113d   :  { %v1575_v24 = vpop.xlane.xlu1 %1574 }
0x113e   :  { %v1579_v59 = vsub.f32 %v1571_v6, %v1575_v24  ;;  %v1375_v24 = vld [vmem:[%s7959_s14 + $0x28] sm:$0xff] }
0x1140   :  { %v1581_v26 = vmul.f32 1.442695, %v1579_v59  ;;  %v1941_v59 = vpack.c.bf16 %v1375_v24, %v1374_v22 }
0x1141   :  { %v1578_v27 = vpop.xlane.xlu0 %1577  ;;  %v1806_v28 = vpop.xlane.xlu1 %1805 }
0x1142   :  { %6568 = vpow2.f32 %v1581_v26  ;;  %v1580_v29 = vsub.f32 %v1572_v12, %v1578_v27  ;;  %v1810_v31 = vsub.f32 %v1802_v10, %v1806_v28  ;;  %v1372_v12 = vld [vmem:[%s7959_s14 + $0x10] sm:$0xff] }
0x1143   :  { %v1707_v14 = vpack.c.bf16 %v1373_v13, %v1372_v12 }
0x1144   :  { %v1583_v32 = vmul.f32 1.442695, %v1580_v29  ;;  %v1812_v33 = vmul.f32 1.442695, %v1810_v31 }
0x1146   :  { %6570 = vpow2.f32 %v1583_v32 }
0x1147   :  { %6572 = vpow2.f32 %v1812_v33 }
0x114f   :  { %v6569_v34 = vpop.eup %6568 }
0x1150   :  { %v1585_v36 = vsel %vm862_vm5, %v6569_v34, 0.0 }
0x1151   :  { %1586 = vadd.xlane.f32.xlu0 %v1585_v36 }
0x1152   :  { %v1809_v37 = vpop.xlane.xlu1 %1808 }
0x1153   :  { %v6571_v39 = vpop.eup %6570  ;;  %v1811_v40 = vsub.f32 %v1803_v21, %v1809_v37  ;;  %v1942_v21 = vpack.c.bf16 %v1377_v19, %v1376_v18 }
0x1154   :  { %v6573_v41 = vpop.eup %6572  ;;  %v1588_v42 = vsel %vm862_vm5, %v6571_v39, 0.0 }
0x1155   :  { %v1814_v43 = vmul.f32 1.442695, %v1811_v40  ;;  %1589 = vadd.xlane.f32.xlu1 %v1588_v42  ;;  %v1816_v44 = vsel %vm862_vm5, %v6573_v41, 0.0 }
0x1156   :  { %1817 = vadd.xlane.f32.xlu0 %v1816_v44 }
0x1157   :  { %6574 = vpow2.f32 %v1814_v43 }
0x1164   :  { %v6575_v47 = vpop.eup %6574 }
0x1165   :  { %v1819_v48 = vsel %vm862_vm5, %v6575_v47, 0.0 }
0x1166   :  { %1820 = vadd.xlane.f32.xlu1 %v1819_v48 }
0x116c   :  { %1831 = vrot.lane.b32.xlu0 %v7278_v35, %s6797_s21 }
0x1177   :  { %1880 = vrot.lane.b32.xlu1 %v1600_v49, %s6797_s21 }
0x11da   :  { %v1587_v50 = vpop.xlane.xlu0 %1586 }
0x11db   :  { %6576 = vrcp.f32 %v1587_v50 }
0x11de   :  { %v1590_v51 = vpop.xlane.xlu1 %1589 }
0x11df   :  { %v1818_v52 = vpop.xlane.xlu0 %1817  ;;  %6578 = vrcp.f32 %v1590_v51 }
0x11e0   :  { %6580 = vrcp.f32 %v1818_v52 }
0x11e3   :  { %v1832_v53 = vpop.permute.xlu0 %1831 }
0x11e4   :  { %v1837_v54 = vsel %vm894_vm14, %v1832_v53, 0 }
0x11e5   :  { %6162 = vmatpush3.bf16.msra.mxu0 %v1837_v54 }
0x11e6   :  { %6173 = vmatprep.subr.bf16.mxu0 %v6791_v4 }
0x11e8   :  { %v6577_v55 = vpop.eup %6576 }
0x11e9   :  { %v1593_v56 = vmul.f32 %v6577_v55, %v6569_v34 }
0x11eb   :  { %v1595_v35 = vsel %vm196_vm15, %v1593_v56, 0.0 }
0x11ec   :  { %v6579_v38 = vpop.eup %6578  ;;  %v1597_v57 = vpack.c.bf16 %v1595_v35, %v1595_v35 }
0x11ed   :  { %v6581_v58 = vpop.eup %6580  ;;  %v1594_v60 = vmul.f32 %v6579_v38, %v6571_v39 }
0x11ee   :  { %6152 = vmatmul.mubr.msk.bf16.vlgmr.msra.gmra.mxu1 %vm862_vm5, %v1597_v57  ;;  %v1824_v61 = vmul.f32 %v6581_v58, %v6573_v41 }
0x11ef   :  { %6156 = vmatpush3.bf16.msra.mxu1 %v1651_v45  ;;  %v1821_v63 = vpop.xlane.xlu1 %1820  ;;  %6157 = vmatprep.mubr.msk.bf16.mxu1 %vm6792_vm0, %v6791_v4  ;;  %v1596_v3 = vsel %vm197_vm6, %v1594_v60, 0.0 }
0x11f0   :  { %6582 = vrcp.f32 %v1821_v63  ;;  %v1826_v46 = vsel %vm196_vm15, %v1824_v61, 0.0  ;;  %6167 = vmatprep.subr.bf16.mxu1 %v6791_v4  ;;  %v1598_v7 = vpack.c.bf16 %v1596_v3, %v1596_v3 }
0x11f1   :  { %v1828_v0 = vpack.c.bf16 %v1826_v46, %v1826_v46 }
0x11f3   :  { %6164 = vmatmul.mubr.msk.bf16.vlgmr.msra.gmra.mxu0 %vm862_vm5, %v1828_v0  ;;  %v1881_v5 = vpop.permute.xlu1 %1880 }
0x11f4   :  { %v1886_v6 = vsel %vm894_vm14, %v1881_v5, 0  ;;  %6177 = vmatprep.mubr.msk.bf16.mxu0 %vm6792_vm0, %v6791_v4  ;;  %6174 = vmatpush3.bf16.msra.mxu0 %v1942_v21 }
0x11f5   :  { %6175 = vmatprep.subr.bf16.mxu0 %v6791_v4 }
0x11f6   :  { %6158 = vmatmul.mubr.msk.bf16.vlgmr.msra.gmra.mxu1 %vm862_vm5, %v1598_v7 }
0x11f7   :  { %6168 = vmatpush3.bf16.msra.mxu1 %v1886_v6  ;;  %6169 = vmatprep.mubr.msk.bf16.mxu1 %vm6792_vm0, %v6791_v4 }
0x11f8   :  { %6181 = vmatprep.subr.bf16.mxu1 %v6791_v4  ;;  %6176 = vmatpush3.bf16.msra.mxu0 %v1941_v59 }
0x11f9   :  { %6189 = vmatprep.subr.bf16.mxu0 %v6791_v4 }
0x11fd   :  { %v6583_v8 = vpop.eup %6582 }
0x11fe   :  { %v1825_v9 = vmul.f32 %v6583_v8, %v6575_v47 }
0x1200   :  { %v1827_v10 = vsel %vm197_vm6, %v1825_v9, 0.0 }
0x1201   :  { %v1829_v11 = vpack.c.bf16 %v1827_v10, %v1827_v10  ;;  %v5786_v10 = vld [vmem:[%s7960_s19] ss:$0 sm:$0xff] }
0x1203   :  { %6170 = vmatmul.mubr.msk.bf16.vlgmr.msra.gmra.mxu1 %vm862_vm5, %v1829_v11 }
0x1204   :  { %6185 = vmatprep.mubr.msk.bf16.mxu1 %vm6792_vm0, %v6791_v4  ;;  %6182 = vmatpush3.bf16.msra.mxu1 %v1707_v14 }
0x1205   :  { %6183 = vmatprep.subr.bf16.mxu1 %v6791_v4 }
0x1208   :  { %6184 = vmatpush3.bf16.msra.mxu1 %v1706_v17 }
0x1209   :  { %6197 = vmatprep.subr.bf16.mxu1 %v6791_v4 }
0x12ae   :  { %v1641_v26 = vpop.f32.mrf.mxu1 }
0x12af   :  { %v1695_v27 = vmin.f32 %v1641_v26, 0.0  ;;  %vm1693_vm10 = vcmp.gt.f32.partialorder %v1641_v26, 0.0 }
0x12b0   :  { %v6153_v28 = vpop.f32.mrf.mxu1 }
0x12b1   :  { %v1697_v31 = vmul.f32 1.442695, %v1695_v27 }
0x12b2   :  { %v1644_v29 = vpop.f32.mrf.mxu1 }
0x12b3   :  { %v1873_v32 = vpop.f32.mrf.mxu0  ;;  %6584 = vpow2.f32 %v1697_v31 }
0x12b4   :  { %v6154_v33 = vpop.f32.mrf.mxu1  ;;  %v1930_v44 = vmin.f32 %v1873_v32, 0.0  ;;  %vm1928_vm12 = vcmp.gt.f32.partialorder %v1873_v32, 0.0 }
0x12b5   :  { %v6165_v34 = vpop.f32.mrf.mxu0 }
0x12b6   :  { %v1687_v36 = vpop.f32.mrf.mxu1  ;;  %v1932_v48 = vmul.f32 1.442695, %v1930_v44  ;;  %v2069_v34 = vld [vmem:[%s7961_s24 + $0x10] sm:$0xff]  ;;  %v2075_v44 = vld [vmem:[%s7962_s30 + $0x20] sm:$0xff] }
0x12b7   :  { %v1696_v37 = vmin.f32 %v1687_v36, 0.0  ;;  %v1876_v39 = vpop.f32.mrf.mxu0  ;;  %vm1694_vm11 = vcmp.gt.f32.partialorder %v1687_v36, 0.0 }
0x12b8   :  { %v6159_v40 = vpop.f32.mrf.mxu1 }
0x12b9   :  { %v1699_v41 = vmul.f32 1.442695, %v1696_v37  ;;  %v6166_v42 = vpop.f32.mrf.mxu0  ;;  %v2067_v37 = vld [vmem:[%s7961_s24] sm:$0xff]  ;;  %v2068_v40 = vld [vmem:[%s7961_s24 + $0x8] sm:$0xff] }
0x12ba   :  { %v1690_v43 = vpop.f32.mrf.mxu1  ;;  %v2077_v42 = vld [vmem:[%s7962_s30 + $0x30] sm:$0xff] }
0x12bb   :  { %6586 = vpow2.f32 %v1699_v41  ;;  %v2089_v41 = vpack.c.bf16 %v2068_v40, %v2067_v37  ;;  %v2078_v43 = vld [vmem:[%s7962_s30 + $0x38] sm:$0xff] }
0x12bc   :  { %v6160_v47 = vpop.f32.mrf.mxu1  ;;  %6588 = vpow2.f32 %v1932_v48  ;;  %v2076_v48 = vld [vmem:[%s7962_s30 + $0x28] sm:$0xff] }
0x12bd   :  { %v2139_v47 = vpack.c.bf16 %v2078_v43, %v2077_v42 }
0x12c0   :  { %v6585_v50 = vpop.eup %6584 }
0x12c1   :  { %v5778_v54 = vadd.f32 -1.0, %v6585_v50 }
0x12c3   :  { %v1922_v49 = vpop.f32.mrf.mxu1  ;;  %v1703_v57 = vsel %vm1693_vm10, %v1641_v26, %v5778_v54 }
0x12c4   :  { %v1931_v51 = vmin.f32 %v1922_v49, 0.0  ;;  %vm1929_vm13 = vcmp.gt.f32.partialorder %v1922_v49, 0.0 }
0x12c5   :  { %v6171_v52 = vpop.f32.mrf.mxu1 }
0x12c6   :  { %v1934_v53 = vmul.f32 1.442695, %v1931_v51 }
0x12c7   :  { %v1925_v55 = vpop.f32.mrf.mxu1 }
0x12c8   :  { %v6587_v56 = vpop.eup %6586  ;;  %6590 = vpow2.f32 %v1934_v53 }
0x12c9   :  { %v5779_v35 = vadd.f32 -1.0, %v6587_v56  ;;  %v6172_v38 = vpop.f32.mrf.mxu1  ;;  %v6589_v45 = vpop.eup %6588 }
0x12ca   :  { %v5782_v61 = vadd.f32 -1.0, %v6589_v45  ;;  %v2074_v45 = vld [vmem:[%s7962_s30 + $0x18] sm:$0xff] }
0x12cb   :  { %v1704_v58 = vsel %vm1694_vm11, %v1687_v36, %v5779_v35  ;;  %v2070_v36 = vld [vmem:[%s7961_s24 + $0x18] sm:$0xff] }
0x12cc   :  { %v1705_v60 = vpack.c.bf16 %v1704_v58, %v1703_v57  ;;  %v1938_v0 = vsel %vm1928_vm12, %v1873_v32, %v5782_v61  ;;  %v2090_v39 = vpack.c.bf16 %v2070_v36, %v2069_v34 }
0x12ce   :  { %6186 = vmatmul.mubr.msk.bf16.vlgmr.msra.gmra.mxu1 %vm304_vm4, %v1705_v60  ;;  %v2073_v60 = vld [vmem:[%s7962_s30 + $0x10] sm:$0xff] }
0x12cf   :  { %6205 = vmatprep.mubr.msk.bf16.mxu1 %vm6792_vm0, %v6791_v4  ;;  %6198 = vmatpush3.bf16.msra.mxu1 %v2139_v47  ;;  %v2137_v61 = vpack.c.bf16 %v2074_v45, %v2073_v60 }
0x12d0   :  { %6199 = vmatprep.subr.bf16.mxu1 %v6791_v4 }
0x12d5   :  { %v6591_v63 = vpop.eup %6590 }
0x12d6   :  { %v5783_v46 = vadd.f32 -1.0, %v6591_v63  ;;  %v2071_v63 = vld [vmem:[%s7962_s30] sm:$0xff] }
0x12d8   :  { %v1939_v3 = vsel %vm1929_vm13, %v1922_v49, %v5783_v46  ;;  %v2138_v49 = vpack.c.bf16 %v2076_v48, %v2075_v44  ;;  %v2072_v46 = vld [vmem:[%s7962_s30 + $0x8] sm:$0xff] }
0x12d9   :  { %v1940_v5 = vpack.c.bf16 %v1939_v3, %v1938_v0  ;;  %v2136_v0 = vpack.c.bf16 %v2072_v46, %v2071_v63 }
0x12da   :  { %6200 = vmatpush3.bf16.msra.mxu1 %v2138_v49 }
0x12db   :  { %6178 = vmatmul.mubr.msk.bf16.vlgmr.msra.gmra.mxu0 %vm304_vm4, %v1940_v5  ;;  %6201 = vmatprep.subr.bf16.mxu1 %v6791_v4 }
0x12dc   :  { %6193 = vmatprep.mubr.msk.bf16.mxu0 %vm6792_vm0, %v6791_v4  ;;  %6190 = vmatpush3.bf16.msra.mxu0 %v2090_v39 }
0x12dd   :  { %6191 = vmatprep.subr.bf16.mxu0 %v6791_v4 }
0x12de   :  { %6202 = vmatpush3.bf16.msra.mxu1 %v2137_v61 }
0x12df   :  { %6203 = vmatprep.subr.bf16.mxu1 %v6791_v4 }
0x12e0   :  { %6192 = vmatpush3.bf16.msra.mxu0 %v2089_v41 }
0x12e1   :  { %6209 = vmatprep.subr.bf16.mxu0 %v6791_v4 }
0x12e2   :  { %6204 = vmatpush3.bf16.msra.mxu1 %v2136_v0 }
0x12e3   :  { %6221 = vmatprep.subr.bf16.mxu1 %v6791_v4 }
0x138e   :  { %v2024_v6 = vpop.f32.mrf.mxu1 }
0x1390   :  { %v6187_v7 = vpop.f32.mrf.mxu1 }
0x1392   :  { %v2027_v8 = vpop.f32.mrf.mxu1 }
0x1394   :  { %v6188_v9 = vpop.f32.mrf.mxu1 }
0x139b   :  { %v1980_v11 = vpop.f32.mrf.mxu0 }
0x139c   :  { %v2025_v12 = vadd.f32 %v2024_v6, %v1980_v11 }
0x139d   :  { %v6179_v13 = vpop.f32.mrf.mxu0 }
0x139e   :  { %v2037_v14 = vadd.f32 %v5786_v10, %v2025_v12 }
0x139f   :  { %v1983_v15 = vpop.f32.mrf.mxu0 }
0x13a0   :  { %v2028_v16 = vadd.f32 %v2027_v8, %v1983_v15  ;;  %v2039_v17 = vadd.f32 %v2037_v14, %v7263_v62 }
0x13a1   :  { %v6180_v18 = vpop.f32.mrf.mxu0 }
0x13a2   :  { %v2038_v19 = vadd.f32 %v5786_v10, %v2028_v16  ;;  %v2041_v21 = vsel %vm304_vm4, %v2039_v17, 0.0 }
0x13a3   :  { %2042 = vadd.xlane.f32.xlu1 %v2041_v21 }
0x13a4   :  { %v2040_v22 = vadd.f32 %v2038_v19, %v7265_v25 }
0x13a6   :  { %v2044_v24 = vsel %vm304_vm4, %v2040_v22, 0.0 }
0x13a7   :  { %2045 = vadd.xlane.f32.xlu0 %v2044_v24 }
0x142c   :  { %v2043_v59 = vpop.xlane.xlu1 %2042 }
0x142d   :  { %v2047_v26 = vmul.f32 0.03125, %v2043_v59 }
0x142f   :  { %v2049_v27 = vsub.f32 %v2039_v17, %v2047_v26 }
0x1430   :  { %v2046_v28 = vpop.xlane.xlu0 %2045 }
0x1431   :  { %v2048_v29 = vmul.f32 0.03125, %v2046_v28  ;;  %v2051_v62 = vmul.f32 %v2049_v27, %v2049_v27 }
0x1433   :  { %v2050_v31 = vsub.f32 %v2040_v22, %v2048_v29  ;;  %v2053_v32 = vsel %vm304_vm4, %v2051_v62, 0.0 }
0x1434   :  { %2054 = vadd.xlane.f32.xlu0 %v2053_v32 }
0x1435   :  { %v2052_v25 = vmul.f32 %v2050_v31, %v2050_v31 }
0x1437   :  { %v2056_v33 = vsel %vm304_vm4, %v2052_v25, 0.0 }
0x1438   :  { %2057 = vadd.xlane.f32.xlu1 %v2056_v33 }
0x14bd   :  { %v2055_v50 = vpop.xlane.xlu0 %2054 }
0x14be   :  { %v2059_v51 = vmul.f32 0.03125, %v2055_v50 }
0x14c0   :  { %v2061_v52 = vadd.f32 1e-05, %v2059_v51 }
0x14c1   :  { %v2058_v53 = vpop.xlane.xlu1 %2057 }
0x14c2   :  { %v2060_v54 = vmul.f32 0.03125, %v2058_v53  ;;  %6592 = vrsqrt.f32 %v2061_v52 }
0x14c4   :  { %v2062_v55 = vadd.f32 1e-05, %v2060_v54 }
0x14c6   :  { %6594 = vrsqrt.f32 %v2062_v55 }
0x14cf   :  { %v6593_v56 = vpop.eup %6592 }
0x14d0   :  { %v7385_v38 = vmul.f32 %v6593_v56, %v2049_v27 }
0x14d3   :  { %v6595_v35 = vpop.eup %6594 }
0x14d4   :  { %v7387_v57 = vmul.f32 %v6595_v35, %v2050_v31 }
0x14d6   :  { %v2088_v58 = vpack.c.bf16 %v7387_v57, %v7385_v38 }
0x14d8   :  { %6194 = vmatmul.mubr.msk.bf16.vlgmr.msra.gmra.mxu0 %vm304_vm4, %v2088_v58 }
0x14d9   :  { %6211 = vmatprep.mubr.msk.bf16.mxu0 %vm6792_vm0, %v6791_v4 }
0x1598   :  { %v2128_v3 = vpop.f32.mrf.mxu0 }
0x1599   :  { %v7400_v5 = vpack.c.bf16 %v2128_v3, %v2128_v3 }
0x159a   :  { %v6195_v6 = vpop.f32.mrf.mxu0 }
0x159b   :  { %v2314_v7 = vsel %vm894_vm14, %v7400_v5, 0 }
0x159c   :  { %v7404_v8 = vpop.f32.mrf.mxu0  ;;  %6210 = vmatpush3.bf16.msra.mxu0 %v2314_v7 }
0x159d   :  { %v2135_v9 = vpack.c.bf16 %v7404_v8, %v2128_v3  ;;  %6215 = vmatprep.subr.bf16.mxu0 %v6791_v4 }
0x159e   :  { %v6196_v10 = vpop.f32.mrf.mxu0 }
0x159f   :  { %6206 = vmatmul.mubr.msk.bf16.vlgmr.msra.gmra.mxu1 %vm425_vm9, %v2135_v9 }
0x15a0   :  { %6223 = vmatprep.mubr.msk.bf16.mxu1 %vm6792_vm0, %v6791_v4 }
0x165f   :  { %v2177_v11 = vpop.f32.mrf.mxu1 }
0x1660   :  { %2417 = vrot.lane.b32.xlu1 %v2177_v11, %s6795_s5  ;;  %2186 = vrot.lane.b32.xlu0 %v2177_v11, %s6796_s13 }
0x1661   :  { %v6207_v12 = vpop.f32.mrf.mxu1 }
0x1663   :  { %v2180_v13 = vpop.f32.mrf.mxu1 }
0x1664   :  { %2257 = vperm.xlu0 %6515, %v2177_v11   ;;  %2188 = vrot.lane.b32.xlu1 %v2180_v13, %s6796_s13 }
0x1665   :  { %v6208_v14 = vpop.f32.mrf.mxu1 }
0x1668   :  { %6518 = vset.pattern.permute.xlu0 %v6794_v2  ;;  %2488 = vperm.xlu1 %6516, %v2177_v11  }
0x1669   :  { %2492 = vperm.xlu0 %6518, %v2180_v13  }
0x166c   :  { %2419 = vrot.lane.b32.xlu1 %v2180_v13, %s6795_s5 }
0x166d   :  { %6517 = vset.pattern.permute.xlu1 %v6793_v1 }
0x1670   :  { %2261 = vperm.xlu1 %6517, %v2180_v13  }
0x16d2   :  { %v2418_v15 = vpop.permute.xlu1 %2417  ;;  %v2187_v16 = vpop.permute.xlu0 %2186 }
0x16d3   :  { %2423 = vxpose.xlu0.b32.start.end [1/1] (short) (narrow) %v2418_v15, 8  ;;  %2192 = vxpose.xlu1.b32.start.end [1/1] (short) (narrow) %v2187_v16, 8 }
0x16d6   :  { %v2189_v17 = vpop.permute.xlu1 %2188 }
0x16d7   :  { %2224 = vxpose.xlu0.b32.start.end [1/1] (short) (narrow) %v2189_v17, 8  ;;  %v2309_v17 = vpack.c.bf16 %v7404_v8, %v7404_v8 }
0x16df   :  { %v2258_v21 = vpop.permute.xlu0 %2257 }
0x16e3   :  { %v2489_v18 = vpop.permute.xlu1 %2488 }
0x16e4   :  { %v2493_v22 = vpop.permute.xlu0 %2492 }
0x16e7   :  { %v2420_v19 = vpop.permute.xlu1 %2419 }
0x16e8   :  { %2455 = vxpose.xlu0.b32.start.end [1/1] (short) (narrow) %v2420_v19, 8 }
0x16eb   :  { %v2262_v24 = vpop.permute.xlu1 %2261 }
0x174f   :  { %v2439_v59 = vpop.trf.xlu0  ;;  %v2208_v26 = vpop.trf.xlu1 }
0x1750   :  { %v2498_v27 = vrot.slane %v2439_v59, %v7167_v20  ;;  %v2267_v28 = vrot.slane %v2208_v26, %v7167_v20 }
0x1752   :  { %v2503_v29 = vmul.f32 %v2498_v27, %v2489_v18  ;;  %v2272_v62 = vmul.f32 %v2267_v28, %v2258_v21 }
0x1753   :  { %v2240_v31 = vpop.trf.xlu0 }
0x1754   :  { %v2271_v32 = vrot.slane %v2240_v31, %v7167_v20  ;;  %vm2274_vm9 = vcmp.ge.f32.partialorder %v2272_v62, 0.0  ;;  %v2276_v25 = vmul.f32 0.01, %v2272_v62  ;;  %vm2505_vm2 = vcmp.ge.f32.partialorder %v2503_v29, 0.0 }
0x1755   :  { %v2507_v33 = vmul.f32 0.01, %v2503_v29 }
0x1756   :  { %v2273_v34 = vmul.f32 %v2271_v32, %v2262_v24  ;;  %v2278_v36 = vsel %vm2274_vm9, %v2272_v62, %v2276_v25  ;;  %v2360_v62 = vsel %vm894_vm14, %v2309_v17, 0 }
0x1757   :  { %v2280_v37 = vsel %vm196_vm15, %v2278_v36, -9e+15  ;;  %v2509_v39 = vsel %vm2505_vm2, %v2503_v29, %v2507_v33  ;;  %vm5624_vm2 = vcmask 1041409  }
0x1758   :  { %v2282_v40 = vsel %vm862_vm5, %v2280_v37, -inf  ;;  %vm2275_vm3 = vcmp.ge.f32.partialorder %v2273_v34, 0.0  ;;  %v2277_v41 = vmul.f32 0.01, %v2273_v34  ;;  %v2511_v42 = vsel %vm196_vm15, %v2509_v39, -9e+15 }
0x1759   :  { %2283 = vmax.xlane.f32.xlu1 %v2282_v40  ;;  %v2513_v48 = vsel %vm862_vm5, %v2511_v42, -inf }
0x175a   :  { %v2279_v43 = vsel %vm2275_vm3, %v2273_v34, %v2277_v41 }
0x175b   :  { %v2281_v44 = vsel %vm197_vm6, %v2279_v43, -9e+15 }
0x175c   :  { %v2285_v47 = vsel %vm862_vm5, %v2281_v44, -inf }
0x175d   :  { %2286 = vmax.xlane.f32.xlu0 %v2285_v47  ;;  %2514 = vmax.xlane.f32.xlu1 %v2513_v48  ;;  %v2082_v47 = vld [vmem:[%s7963_s6 + $0x18] sm:$0xff] }
0x1764   :  { %v2471_v49 = vpop.trf.xlu0 }
0x1765   :  { %v2502_v50 = vrot.slane %v2471_v49, %v7167_v20  ;;  %v2079_v49 = vld [vmem:[%s7963_s6] sm:$0xff] }
0x1767   :  { %v2504_v51 = vmul.f32 %v2502_v50, %v2493_v22  ;;  %v2080_v50 = vld [vmem:[%s7963_s6 + $0x8] sm:$0xff] }
0x1769   :  { %vm2506_vm7 = vcmp.ge.f32.partialorder %v2504_v51, 0.0  ;;  %v2508_v52 = vmul.f32 0.01, %v2504_v51 }
0x176b   :  { %v2510_v53 = vsel %vm2506_vm7, %v2504_v51, %v2508_v52  ;;  %v2415_v51 = vpack.c.bf16 %v2080_v50, %v2079_v49  ;;  %v2085_v52 = vld [vmem:[%s7963_s6 + $0x30] sm:$0xff] }
0x176c   :  { %v2512_v54 = vsel %vm197_vm6, %v2510_v53, -9e+15  ;;  %v2086_v53 = vld [vmem:[%s7963_s6 + $0x38] sm:$0xff] }
0x176d   :  { %v2516_v55 = vsel %vm862_vm5, %v2512_v54, -inf }
0x176e   :  { %2517 = vmax.xlane.f32.xlu1 %v2516_v55  ;;  %v2083_v55 = vld [vmem:[%s7963_s6 + $0x20] sm:$0xff] }
0x17e2   :  { %v2284_v56 = vpop.xlane.xlu1 %2283 }
0x17e3   :  { %v2288_v35 = vsub.f32 %v2280_v37, %v2284_v56  ;;  %v2084_v56 = vld [vmem:[%s7963_s6 + $0x28] sm:$0xff] }
0x17e5   :  { %v2290_v58 = vmul.f32 1.442695, %v2288_v35  ;;  %v2650_v35 = vpack.c.bf16 %v2084_v56, %v2083_v55 }
0x17e6   :  { %v2287_v60 = vpop.xlane.xlu0 %2286  ;;  %v2515_v45 = vpop.xlane.xlu1 %2514 }
0x17e7   :  { %6596 = vpow2.f32 %v2290_v58  ;;  %v2289_v61 = vsub.f32 %v2281_v44, %v2287_v60  ;;  %v2519_v63 = vsub.f32 %v2511_v42, %v2515_v45  ;;  %v2081_v44 = vld [vmem:[%s7963_s6 + $0x10] sm:$0xff] }
0x17e8   :  { %v2416_v48 = vpack.c.bf16 %v2082_v47, %v2081_v44 }
0x17e9   :  { %v2292_v46 = vmul.f32 1.442695, %v2289_v61  ;;  %v2521_v0 = vmul.f32 1.442695, %v2519_v63 }
0x17eb   :  { %6598 = vpow2.f32 %v2292_v46 }
0x17ec   :  { %6600 = vpow2.f32 %v2521_v0 }
0x17f4   :  { %v6597_v3 = vpop.eup %6596 }
0x17f5   :  { %v2294_v6 = vsel %vm862_vm5, %v6597_v3, 0.0 }
0x17f6   :  { %2295 = vadd.xlane.f32.xlu0 %v2294_v6 }
0x17f7   :  { %v2518_v7 = vpop.xlane.xlu1 %2517 }
0x17f8   :  { %v6599_v9 = vpop.eup %6598  ;;  %v2520_v10 = vsub.f32 %v2512_v54, %v2518_v7  ;;  %v2651_v54 = vpack.c.bf16 %v2086_v53, %v2085_v52 }
0x17f9   :  { %v6601_v11 = vpop.eup %6600  ;;  %v2297_v12 = vsel %vm862_vm5, %v6599_v9, 0.0 }
0x17fa   :  { %v2523_v13 = vmul.f32 1.442695, %v2520_v10  ;;  %2298 = vadd.xlane.f32.xlu1 %v2297_v12  ;;  %v2525_v14 = vsel %vm862_vm5, %v6601_v11, 0.0 }
0x17fb   :  { %2526 = vadd.xlane.f32.xlu0 %v2525_v14 }
0x17fc   :  { %6602 = vpow2.f32 %v2523_v13 }
0x1809   :  { %v6603_v15 = vpop.eup %6602 }
0x180a   :  { %v2528_v16 = vsel %vm862_vm5, %v6603_v15, 0.0 }
0x180b   :  { %2529 = vadd.xlane.f32.xlu1 %v2528_v16 }
0x1811   :  { %2540 = vrot.lane.b32.xlu0 %v7400_v5, %s6797_s21 }
0x181c   :  { %2589 = vrot.lane.b32.xlu1 %v2309_v17, %s6797_s21 }
0x187f   :  { %v2296_v18 = vpop.xlane.xlu0 %2295 }
0x1880   :  { %6604 = vrcp.f32 %v2296_v18 }
0x1883   :  { %v2299_v19 = vpop.xlane.xlu1 %2298 }
0x1884   :  { %v2527_v21 = vpop.xlane.xlu0 %2526  ;;  %6606 = vrcp.f32 %v2299_v19 }
0x1885   :  { %6608 = vrcp.f32 %v2527_v21 }
0x1888   :  { %v2541_v22 = vpop.permute.xlu0 %2540 }
0x1889   :  { %v2546_v24 = vsel %vm894_vm14, %v2541_v22, 0 }
0x188a   :  { %6222 = vmatpush3.bf16.msra.mxu1 %v2546_v24 }
0x188b   :  { %6233 = vmatprep.subr.bf16.mxu1 %v6791_v4 }
0x188d   :  { %v6605_v59 = vpop.eup %6604 }
0x188e   :  { %v2302_v26 = vmul.f32 %v6605_v59, %v6597_v3 }
0x1890   :  { %v2304_v5 = vsel %vm196_vm15, %v2302_v26, 0.0 }
0x1891   :  { %v6607_v8 = vpop.eup %6606  ;;  %v2306_v27 = vpack.c.bf16 %v2304_v5, %v2304_v5 }
0x1892   :  { %v6609_v28 = vpop.eup %6608  ;;  %v2303_v29 = vmul.f32 %v6607_v8, %v6599_v9 }
0x1893   :  { %6212 = vmatmul.mubr.msk.bf16.vlgmr.msra.gmra.mxu0 %vm862_vm5, %v2306_v27  ;;  %v2533_v31 = vmul.f32 %v6609_v28, %v6601_v11 }
0x1894   :  { %6216 = vmatpush3.bf16.msra.mxu0 %v2360_v62  ;;  %v2530_v32 = vpop.xlane.xlu1 %2529  ;;  %6217 = vmatprep.mubr.msk.bf16.mxu0 %vm6792_vm0, %v6791_v4  ;;  %v2305_v34 = vsel %vm197_vm6, %v2303_v29, 0.0 }
0x1895   :  { %6610 = vrcp.f32 %v2530_v32  ;;  %v2535_v25 = vsel %vm196_vm15, %v2533_v31, 0.0  ;;  %6227 = vmatprep.subr.bf16.mxu0 %v6791_v4  ;;  %v2307_v39 = vpack.c.bf16 %v2305_v34, %v2305_v34 }
0x1896   :  { %v2537_v33 = vpack.c.bf16 %v2535_v25, %v2535_v25 }
0x1898   :  { %6224 = vmatmul.mubr.msk.bf16.vlgmr.msra.gmra.mxu1 %vm862_vm5, %v2537_v33  ;;  %v2590_v36 = vpop.permute.xlu1 %2589 }
0x1899   :  { %v2595_v37 = vsel %vm894_vm14, %v2590_v36, 0  ;;  %6237 = vmatprep.mubr.msk.bf16.mxu1 %vm6792_vm0, %v6791_v4  ;;  %6234 = vmatpush3.bf16.msra.mxu1 %v2651_v54 }
0x189a   :  { %6235 = vmatprep.subr.bf16.mxu1 %v6791_v4 }
0x189b   :  { %6218 = vmatmul.mubr.msk.bf16.vlgmr.msra.gmra.mxu0 %vm862_vm5, %v2307_v39 }
0x189c   :  { %6228 = vmatpush3.bf16.msra.mxu0 %v2595_v37  ;;  %6229 = vmatprep.mubr.msk.bf16.mxu0 %vm6792_vm0, %v6791_v4 }
0x189d   :  { %6241 = vmatprep.subr.bf16.mxu0 %v6791_v4  ;;  %6236 = vmatpush3.bf16.msra.mxu1 %v2650_v35 }
0x189e   :  { %6249 = vmatprep.subr.bf16.mxu1 %v6791_v4 }
0x18a2   :  { %v6611_v40 = vpop.eup %6610 }
0x18a3   :  { %v2534_v41 = vmul.f32 %v6611_v40, %v6603_v15 }
0x18a5   :  { %v2536_v42 = vsel %vm197_vm6, %v2534_v41, 0.0 }
0x18a6   :  { %v2538_v43 = vpack.c.bf16 %v2536_v42, %v2536_v42  ;;  %v5799_v42 = vld [vmem:[%s7964_s12] ss:$0 sm:$0xff] }
0x18a8   :  { %6230 = vmatmul.mubr.msk.bf16.vlgmr.msra.gmra.mxu0 %vm862_vm5, %v2538_v43 }
0x18a9   :  { %6245 = vmatprep.mubr.msk.bf16.mxu0 %vm6792_vm0, %v6791_v4  ;;  %6242 = vmatpush3.bf16.msra.mxu0 %v2416_v48 }
0x18aa   :  { %6243 = vmatprep.subr.bf16.mxu0 %v6791_v4 }
0x18ad   :  { %6244 = vmatpush3.bf16.msra.mxu0 %v2415_v51 }
0x18ae   :  { %6257 = vmatprep.subr.bf16.mxu0 %v6791_v4 }
0x1953   :  { %v2350_v58 = vpop.f32.mrf.mxu0 }
0x1954   :  { %v2404_v60 = vmin.f32 %v2350_v58, 0.0  ;;  %vm2402_vm8 = vcmp.gt.f32.partialorder %v2350_v58, 0.0 }
0x1955   :  { %v6213_v45 = vpop.f32.mrf.mxu0 }
0x1956   :  { %v2406_v63 = vmul.f32 1.442695, %v2404_v60 }
0x1957   :  { %v2353_v61 = vpop.f32.mrf.mxu0 }
0x1958   :  { %v2582_v46 = vpop.f32.mrf.mxu1  ;;  %6612 = vpow2.f32 %v2406_v63 }
0x1959   :  { %v6214_v0 = vpop.f32.mrf.mxu0  ;;  %v2639_v14 = vmin.f32 %v2582_v46, 0.0  ;;  %vm2637_vm11 = vcmp.gt.f32.partialorder %v2582_v46, 0.0 }
0x195a   :  { %v6225_v3 = vpop.f32.mrf.mxu1 }
0x195b   :  { %v2396_v6 = vpop.f32.mrf.mxu0  ;;  %v2641_v16 = vmul.f32 1.442695, %v2639_v14  ;;  %v2778_v3 = vld [vmem:[%s7965_s27 + $0x10] sm:$0xff] }
0x195c   :  { %v2405_v7 = vmin.f32 %v2396_v6, 0.0  ;;  %v2585_v9 = vpop.f32.mrf.mxu1  ;;  %vm2403_vm10 = vcmp.gt.f32.partialorder %v2396_v6, 0.0 }
0x195d   :  { %v6219_v10 = vpop.f32.mrf.mxu0 }
0x195e   :  { %v2408_v11 = vmul.f32 1.442695, %v2405_v7  ;;  %v6226_v12 = vpop.f32.mrf.mxu1  ;;  %v2776_v7 = vld [vmem:[%s7965_s27] sm:$0xff]  ;;  %v2777_v10 = vld [vmem:[%s7965_s27 + $0x8] sm:$0xff] }
0x195f   :  { %v2399_v13 = vpop.f32.mrf.mxu0  ;;  %v2782_v12 = vld [vmem:[%s7966_s7 + $0x10] sm:$0xff] }
0x1960   :  { %6614 = vpow2.f32 %v2408_v11  ;;  %v2785_v11 = vpack.c.bf16 %v2777_v10, %v2776_v7  ;;  %v2783_v13 = vld [vmem:[%s7966_s7 + $0x18] sm:$0xff] }
0x1961   :  { %v6220_v15 = vpop.f32.mrf.mxu0  ;;  %6616 = vpow2.f32 %v2641_v16  ;;  %v2833_v14 = vpack.c.bf16 %v2783_v13, %v2782_v12 }
0x1965   :  { %v6613_v18 = vpop.eup %6612 }
0x1966   :  { %v5791_v24 = vadd.f32 -1.0, %v6613_v18 }
0x1968   :  { %v2631_v17 = vpop.f32.mrf.mxu0  ;;  %v2412_v27 = vsel %vm2402_vm8, %v2350_v58, %v5791_v24 }
0x1969   :  { %v2640_v19 = vmin.f32 %v2631_v17, 0.0  ;;  %vm2638_vm12 = vcmp.gt.f32.partialorder %v2631_v17, 0.0 }
0x196a   :  { %v6231_v21 = vpop.f32.mrf.mxu0 }
0x196b   :  { %v2643_v22 = vmul.f32 1.442695, %v2640_v19 }
0x196c   :  { %v2634_v59 = vpop.f32.mrf.mxu0 }
0x196d   :  { %v6615_v26 = vpop.eup %6614  ;;  %6618 = vpow2.f32 %v2643_v22 }
0x196e   :  { %v5792_v5 = vadd.f32 -1.0, %v6615_v26  ;;  %v6232_v8 = vpop.f32.mrf.mxu0  ;;  %v6617_v62 = vpop.eup %6616 }
0x196f   :  { %v5795_v31 = vadd.f32 -1.0, %v6617_v62  ;;  %v2780_v8 = vld [vmem:[%s7966_s7] sm:$0xff] }
0x1970   :  { %v2413_v28 = vsel %vm2403_vm10, %v2396_v6, %v5792_v5  ;;  %v2779_v6 = vld [vmem:[%s7965_s27 + $0x18] sm:$0xff] }
0x1971   :  { %v2414_v29 = vpack.c.bf16 %v2413_v28, %v2412_v27  ;;  %v2647_v33 = vsel %vm2637_vm11, %v2582_v46, %v5795_v31  ;;  %v2786_v9 = vpack.c.bf16 %v2779_v6, %v2778_v3  ;;  %v2781_v27 = vld [vmem:[%s7966_s7 + $0x8] sm:$0xff] }
0x1972   :  { %v2832_v28 = vpack.c.bf16 %v2781_v27, %v2780_v8  ;;  %v3180_v8 = vld [vmem:[%s7968_s11 + $0x10] sm:$0xff]  ;;  %v3181_v27 = vld [vmem:[%s7968_s11 + $0x18] sm:$0xff] }
0x1973   :  { %6246 = vmatmul.mubr.msk.bf16.vlgmr.msra.gmra.mxu0 %vm304_vm4, %v2414_v29 }
0x1974   :  { %6261 = vmatprep.mubr.msk.bf16.mxu0 %vm6792_vm0, %v6791_v4  ;;  %6258 = vmatpush3.bf16.msra.mxu0 %v2833_v14 }
0x1975   :  { %6259 = vmatprep.subr.bf16.mxu0 %v6791_v4 }
0x1978   :  { %6260 = vmatpush3.bf16.msra.mxu0 %v2832_v28  ;;  %v3236_v28 = vpack.c.bf16 %v3181_v27, %v3180_v8 }
0x1979   :  { %6271 = vmatprep.subr.bf16.mxu0 %v6791_v4 }
0x197a   :  { %v6619_v32 = vpop.eup %6618 }
0x197b   :  { %v5796_v25 = vadd.f32 -1.0, %v6619_v32 }
0x197d   :  { %v2648_v34 = vsel %vm2638_vm12, %v2631_v17, %v5796_v25 }
0x197e   :  { %v2649_v36 = vpack.c.bf16 %v2648_v34, %v2647_v33 }
0x1980   :  { %6238 = vmatmul.mubr.msk.bf16.vlgmr.msra.gmra.mxu1 %vm304_vm4, %v2649_v36 }
0x1981   :  { %6253 = vmatprep.mubr.msk.bf16.mxu1 %vm6792_vm0, %v6791_v4  ;;  %6250 = vmatpush3.bf16.msra.mxu1 %v2786_v9 }
0x1982   :  { %6251 = vmatprep.subr.bf16.mxu1 %v6791_v4 }
0x1985   :  { %6252 = vmatpush3.bf16.msra.mxu1 %v2785_v11 }
0x1986   :  { %6265 = vmatprep.subr.bf16.mxu1 %v6791_v4 }
0x1a33   :  { %v2733_v37 = vpop.f32.mrf.mxu0 }
0x1a35   :  { %v6247_v39 = vpop.f32.mrf.mxu0 }
0x1a37   :  { %v2736_v40 = vpop.f32.mrf.mxu0 }
0x1a39   :  { %v6248_v41 = vpop.f32.mrf.mxu0 }
0x1a40   :  { %v2689_v43 = vpop.f32.mrf.mxu1 }
0x1a41   :  { %v2734_v44 = vadd.f32 %v2733_v37, %v2689_v43 }
0x1a42   :  { %v6239_v47 = vpop.f32.mrf.mxu1 }
0x1a43   :  { %v2746_v48 = vadd.f32 %v5799_v42, %v2734_v44 }
0x1a44   :  { %v2692_v49 = vpop.f32.mrf.mxu1 }
0x1a45   :  { %v2737_v50 = vadd.f32 %v2736_v40, %v2692_v49  ;;  %v2748_v51 = vadd.f32 %v2746_v48, %v7385_v38 }
0x1a46   :  { %v6240_v52 = vpop.f32.mrf.mxu1 }
0x1a47   :  { %v2747_v53 = vadd.f32 %v5799_v42, %v2737_v50  ;;  %v2750_v54 = vsel %vm304_vm4, %v2748_v51, 0.0 }
0x1a48   :  { %2751 = vadd.xlane.f32.xlu1 %v2750_v54 }
0x1a49   :  { %v2749_v55 = vadd.f32 %v2747_v53, %v7387_v57 }
0x1a4b   :  { %v2753_v56 = vsel %vm304_vm4, %v2749_v55, 0.0 }
0x1a4c   :  { %2754 = vadd.xlane.f32.xlu0 %v2753_v56 }
0x1ad1   :  { %v2752_v35 = vpop.xlane.xlu1 %2751 }
0x1ad2   :  { %v2756_v58 = vmul.f32 0.03125, %v2752_v35 }
0x1ad4   :  { %v2758_v60 = vsub.f32 %v2748_v51, %v2756_v58 }
0x1ad5   :  { %v2755_v45 = vpop.xlane.xlu0 %2754 }
0x1ad6   :  { %v2757_v61 = vmul.f32 0.03125, %v2755_v45  ;;  %v2760_v38 = vmul.f32 %v2758_v60, %v2758_v60 }
0x1ad8   :  { %v2759_v63 = vsub.f32 %v2749_v55, %v2757_v61  ;;  %v2762_v46 = vsel %vm304_vm4, %v2760_v38, 0.0 }
0x1ad9   :  { %2763 = vadd.xlane.f32.xlu0 %v2762_v46 }
0x1ada   :  { %v2761_v0 = vmul.f32 %v2759_v63, %v2759_v63 }
0x1adc   :  { %v2765_v57 = vsel %vm304_vm4, %v2761_v0, 0.0 }
0x1add   :  { %2766 = vadd.xlane.f32.xlu1 %v2765_v57 }
0x1b62   :  { %v2764_v15 = vpop.xlane.xlu0 %2763 }
0x1b63   :  { %v2768_v16 = vmul.f32 0.03125, %v2764_v15 }
0x1b65   :  { %v2770_v17 = vadd.f32 1e-05, %v2768_v16 }
0x1b66   :  { %v2767_v18 = vpop.xlane.xlu1 %2766 }
0x1b67   :  { %v2769_v19 = vmul.f32 0.03125, %v2767_v18  ;;  %6620 = vrsqrt.f32 %v2770_v17 }
0x1b69   :  { %v2771_v21 = vadd.f32 1e-05, %v2769_v19 }
0x1b6b   :  { %6622 = vrsqrt.f32 %v2771_v21 }
0x1b74   :  { %v6621_v22 = vpop.eup %6620 }
0x1b75   :  { %v2774_v59 = vmul.f32 %v6621_v22, %v2758_v60 }
0x1b78   :  { %v6623_v24 = vpop.eup %6622 }
0x1b79   :  { %v2775_v26 = vmul.f32 %v6623_v24, %v2759_v63  ;;  %v3177_v24 = vld [vmem:[%s7967_s10 + $0x18] sm:$0xff] }
0x1b7b   :  { %v2784_v5 = vpack.c.bf16 %v2775_v26, %v2774_v59  ;;  %v3189_v59 = vpack.c.bf16 %v3177_v24, %v3176_v23  ;;  %v3174_v26 = vld [vmem:[%s7967_s10] sm:$0xff] }
0x1b7d   :  { %6254 = vmatmul.mubr.msk.bf16.vlgmr.msra.gmra.mxu1 %vm304_vm4, %v2784_v5  ;;  %v3188_v5 = vpack.c.bf16 %v3175_v30, %v3174_v26 }
0x1b7e   :  { %6267 = vmatprep.mubr.msk.bf16.mxu1 %vm6792_vm0, %v6791_v4 }
0x1c3d   :  { %v2824_v29 = vpop.f32.mrf.mxu1 }
0x1c3e   :  { %v3002_v62 = vpack.c.bf16 %v2824_v29, %v2824_v29 }
0x1c3f   :  { %v6255_v31 = vpop.f32.mrf.mxu1 }
0x1c40   :  { %v3008_v32 = vsel %vm894_vm14, %v3002_v62, 0 }
0x1c41   :  { %v2827_v25 = vpop.f32.mrf.mxu1  ;;  %6266 = vmatpush3.bf16.msra.mxu1 %v3008_v32 }
0x1c42   :  { %v2831_v33 = vpack.c.bf16 %v2827_v25, %v2824_v29  ;;  %v3003_v34 = vpack.c.bf16 %v2827_v25, %v2827_v25  ;;  %6277 = vmatprep.subr.bf16.mxu1 %v6791_v4 }
0x1c43   :  { %v6256_v36 = vpop.f32.mrf.mxu1 }
0x1c44   :  { %6262 = vmatmul.mubr.msk.bf16.vlgmr.msra.gmra.mxu0 %vm304_vm4, %v2831_v33  ;;  %v3054_v37 = vsel %vm894_vm14, %v3003_v34, 0 }
0x1c45   :  { %6272 = vmatpush3.bf16.msra.mxu0 %v3054_v37  ;;  %6273 = vmatprep.mubr.msk.bf16.mxu0 %vm6792_vm0, %v6791_v4 }
0x1c46   :  { %6285 = vmatprep.subr.bf16.mxu0 %v6791_v4 }
0x1d04   :  { %v2871_v39 = vpop.f32.mrf.mxu0 }
0x1d05   :  { %2880 = vrot.lane.b32.xlu0 %v2871_v39, %s6796_s13 }
0x1d06   :  { %v6263_v40 = vpop.f32.mrf.mxu0 }
0x1d08   :  { %v2874_v41 = vpop.f32.mrf.mxu0 }
0x1d09   :  { %2882 = vrot.lane.b32.xlu1 %v2874_v41, %s6796_s13 }
0x1d0a   :  { %v6264_v42 = vpop.f32.mrf.mxu0 }
0x1d0d   :  { %2951 = vperm.xlu1 %6517, %v2871_v39  }
0x1d11   :  { %2955 = vperm.xlu1 %6517, %v2874_v41  }
0x1d77   :  { %v2881_v43 = vpop.permute.xlu0 %2880 }
0x1d78   :  { %2886 = vxpose.xlu0.b32.start.end [1/1] (short) (narrow) %v2881_v43, 8 }
0x1d7b   :  { %v2883_v44 = vpop.permute.xlu1 %2882 }
0x1d7c   :  { %2918 = vxpose.xlu1.b32.start.end [1/1] (short) (narrow) %v2883_v44, 8 }
0x1d88   :  { %v2952_v47 = vpop.permute.xlu1 %2951 }
0x1d8c   :  { %v2956_v48 = vpop.permute.xlu1 %2955 }
0x1d9a   :  { %6519 = vset.pattern.permute.xlu1 %v6794_v2 }
0x1df4   :  { %v2902_v49 = vpop.trf.xlu0 }
0x1df5   :  { %v2961_v50 = vrot.slane %v2902_v49, %v7167_v20 }
0x1df7   :  { %v2966_v51 = vmul.f32 %v2961_v50, %v2952_v47 }
0x1df8   :  { %v2934_v52 = vpop.trf.xlu1 }
0x1df9   :  { %v2965_v53 = vrot.slane %v2934_v52, %v7167_v20  ;;  %vm2968_vm13 = vcmp.ge.f32.partialorder %v2966_v51, 0.0  ;;  %v2970_v54 = vmul.f32 0.01, %v2966_v51 }
0x1dfb   :  { %v2967_v55 = vmul.f32 %v2965_v53, %v2956_v48  ;;  %v2972_v56 = vsel %vm2968_vm13, %v2966_v51, %v2970_v54 }
0x1dfc   :  { %v2974_v35 = vsel %vm196_vm15, %v2972_v56, -9e+15 }
0x1dfd   :  { %v2976_v58 = vsel %vm862_vm5, %v2974_v35, -inf  ;;  %vm2969_vm9 = vcmp.ge.f32.partialorder %v2967_v55, 0.0  ;;  %v2971_v60 = vmul.f32 0.01, %v2967_v55 }
0x1dfe   :  { %2977 = vmax.xlane.f32.xlu0 %v2976_v58 }
0x1dff   :  { %v2973_v45 = vsel %vm2969_vm9, %v2967_v55, %v2971_v60 }
0x1e00   :  { %v2975_v61 = vsel %vm197_vm6, %v2973_v45, -9e+15 }
0x1e01   :  { %v2979_v38 = vsel %vm862_vm5, %v2975_v61, -inf }
0x1e02   :  { %2980 = vmax.xlane.f32.xlu1 %v2979_v38 }
0x1e87   :  { %v2978_v63 = vpop.xlane.xlu0 %2977 }
0x1e88   :  { %v2982_v46 = vsub.f32 %v2974_v35, %v2978_v63 }
0x1e8a   :  { %v2984_v0 = vmul.f32 1.442695, %v2982_v46 }
0x1e8b   :  { %v2981_v57 = vpop.xlane.xlu1 %2980 }
0x1e8c   :  { %6624 = vpow2.f32 %v2984_v0  ;;  %v2983_v3 = vsub.f32 %v2975_v61, %v2981_v57  ;;  %v5847_v61 = vld [vmem:[%s7018_s9] ss:$0 sm:$0xff]  ;;  %s6798_s9 = smov 112  }
0x1e8d   :  { %v3178_v57 = vld [vmem:[%s7968_s11] sm:$0xff] }
0x1e8e   :  { %v2986_v6 = vmul.f32 1.442695, %v2983_v3  ;;  %v3179_v3 = vld [vmem:[%s7968_s11 + $0x8] sm:$0xff] }
0x1e90   :  { %6626 = vpow2.f32 %v2986_v6  ;;  %v3235_v6 = vpack.c.bf16 %v3179_v3, %v3178_v57 }
0x1e99   :  { %v6625_v7 = vpop.eup %6624 }
0x1e9a   :  { %v2988_v9 = vsel %vm862_vm5, %v6625_v7, 0.0 }
0x1e9b   :  { %2989 = vadd.xlane.f32.xlu0 %v2988_v9 }
0x1e9d   :  { %v6627_v10 = vpop.eup %6626 }
0x1e9e   :  { %v2991_v11 = vsel %vm862_vm5, %v6627_v10, 0.0 }
0x1e9f   :  { %2992 = vadd.xlane.f32.xlu0 %v2991_v11 }
0x1f24   :  { %v2990_v12 = vpop.xlane.xlu0 %2989 }
0x1f25   :  { %6628 = vrcp.f32 %v2990_v12 }
0x1f28   :  { %v2993_v13 = vpop.xlane.xlu0 %2992 }
0x1f29   :  { %6630 = vrcp.f32 %v2993_v13 }
0x1f32   :  { %v6629_v14 = vpop.eup %6628 }
0x1f33   :  { %v2996_v15 = vmul.f32 %v6629_v14, %v6625_v7 }
0x1f35   :  { %v2998_v16 = vsel %vm196_vm15, %v2996_v15, 0.0 }
0x1f36   :  { %v6631_v17 = vpop.eup %6630  ;;  %v3000_v18 = vpack.c.bf16 %v2998_v16, %v2998_v16 }
0x1f37   :  { %v2997_v19 = vmul.f32 %v6631_v17, %v6627_v10 }
0x1f38   :  { %6268 = vmatmul.mubr.msk.bf16.vlgmr.msra.gmra.mxu1 %vm862_vm5, %v3000_v18 }
0x1f39   :  { %v2999_v21 = vsel %vm197_vm6, %v2997_v19, 0.0  ;;  %6281 = vmatprep.mubr.msk.bf16.mxu1 %vm6792_vm0, %v6791_v4  ;;  %6278 = vmatpush3.bf16.msra.mxu1 %v3189_v59 }
0x1f3a   :  { %v3001_v22 = vpack.c.bf16 %v2999_v21, %v2999_v21  ;;  %6279 = vmatprep.subr.bf16.mxu1 %v6791_v4 }
0x1f3c   :  { %6274 = vmatmul.mubr.msk.bf16.vlgmr.msra.gmra.mxu0 %vm862_vm5, %v3001_v22  ;;  %v5855_v22 = vld [vmem:[%s7954_s17] sm:$0xf]   ;;  %s7980_s17 = sld [smem:[#allocation33_spill]] }
0x1f3d   :  { %6289 = vmatprep.mubr.msk.bf16.mxu0 %vm6792_vm0, %v6791_v4  ;;  %6280 = vmatpush3.bf16.msra.mxu1 %v3188_v5  ;;  %v5856_v23 = vunpack.c.0.s8 %v5855_v22  ;;  %v5857_v59 = vunpack.c.1.s8 %v5855_v22 }
0x1f3e   :  { %6293 = vmatprep.subr.bf16.mxu1 %v6791_v4  ;;  %6286 = vmatpush3.bf16.msra.mxu0 %v3236_v28 }
0x1f3f   :  { %6287 = vmatprep.subr.bf16.mxu0 %v6791_v4  ;;  %v3106_v24 = vcvt.s32.f32 %v5856_v23  ;;  %v3107_v26 = vcvt.s32.f32 %v5857_v59 }
0x1f42   :  { %6288 = vmatpush3.bf16.msra.mxu0 %v3235_v6 }
0x1f43   :  { %6299 = vmatprep.subr.bf16.mxu0 %v6791_v4 }
0x1ff8   :  { %v3044_v29 = vpop.f32.mrf.mxu1 }
0x1ff9   :  { %vm3096_vm15 = vcmp.ge.f32.partialorder %v3044_v29, 0.0  ;;  %v3098_v62 = vmul.f32 0.01, %v3044_v29 }
0x1ffa   :  { %v6269_v31 = vpop.f32.mrf.mxu1 }
0x1ffb   :  { %v3100_v32 = vsel %vm3096_vm15, %v3044_v29, %v3098_v62 }
0x1ffc   :  { %v5578_v25 = vsel %vm304_vm4, %v3100_v32, 0.0  ;;  %v3047_v33 = vpop.f32.mrf.mxu1  ;;  %v3090_v34 = vpop.f32.mrf.mxu0 }
0x1ffd   :  { %v5579_v36 = vrot.slane %v5578_v25, 4  ;;  %vm3097_vm6 = vcmp.ge.f32.partialorder %v3090_v34, 0.0  ;;  %v3099_v37 = vmul.f32 0.01, %v3090_v34 }
0x1ffe   :  { %v6270_v39 = vpop.f32.mrf.mxu1  ;;  %v6275_v40 = vpop.f32.mrf.mxu0 }
0x1fff   :  { %v5580_v41 = vadd.f32 %v5579_v36, %v5578_v25  ;;  %v3101_v42 = vsel %vm3097_vm6, %v3090_v34, %v3099_v37 }
0x2000   :  { %v3187_v43 = vpack.c.bf16 %v3101_v42, %v3100_v32  ;;  %v5585_v44 = vsel %vm304_vm4, %v3101_v42, 0.0  ;;  %v3093_v47 = vpop.f32.mrf.mxu0 }
0x2001   :  { %v5581_v48 = vrot.slane %v5580_v41, 2  ;;  %v5586_v49 = vrot.slane %v5585_v44, 4 }
0x2002   :  { %v6276_v50 = vpop.f32.mrf.mxu0  ;;  %6282 = vmatmul.mubr.msk.bf16.vlgmr.msra.gmra.mxu1 %vm304_vm4, %v3187_v43 }
0x2003   :  { %v5582_v51 = vadd.f32 %v5581_v48, %v5580_v41  ;;  %v5587_v52 = vadd.f32 %v5586_v49, %v5585_v44  ;;  %6295 = vmatprep.mubr.msk.bf16.mxu1 %vm6792_vm0, %v6791_v4 }
0x2005   :  { %v5583_v53 = vrot.slane %v5582_v51, 1  ;;  %v5588_v54 = vrot.slane %v5587_v52, 2 }
0x2007   :  { %v5589_v55 = vadd.f32 %v5588_v54, %v5587_v52  ;;  %v5584_v56 = vadd.f32 %v5583_v53, %v5582_v51 }
0x2009   :  { %v5590_v35 = vrot.slane %v5589_v55, 1  ;;  %v5592_v60 = vmul.f32 0.125, %v5584_v56 }
0x200b   :  { %v5591_v58 = vadd.f32 %v5590_v35, %v5589_v55  ;;  %v5619_v63 = vmul.f32 %v5847_v61, %v5592_v60 }
0x200d   :  { %v5593_v45 = vmul.f32 0.125, %v5591_v58 }
0x200f   :  { %v5620_v38 = vmul.f32 %v5847_v61, %v5593_v45 }
0x2011   :  { %v5623_v46 = vrot.slane %v5620_v38, 7 }
0x2013   :  { %v7554_v0 = vsel %vm5624_vm2, %v5623_v46, %v5619_v63 }
0x20c2   :  { %v3227_v7 = vpop.f32.mrf.mxu1 }
0x20c3   :  { %v7559_v9 = vpack.c.bf16 %v3227_v7, %v3227_v7 }
0x20c4   :  { %v6283_v10 = vpop.f32.mrf.mxu1 }
0x20c5   :  { %v3411_v11 = vsel %vm894_vm14, %v7559_v9, 0 }
0x20c6   :  { %v3230_v12 = vpop.f32.mrf.mxu1  ;;  %6294 = vmatpush3.bf16.msra.mxu1 %v3411_v11 }
0x20c7   :  { %v3234_v13 = vpack.c.bf16 %v3230_v12, %v3227_v7  ;;  %v7563_v14 = vpack.c.bf16 %v3230_v12, %v3230_v12  ;;  %6305 = vmatprep.subr.bf16.mxu1 %v6791_v4 }
0x20c8   :  { %v6284_v15 = vpop.f32.mrf.mxu1 }
0x20c9   :  { %6290 = vmatmul.mubr.msk.bf16.vlgmr.msra.gmra.mxu0 %vm304_vm4, %v3234_v13  ;;  %v3457_v16 = vsel %vm894_vm14, %v7563_v14, 0 }
0x20ca   :  { %6300 = vmatpush3.bf16.msra.mxu0 %v3457_v16  ;;  %6301 = vmatprep.mubr.msk.bf16.mxu0 %vm6792_vm0, %v6791_v4 }
0x20cb   :  { %6311 = vmatprep.subr.bf16.mxu0 %v6791_v4 }
0x2189   :  { %v3274_v17 = vpop.f32.mrf.mxu0 }
0x218a   :  { %3283 = vrot.lane.b32.xlu0 %v3274_v17, %s6796_s13 }
0x218b   :  { %v6291_v18 = vpop.f32.mrf.mxu0 }
0x218d   :  { %v3277_v19 = vpop.f32.mrf.mxu0 }
0x218e   :  { %3285 = vrot.lane.b32.xlu1 %v3277_v19, %s6796_s13 }
0x218f   :  { %v6292_v21 = vpop.f32.mrf.mxu0 }
0x2192   :  { %3513 = vrot.lane.b32.xlu1 %v3274_v17, %s6795_s5 }
0x2196   :  { %3515 = vrot.lane.b32.xlu1 %v3277_v19, %s6795_s5 }
0x219a   :  { %3584 = vperm.xlu1 %6519, %v3274_v17  }
0x219e   :  { %6521 = vset.pattern.permute.xlu1 %v6793_v1 }
0x219f   :  { %3358 = vperm.xlu1 %6521, %v3277_v19  }
0x21a8   :  { %3108 = vxpose.xlu0.b32.start.end [1/1] (short) (narrow) %v3106_v24, 8 }
0x21ac   :  { %3140 = vxpose.xlu0.b32.start.end [1/1] (short) (narrow) %v3107_v26, 8 }
0x21d5   :  { %6520 = vset.pattern.permute.xlu0 %v6793_v1 }
0x21d6   :  { %3354 = vperm.xlu0 %6520, %v3274_v17  }
0x21da   :  { %6522 = vset.pattern.permute.xlu0 %v6794_v2 }
0x21db   :  { %3588 = vperm.xlu0 %6522, %v3277_v19  }
0x21fc   :  { %v3284_v30 = vpop.permute.xlu0 %3283 }
0x21fd   :  { %3289 = vxpose.xlu1.b32.start.end [1/1] (short) (narrow) %v3284_v30, 8 }
0x2200   :  { %v3286_v5 = vpop.permute.xlu1 %3285 }
0x2201   :  { %3321 = vxpose.xlu0.b32.start.end [1/1] (short) (narrow) %v3286_v5, 8 }
0x2204   :  { %v3514_v8 = vpop.permute.xlu1 %3513 }
0x2205   :  { %3519 = vxpose.xlu1.b32.start.end [1/1] (short) (narrow) %v3514_v8, 8 }
0x2208   :  { %v3516_v27 = vpop.permute.xlu1 %3515 }
0x2209   :  { %3551 = vxpose.xlu0.b32.start.end [1/1] (short) (narrow) %v3516_v27, 8 }
0x2215   :  { %v3585_v62 = vpop.permute.xlu1 %3584 }
0x221a   :  { %v3359_v32 = vpop.permute.xlu1 %3358 }
0x2223   :  { %6524 = vset.pattern.permute.xlu1 %v6794_v2 }
0x2224   :  { %v7582_v28 = vpop.trf.xlu0 }
0x2225   :  { %vm3172_vm7 = vcmp.gt.f32.partialorder %v7582_v28, 0.0 }
0x2228   :  { %v7584_v29 = vpop.trf.xlu0 }
0x2229   :  { %vm3173_vm10 = vcmp.gt.f32.partialorder %v7584_v29, 0.0 }
0x2232   :  { %6523 = vset.pattern.permute.xlu0 %v6793_v1 }
0x2251   :  { %v3355_v31 = vpop.permute.xlu0 %3354 }
0x2256   :  { %v3589_v25 = vpop.permute.xlu0 %3588 }
0x2279   :  { %v3305_v33 = vpop.trf.xlu1 }
0x227a   :  { %v3364_v34 = vrot.slane %v3305_v33, %v7167_v20 }
0x227c   :  { %v3369_v36 = vmul.f32 %v3364_v34, %v3355_v31 }
0x227d   :  { %v3337_v37 = vpop.trf.xlu0 }
0x227e   :  { %v3373_v39 = vmul.f32 0.01, %v3369_v36  ;;  %v3368_v40 = vrot.slane %v3337_v37, %v7167_v20  ;;  %vm3371_vm3 = vcmp.ge.f32.partialorder %v3369_v36, 0.0 }
0x2280   :  { %v3370_v41 = vmul.f32 %v3368_v40, %v3359_v32  ;;  %v3375_v42 = vsel %vm3371_vm3, %v3369_v36, %v3373_v39 }
0x2281   :  { %v3535_v43 = vpop.trf.xlu1  ;;  %v3377_v44 = vsel %vm3172_vm7, %v3375_v42, -9e+15 }
0x2282   :  { %v3374_v47 = vmul.f32 0.01, %v3370_v41  ;;  %v3594_v48 = vrot.slane %v3535_v43, %v7167_v20  ;;  %v3379_v49 = vsel %vm862_vm5, %v3377_v44, -inf  ;;  %vm3372_vm8 = vcmp.ge.f32.partialorder %v3370_v41, 0.0 }
0x2283   :  { %3380 = vmax.xlane.f32.xlu1 %v3379_v49 }
0x2284   :  { %v3599_v50 = vmul.f32 %v3594_v48, %v3585_v62  ;;  %v3376_v51 = vsel %vm3372_vm8, %v3370_v41, %v3374_v47 }
0x2285   :  { %v3567_v52 = vpop.trf.xlu0  ;;  %v3378_v53 = vsel %vm3173_vm10, %v3376_v51, -9e+15 }
0x2286   :  { %v3603_v54 = vmul.f32 0.01, %v3599_v50  ;;  %v3598_v55 = vrot.slane %v3567_v52, %v7167_v20  ;;  %v3382_v56 = vsel %vm862_vm5, %v3378_v53, -inf  ;;  %vm3601_vm11 = vcmp.ge.f32.partialorder %v3599_v50, 0.0  ;;  %v3182_v52 = vld [vmem:[%s7969_s15] sm:$0xff] }
0x2287   :  { %3383 = vmax.xlane.f32.xlu0 %v3382_v56  ;;  %v3185_v56 = vld [vmem:[%s7969_s15 + $0x18] sm:$0xff] }
0x2288   :  { %v3600_v35 = vmul.f32 %v3598_v55, %v3589_v25  ;;  %v3605_v58 = vsel %vm3601_vm11, %v3599_v50, %v3603_v54  ;;  %v3184_v55 = vld [vmem:[%s7969_s15 + $0x10] sm:$0xff] }
0x2289   :  { %v3607_v60 = vsel %vm3172_vm7, %v3605_v58, -9e+15 }
0x228a   :  { %v3604_v45 = vmul.f32 0.01, %v3600_v35  ;;  %v3609_v61 = vsel %vm862_vm5, %v3607_v60, -inf  ;;  %vm3602_vm12 = vcmp.ge.f32.partialorder %v3600_v35, 0.0 }
0x228b   :  { %3610 = vmax.xlane.f32.xlu1 %v3609_v61 }
0x228c   :  { %v3606_v38 = vsel %vm3602_vm12, %v3600_v35, %v3604_v45  ;;  %v3746_v35 = vpack.c.bf16 %v3185_v56, %v3184_v55 }
0x228d   :  { %v3608_v63 = vsel %vm3173_vm10, %v3606_v38, -9e+15 }
0x228e   :  { %v3612_v46 = vsel %vm862_vm5, %v3608_v63, -inf }
0x228f   :  { %3613 = vmax.xlane.f32.xlu1 %v3612_v46 }
0x230c   :  { %v3381_v57 = vpop.xlane.xlu1 %3380 }
0x230d   :  { %v3385_v3 = vsub.f32 %v3377_v44, %v3381_v57 }
0x230f   :  { %v3387_v6 = vmul.f32 1.442695, %v3385_v3 }
0x2310   :  { %v3384_v7 = vpop.xlane.xlu0 %3383 }
0x2311   :  { %6632 = vpow2.f32 %v3387_v6  ;;  %v3386_v10 = vsub.f32 %v3378_v53, %v3384_v7  ;;  %v3183_v53 = vld [vmem:[%s7969_s15 + $0x8] sm:$0xff] }
0x2312   :  { %v3512_v54 = vpack.c.bf16 %v3183_v53, %v3182_v52 }
0x2313   :  { %v3389_v11 = vmul.f32 1.442695, %v3386_v10 }
0x2314   :  { %v3611_v12 = vpop.xlane.xlu1 %3610 }
0x2315   :  { %6634 = vpow2.f32 %v3389_v11  ;;  %v3615_v13 = vsub.f32 %v3607_v60, %v3611_v12 }
0x2317   :  { %v3617_v15 = vmul.f32 1.442695, %v3615_v13 }
0x2318   :  { %v3614_v16 = vpop.xlane.xlu1 %3613 }
0x2319   :  { %6636 = vpow2.f32 %v3617_v15  ;;  %v3616_v17 = vsub.f32 %v3608_v63, %v3614_v16 }
0x231b   :  { %v3619_v18 = vmul.f32 1.442695, %v3616_v17 }
0x231d   :  { %6638 = vpow2.f32 %v3619_v18 }
0x231e   :  { %v6633_v19 = vpop.eup %6632 }
0x231f   :  { %v3391_v21 = vsel %vm862_vm5, %v6633_v19, 0.0 }
0x2320   :  { %3392 = vadd.xlane.f32.xlu0 %v3391_v21 }
0x2322   :  { %v6635_v22 = vpop.eup %6634 }
0x2323   :  { %v3394_v23 = vsel %vm862_vm5, %v6635_v22, 0.0 }
0x2324   :  { %3395 = vadd.xlane.f32.xlu1 %v3394_v23 }
0x2326   :  { %v6637_v24 = vpop.eup %6636 }
0x2327   :  { %v3621_v59 = vsel %vm862_vm5, %v6637_v24, 0.0 }
0x2328   :  { %3622 = vadd.xlane.f32.xlu0 %v3621_v59 }
0x232a   :  { %v6639_v26 = vpop.eup %6638 }
0x232b   :  { %v3624_v30 = vsel %vm862_vm5, %v6639_v26, 0.0 }
0x232c   :  { %3625 = vadd.xlane.f32.xlu1 %v3624_v30 }
0x233d   :  { %3685 = vrot.lane.b32.xlu1 %v7563_v14, %s6798_s9 }
0x233e   :  { %3636 = vrot.lane.b32.xlu0 %v7559_v9, %s6798_s9 }
0x23a9   :  { %v3393_v5 = vpop.xlane.xlu0 %3392 }
0x23aa   :  { %6640 = vrcp.f32 %v3393_v5 }
0x23ad   :  { %v3396_v8 = vpop.xlane.xlu1 %3395 }
0x23ae   :  { %6642 = vrcp.f32 %v3396_v8 }
0x23b1   :  { %v3623_v27 = vpop.xlane.xlu0 %3622 }
0x23b2   :  { %6644 = vrcp.f32 %v3623_v27 }
0x23b5   :  { %v3626_v62 = vpop.xlane.xlu1 %3625  ;;  %v3637_v25 = vpop.permute.xlu0 %3636 }
0x23b6   :  { %6646 = vrcp.f32 %v3626_v62  ;;  %v3642_v37 = vsel %vm894_vm14, %v3637_v25, 0 }
0x23b7   :  { %v6641_v31 = vpop.eup %6640 }
0x23b8   :  { %v3399_v32 = vmul.f32 %v6641_v31, %v6633_v19 }
0x23b9   :  { %v3686_v9 = vpop.permute.xlu1 %3685 }
0x23ba   :  { %v3401_v33 = vsel %vm3172_vm7, %v3399_v32, 0.0  ;;  %v3691_v43 = vsel %vm894_vm14, %v3686_v9, 0 }
0x23bb   :  { %v6643_v34 = vpop.eup %6642  ;;  %v3403_v36 = vpack.c.bf16 %v3401_v33, %v3401_v33 }
0x23bc   :  { %v3400_v14 = vmul.f32 %v6643_v34, %v6635_v22 }
0x23bd   :  { %6296 = vmatmul.mubr.msk.bf16.vlgmr.msra.gmra.mxu1 %vm862_vm5, %v3403_v36 }
0x23be   :  { %6306 = vmatpush3.bf16.msra.mxu1 %v3642_v37  ;;  %v3402_v39 = vsel %vm3173_vm10, %v3400_v14, 0.0  ;;  %6307 = vmatprep.mubr.msk.bf16.mxu1 %vm6792_vm0, %v6791_v4 }
0x23bf   :  { %v6645_v40 = vpop.eup %6644  ;;  %v3404_v41 = vpack.c.bf16 %v3402_v39, %v3402_v39  ;;  %6317 = vmatprep.subr.bf16.mxu1 %v6791_v4 }
0x23c0   :  { %v3629_v42 = vmul.f32 %v6645_v40, %v6637_v24 }
0x23c1   :  { %6302 = vmatmul.mubr.msk.bf16.vlgmr.msra.gmra.mxu0 %vm862_vm5, %v3404_v41  ;;  %v5816_v41 = vld [vmem:[%s7970_s16] ss:$0 sm:$0xff] }
0x23c2   :  { %6312 = vmatpush3.bf16.msra.mxu0 %v3691_v43  ;;  %v3631_v44 = vsel %vm3172_vm7, %v3629_v42, 0.0  ;;  %6313 = vmatprep.mubr.msk.bf16.mxu0 %vm6792_vm0, %v6791_v4 }
0x23c3   :  { %v6647_v47 = vpop.eup %6646  ;;  %v3633_v48 = vpack.c.bf16 %v3631_v44, %v3631_v44  ;;  %6323 = vmatprep.subr.bf16.mxu0 %v6791_v4 }
0x23c4   :  { %v3630_v49 = vmul.f32 %v6647_v47, %v6639_v26 }
0x23c5   :  { %6308 = vmatmul.mubr.msk.bf16.vlgmr.msra.gmra.mxu1 %vm862_vm5, %v3633_v48 }
0x23c6   :  { %v3632_v50 = vsel %vm3173_vm10, %v3630_v49, 0.0  ;;  %6319 = vmatprep.mubr.msk.bf16.mxu1 %vm6792_vm0, %v6791_v4  ;;  %6318 = vmatpush3.bf16.msra.mxu1 %v3746_v35 }
0x23c7   :  { %v3634_v51 = vpack.c.bf16 %v3632_v50, %v3632_v50  ;;  %6329 = vmatprep.subr.bf16.mxu1 %v6791_v4 }
0x23c9   :  { %6314 = vmatmul.mubr.msk.bf16.vlgmr.msra.gmra.mxu0 %vm862_vm5, %v3634_v51 }
0x23ca   :  { %6325 = vmatprep.mubr.msk.bf16.mxu0 %vm6792_vm0, %v6791_v4  ;;  %6324 = vmatpush3.bf16.msra.mxu0 %v3512_v54 }
0x23cb   :  { %6335 = vmatprep.subr.bf16.mxu0 %v6791_v4 }
0x247d   :  { %v3447_v58 = vpop.f32.mrf.mxu1 }
0x247e   :  { %v3501_v60 = vmin.f32 %v3447_v58, 0.0  ;;  %vm3499_vm13 = vcmp.gt.f32.partialorder %v3447_v58, 0.0 }
0x247f   :  { %v6297_v45 = vpop.f32.mrf.mxu1 }
0x2480   :  { %v3503_v61 = vmul.f32 1.442695, %v3501_v60 }
0x2481   :  { %v3450_v38 = vpop.f32.mrf.mxu1  ;;  %v3493_v63 = vpop.f32.mrf.mxu0 }
0x2482   :  { %6648 = vpow2.f32 %v3503_v61  ;;  %v3502_v46 = vmin.f32 %v3493_v63, 0.0  ;;  %vm3500_vm9 = vcmp.gt.f32.partialorder %v3493_v63, 0.0 }
0x2483   :  { %v6298_v57 = vpop.f32.mrf.mxu1  ;;  %v6303_v3 = vpop.f32.mrf.mxu0 }
0x2484   :  { %v3505_v6 = vmul.f32 1.442695, %v3502_v46  ;;  %v3870_v46 = vld [vmem:[%s7971_s18] sm:$0xff]  ;;  %v3871_v57 = vld [vmem:[%s7971_s18 + $0x8] sm:$0xff] }
0x2485   :  { %v3496_v7 = vpop.f32.mrf.mxu0  ;;  %v3678_v10 = vpop.f32.mrf.mxu1  ;;  %v3882_v3 = vpack.c.bf16 %v3871_v57, %v3870_v46 }
0x2486   :  { %6650 = vpow2.f32 %v3505_v6  ;;  %v3735_v11 = vmin.f32 %v3678_v10, 0.0  ;;  %vm3733_vm15 = vcmp.gt.f32.partialorder %v3678_v10, 0.0  ;;  %v3874_v6 = vld [vmem:[%s7972_s22 + $0x10] sm:$0xff]  ;;  %v3875_v7 = vld [vmem:[%s7972_s22 + $0x18] sm:$0xff] }
0x2487   :  { %v6304_v12 = vpop.f32.mrf.mxu0  ;;  %v6309_v13 = vpop.f32.mrf.mxu1 }
0x2488   :  { %v3737_v15 = vmul.f32 1.442695, %v3735_v11 }
0x2489   :  { %v3681_v16 = vpop.f32.mrf.mxu1  ;;  %v3727_v17 = vpop.f32.mrf.mxu0 }
0x248a   :  { %6652 = vpow2.f32 %v3737_v15  ;;  %v3736_v18 = vmin.f32 %v3727_v17, 0.0  ;;  %vm3734_vm6 = vcmp.gt.f32.partialorder %v3727_v17, 0.0 }
0x248b   :  { %v6310_v19 = vpop.f32.mrf.mxu1  ;;  %v6315_v21 = vpop.f32.mrf.mxu0 }
0x248c   :  { %v3739_v22 = vmul.f32 1.442695, %v3736_v18 }
0x248d   :  { %v3730_v23 = vpop.f32.mrf.mxu0 }
0x248e   :  { %6654 = vpow2.f32 %v3739_v22 }
0x248f   :  { %v6649_v24 = vpop.eup %6648  ;;  %v6316_v59 = vpop.f32.mrf.mxu0 }
0x2490   :  { %v5808_v26 = vadd.f32 -1.0, %v6649_v24  ;;  %v3872_v24 = vld [vmem:[%s7972_s22] sm:$0xff]  ;;  %v3873_v59 = vld [vmem:[%s7972_s22 + $0x8] sm:$0xff] }
0x2492   :  { %v3509_v8 = vsel %vm3499_vm13, %v3447_v58, %v5808_v26  ;;  %v3928_v26 = vpack.c.bf16 %v3873_v59, %v3872_v24 }
0x2493   :  { %v6651_v30 = vpop.eup %6650 }
0x2494   :  { %v5809_v5 = vadd.f32 -1.0, %v6651_v30 }
0x2496   :  { %v3510_v27 = vsel %vm3500_vm9, %v3493_v63, %v5809_v5 }
0x2497   :  { %v6653_v62 = vpop.eup %6652  ;;  %v3511_v31 = vpack.c.bf16 %v3510_v27, %v3509_v8 }
0x2498   :  { %v5812_v32 = vadd.f32 -1.0, %v6653_v62 }
0x2499   :  { %6326 = vmatmul.mubr.msk.bf16.vlgmr.msra.gmra.mxu0 %vm244_vm1, %v3511_v31 }
0x249a   :  { %6339 = vmatprep.mubr.msk.bf16.mxu0 %vm6792_vm0, %v6791_v4  ;;  %v3743_v34 = vsel %vm3733_vm15, %v3678_v10, %v5812_v32  ;;  %v3929_v10 = vpack.c.bf16 %v3875_v7, %v3874_v6 }
0x249b   :  { %v6655_v25 = vpop.eup %6654 }
0x249c   :  { %v5813_v33 = vadd.f32 -1.0, %v6655_v25  ;;  %6336 = vmatpush3.bf16.msra.mxu0 %v3929_v10 }
0x249d   :  { %6337 = vmatprep.subr.bf16.mxu0 %v6791_v4 }
0x249e   :  { %v3744_v36 = vsel %vm3734_vm6, %v3727_v17, %v5813_v33 }
0x249f   :  { %v3745_v14 = vpack.c.bf16 %v3744_v36, %v3743_v34 }
0x24a0   :  { %6338 = vmatpush3.bf16.msra.mxu0 %v3928_v26 }
0x24a1   :  { %6320 = vmatmul.mubr.msk.bf16.vlgmr.msra.gmra.mxu1 %vm244_vm1, %v3745_v14  ;;  %6349 = vmatprep.subr.bf16.mxu0 %v6791_v4 }
0x24a2   :  { %6331 = vmatprep.mubr.msk.bf16.mxu1 %vm6792_vm0, %v6791_v4  ;;  %6330 = vmatpush3.bf16.msra.mxu1 %v3882_v3 }
0x24a3   :  { %6343 = vmatprep.subr.bf16.mxu1 %v6791_v4 }
0x2559   :  { %v3828_v37 = vpop.f32.mrf.mxu0 }
0x255b   :  { %v6327_v9 = vpop.f32.mrf.mxu0 }
0x255d   :  { %v3831_v39 = vpop.f32.mrf.mxu0 }
0x255f   :  { %v6328_v40 = vpop.f32.mrf.mxu0 }
0x2561   :  { %v3784_v42 = vpop.f32.mrf.mxu1 }
0x2562   :  { %v3829_v43 = vadd.f32 %v3828_v37, %v3784_v42 }
0x2563   :  { %v6321_v44 = vpop.f32.mrf.mxu1 }
0x2564   :  { %v3841_v47 = vadd.f32 %v5816_v41, %v3829_v43 }
0x2565   :  { %v3787_v48 = vpop.f32.mrf.mxu1 }
0x2566   :  { %v3832_v49 = vadd.f32 %v3831_v39, %v3787_v48  ;;  %v3843_v50 = vsel %vm244_vm1, %v3841_v47, 0.0 }
0x2567   :  { %v6322_v51 = vpop.f32.mrf.mxu1  ;;  %3844 = vadd.xlane.f32.xlu1 %v3843_v50 }
0x2568   :  { %v3842_v52 = vadd.f32 %v5816_v41, %v3832_v49 }
0x256a   :  { %v3846_v53 = vsel %vm244_vm1, %v3842_v52, 0.0 }
0x256b   :  { %3847 = vadd.xlane.f32.xlu0 %v3846_v53 }
0x25f0   :  { %v3845_v54 = vpop.xlane.xlu1 %3844 }
0x25f1   :  { %v3850_v55 = vmul.f32 0.0625, %v3845_v54 }
0x25f3   :  { %v3852_v56 = vsub.f32 %v3841_v47, %v3850_v55 }
0x25f4   :  { %v3848_v35 = vpop.xlane.xlu0 %3847 }
0x25f5   :  { %v3851_v58 = vmul.f32 0.0625, %v3848_v35  ;;  %v3854_v60 = vmul.f32 %v3852_v56, %v3852_v56 }
0x25f7   :  { %v3853_v45 = vsub.f32 %v3842_v52, %v3851_v58  ;;  %v3856_v61 = vsel %vm244_vm1, %v3854_v60, 0.0 }
0x25f8   :  { %3857 = vadd.xlane.f32.xlu0 %v3856_v61 }
0x25f9   :  { %v3855_v38 = vmul.f32 %v3853_v45, %v3853_v45 }
0x25fb   :  { %v3859_v63 = vsel %vm244_vm1, %v3855_v38, 0.0 }
0x25fc   :  { %3860 = vadd.xlane.f32.xlu1 %v3859_v63 }
0x2681   :  { %v3858_v11 = vpop.xlane.xlu0 %3857 }
0x2682   :  { %v3862_v12 = vmul.f32 0.0625, %v3858_v11 }
0x2684   :  { %v3864_v13 = vadd.f32 1e-05, %v3862_v12 }
0x2685   :  { %v3861_v15 = vpop.xlane.xlu1 %3860 }
0x2686   :  { %v3863_v16 = vmul.f32 0.0625, %v3861_v15  ;;  %6656 = vrsqrt.f32 %v3864_v13 }
0x2688   :  { %v3865_v17 = vadd.f32 1e-05, %v3863_v16 }
0x268a   :  { %6658 = vrsqrt.f32 %v3865_v17 }
0x2693   :  { %v6657_v18 = vpop.eup %6656 }
0x2694   :  { %v7659_v21 = vmul.f32 %v6657_v18, %v3852_v56 }
0x2697   :  { %v6659_v19 = vpop.eup %6658 }
0x2698   :  { %v7661_v22 = vmul.f32 %v6659_v19, %v3853_v45 }
0x269a   :  { %v3881_v23 = vpack.c.bf16 %v7661_v22, %v7659_v21 }
0x269c   :  { %6332 = vmatmul.mubr.msk.bf16.vlgmr.msra.gmra.mxu1 %vm244_vm1, %v3881_v23 }
0x269d   :  { %6345 = vmatprep.mubr.msk.bf16.mxu1 %vm6792_vm0, %v6791_v4 }
0x275c   :  { %v3920_v30 = vpop.f32.mrf.mxu1 }
0x275d   :  { %v7671_v5 = vpack.c.bf16 %v3920_v30, %v3920_v30 }
0x275e   :  { %v6333_v8 = vpop.f32.mrf.mxu1 }
0x275f   :  { %v4104_v27 = vsel %vm894_vm14, %v7671_v5, 0 }
0x2760   :  { %v3923_v62 = vpop.f32.mrf.mxu1  ;;  %6344 = vmatpush3.bf16.msra.mxu1 %v4104_v27 }
0x2761   :  { %v3927_v31 = vpack.c.bf16 %v3923_v62, %v3920_v30  ;;  %v7675_v32 = vpack.c.bf16 %v3923_v62, %v3923_v62  ;;  %6355 = vmatprep.subr.bf16.mxu1 %v6791_v4 }
0x2762   :  { %v6334_v25 = vpop.f32.mrf.mxu1 }
0x2763   :  { %6340 = vmatmul.mubr.msk.bf16.vlgmr.msra.gmra.mxu0 %vm304_vm4, %v3927_v31  ;;  %v4150_v33 = vsel %vm894_vm14, %v7675_v32, 0 }
0x2764   :  { %6350 = vmatpush3.bf16.msra.mxu0 %v4150_v33  ;;  %6351 = vmatprep.mubr.msk.bf16.mxu0 %vm6792_vm0, %v6791_v4 }
0x2765   :  { %6361 = vmatprep.subr.bf16.mxu0 %v6791_v4 }
0x2823   :  { %v3967_v34 = vpop.f32.mrf.mxu0 }
0x2824   :  { %3976 = vrot.lane.b32.xlu0 %v3967_v34, %s6796_s13 }
0x2825   :  { %v6341_v36 = vpop.f32.mrf.mxu0 }
0x2827   :  { %v3970_v14 = vpop.f32.mrf.mxu0 }
0x2828   :  { %4047 = vperm.xlu0 %6523, %v3967_v34   ;;  %3978 = vrot.lane.b32.xlu1 %v3970_v14, %s6796_s13 }
0x2829   :  { %v6342_v37 = vpop.f32.mrf.mxu0 }
0x282c   :  { %6526 = vset.pattern.permute.xlu0 %v6794_v2  ;;  %4206 = vrot.lane.b32.xlu1 %v3967_v34, %s6795_s5 }
0x282d   :  { %4281 = vperm.xlu0 %6526, %v3970_v14  }
0x2830   :  { %4208 = vrot.lane.b32.xlu1 %v3970_v14, %s6795_s5 }
0x2834   :  { %4277 = vperm.xlu1 %6524, %v3967_v34  }
0x2838   :  { %6525 = vset.pattern.permute.xlu1 %v6793_v1 }
0x2839   :  { %4051 = vperm.xlu1 %6525, %v3970_v14  }
0x2896   :  { %v3977_v9 = vpop.permute.xlu0 %3976 }
0x2897   :  { %3982 = vxpose.xlu1.b32.start.end [1/1] (short) (narrow) %v3977_v9, 8 }
0x289a   :  { %v3979_v39 = vpop.permute.xlu1 %3978 }
0x289e   :  { %v4207_v40 = vpop.permute.xlu1 %4206 }
0x289f   :  { %4212 = vxpose.xlu0.b32.start.end [1/1] (short) (narrow) %v4207_v40, 8 }
0x28a2   :  { %v4209_v41 = vpop.permute.xlu1 %4208 }
0x28a3   :  { %4014 = vxpose.xlu0.b32.start.end [1/1] (short) (narrow) %v3979_v39, 8  ;;  %v4048_v44 = vpop.permute.xlu0 %4047 }
0x28a7   :  { %4244 = vxpose.xlu0.b32.start.end [1/1] (short) (narrow) %v4209_v41, 8 }
0x28a8   :  { %v4282_v50 = vpop.permute.xlu0 %4281 }
0x28af   :  { %v4278_v42 = vpop.permute.xlu1 %4277 }
0x28b4   :  { %v4052_v43 = vpop.permute.xlu1 %4051 }
0x28b5   :  { %6528 = vset.pattern.permute.xlu1 %v6794_v2 }
0x28d0   :  { %6527 = vset.pattern.permute.xlu0 %v6793_v1 }
0x2913   :  { %v3998_v47 = vpop.trf.xlu1 }
0x2914   :  { %v4057_v48 = vrot.slane %v3998_v47, %v7167_v20 }
0x2916   :  { %v4062_v49 = vmul.f32 %v4057_v48, %v4048_v44 }
0x2918   :  { %v4066_v51 = vmul.f32 0.01, %v4062_v49  ;;  %vm4064_vm3 = vcmp.ge.f32.partialorder %v4062_v49, 0.0 }
0x291a   :  { %v4068_v52 = vsel %vm4064_vm3, %v4062_v49, %v4066_v51 }
0x291b   :  { %v4228_v53 = vpop.trf.xlu0  ;;  %v4070_v54 = vsel %vm3172_vm7, %v4068_v52, -9e+15 }
0x291c   :  { %v4287_v55 = vrot.slane %v4228_v53, %v7167_v20  ;;  %v4072_v56 = vsel %vm862_vm5, %v4070_v54, -inf }
0x291d   :  { %4073 = vmax.xlane.f32.xlu1 %v4072_v56 }
0x291e   :  { %v4292_v35 = vmul.f32 %v4287_v55, %v4278_v42 }
0x291f   :  { %v4030_v58 = vpop.trf.xlu0 }
0x2920   :  { %v4296_v60 = vmul.f32 0.01, %v4292_v35  ;;  %v4061_v45 = vrot.slane %v4030_v58, %v7167_v20  ;;  %vm4294_vm8 = vcmp.ge.f32.partialorder %v4292_v35, 0.0 }
0x2922   :  { %v4063_v61 = vmul.f32 %v4061_v45, %v4052_v43  ;;  %v4298_v38 = vsel %vm4294_vm8, %v4292_v35, %v4296_v60 }
0x2923   :  { %v4260_v63 = vpop.trf.xlu0  ;;  %v4300_v46 = vsel %vm3172_vm7, %v4298_v38, -9e+15 }
0x2924   :  { %v4067_v57 = vmul.f32 0.01, %v4063_v61  ;;  %v4291_v3 = vrot.slane %v4260_v63, %v7167_v20  ;;  %v4302_v6 = vsel %vm862_vm5, %v4300_v46, -inf  ;;  %vm4065_vm11 = vcmp.ge.f32.partialorder %v4063_v61, 0.0 }
0x2925   :  { %4303 = vmax.xlane.f32.xlu1 %v4302_v6 }
0x2926   :  { %v4293_v7 = vmul.f32 %v4291_v3, %v4282_v50  ;;  %v4069_v10 = vsel %vm4065_vm11, %v4063_v61, %v4067_v57  ;;  %v3876_v57 = vld [vmem:[%s7973_s23] sm:$0xff]  ;;  %v3877_v3 = vld [vmem:[%s7973_s23 + $0x8] sm:$0xff] }
0x2927   :  { %v4071_v11 = vsel %vm3173_vm10, %v4069_v10, -9e+15  ;;  %v4205_v6 = vpack.c.bf16 %v3877_v3, %v3876_v57  ;;  %v3879_v10 = vld [vmem:[%s7973_s23 + $0x18] sm:$0xff] }
0x2928   :  { %v4297_v12 = vmul.f32 0.01, %v4293_v7  ;;  %v4075_v13 = vsel %vm862_vm5, %v4071_v11, -inf  ;;  %vm4295_vm12 = vcmp.ge.f32.partialorder %v4293_v7, 0.0 }
0x2929   :  { %4076 = vmax.xlane.f32.xlu0 %v4075_v13 }
0x292a   :  { %v4299_v15 = vsel %vm4295_vm12, %v4293_v7, %v4297_v12  ;;  %v3878_v7 = vld [vmem:[%s7973_s23 + $0x10] sm:$0xff] }
0x292b   :  { %v4301_v16 = vsel %vm3173_vm10, %v4299_v15, -9e+15 }
0x292c   :  { %v4305_v17 = vsel %vm862_vm5, %v4301_v16, -inf }
0x292d   :  { %4306 = vmax.xlane.f32.xlu1 %v4305_v17 }
0x29a6   :  { %v4074_v18 = vpop.xlane.xlu1 %4073 }
0x29a7   :  { %v4078_v19 = vsub.f32 %v4070_v54, %v4074_v18 }
0x29a9   :  { %v4080_v23 = vmul.f32 1.442695, %v4078_v19 }
0x29ab   :  { %6660 = vpow2.f32 %v4080_v23 }
0x29ae   :  { %v4304_v24 = vpop.xlane.xlu1 %4303 }
0x29af   :  { %v4308_v59 = vsub.f32 %v4300_v46, %v4304_v24 }
0x29b1   :  { %v4310_v26 = vmul.f32 1.442695, %v4308_v59 }
0x29b2   :  { %v4077_v30 = vpop.xlane.xlu0 %4076 }
0x29b3   :  { %6662 = vpow2.f32 %v4310_v26  ;;  %v4079_v8 = vsub.f32 %v4071_v11, %v4077_v30  ;;  %v4439_v11 = vpack.c.bf16 %v3879_v10, %v3878_v7 }
0x29b5   :  { %v4082_v27 = vmul.f32 1.442695, %v4079_v8 }
0x29b6   :  { %v4307_v62 = vpop.xlane.xlu1 %4306 }
0x29b7   :  { %6664 = vpow2.f32 %v4082_v27  ;;  %v4309_v31 = vsub.f32 %v4301_v16, %v4307_v62 }
0x29b8   :  { %v6661_v25 = vpop.eup %6660 }
0x29b9   :  { %v4312_v33 = vmul.f32 1.442695, %v4309_v31  ;;  %v4084_v34 = vsel %vm862_vm5, %v6661_v25, 0.0 }
0x29ba   :  { %4085 = vadd.xlane.f32.xlu0 %v4084_v34 }
0x29bb   :  { %6666 = vpow2.f32 %v4312_v33 }
0x29c0   :  { %v6663_v36 = vpop.eup %6662 }
0x29c1   :  { %v4314_v14 = vsel %vm862_vm5, %v6663_v36, 0.0 }
0x29c2   :  { %4315 = vadd.xlane.f32.xlu0 %v4314_v14 }
0x29c4   :  { %v6665_v37 = vpop.eup %6664 }
0x29c5   :  { %v4087_v9 = vsel %vm862_vm5, %v6665_v37, 0.0 }
0x29c6   :  { %4088 = vadd.xlane.f32.xlu1 %v4087_v9 }
0x29c8   :  { %v6667_v39 = vpop.eup %6666 }
0x29c9   :  { %v4317_v40 = vsel %vm862_vm5, %v6667_v39, 0.0 }
0x29ca   :  { %4318 = vadd.xlane.f32.xlu1 %v4317_v40 }
0x29d8   :  { %4329 = vrot.lane.b32.xlu0 %v7671_v5, %s6798_s9 }
0x29db   :  { %4378 = vrot.lane.b32.xlu1 %v7675_v32, %s6798_s9 }
0x2a43   :  { %v4086_v41 = vpop.xlane.xlu0 %4085 }
0x2a44   :  { %6668 = vrcp.f32 %v4086_v41 }
0x2a4b   :  { %v4316_v42 = vpop.xlane.xlu0 %4315 }
0x2a4c   :  { %6670 = vrcp.f32 %v4316_v42 }
0x2a4f   :  { %v4089_v43 = vpop.xlane.xlu1 %4088  ;;  %v4330_v49 = vpop.permute.xlu0 %4329 }
0x2a50   :  { %6672 = vrcp.f32 %v4089_v43  ;;  %v4335_v5 = vsel %vm894_vm14, %v4330_v49, 0 }
0x2a51   :  { %v6669_v44 = vpop.eup %6668 }
0x2a52   :  { %v4092_v47 = vmul.f32 %v6669_v44, %v6661_v25 }
0x2a53   :  { %v4319_v48 = vpop.xlane.xlu1 %4318 }
0x2a54   :  { %6674 = vrcp.f32 %v4319_v48  ;;  %v4094_v50 = vsel %vm3172_vm7, %v4092_v47, 0.0 }
0x2a55   :  { %v4096_v51 = vpack.c.bf16 %v4094_v50, %v4094_v50 }
0x2a57   :  { %6346 = vmatmul.mubr.msk.bf16.vlgmr.msra.gmra.mxu1 %vm862_vm5, %v4096_v51  ;;  %v4379_v35 = vpop.permute.xlu1 %4378 }
0x2a58   :  { %6356 = vmatpush3.bf16.msra.mxu1 %v4335_v5  ;;  %6357 = vmatprep.mubr.msk.bf16.mxu1 %vm6792_vm0, %v6791_v4  ;;  %v4384_v38 = vsel %vm894_vm14, %v4379_v35, 0 }
0x2a59   :  { %v6671_v32 = vpop.eup %6670  ;;  %6367 = vmatprep.subr.bf16.mxu1 %v6791_v4 }
0x2a5a   :  { %v4322_v52 = vmul.f32 %v6671_v32, %v6663_v36 }
0x2a5c   :  { %v4324_v53 = vsel %vm3172_vm7, %v4322_v52, 0.0 }
0x2a5d   :  { %v6673_v54 = vpop.eup %6672  ;;  %v4326_v55 = vpack.c.bf16 %v4324_v53, %v4324_v53 }
0x2a5e   :  { %v4093_v56 = vmul.f32 %v6673_v54, %v6665_v37 }
0x2a5f   :  { %6358 = vmatmul.mubr.msk.bf16.vlgmr.msra.gmra.mxu1 %vm862_vm5, %v4326_v55 }
0x2a60   :  { %v4095_v58 = vsel %vm3173_vm10, %v4093_v56, 0.0  ;;  %6369 = vmatprep.mubr.msk.bf16.mxu1 %vm6792_vm0, %v6791_v4  ;;  %6368 = vmatpush3.bf16.msra.mxu1 %v4439_v11 }
0x2a61   :  { %v6675_v60 = vpop.eup %6674  ;;  %v4097_v45 = vpack.c.bf16 %v4095_v58, %v4095_v58  ;;  %6379 = vmatprep.subr.bf16.mxu1 %v6791_v4  ;;  %v5829_v58 = vld [vmem:[%s7974_s26] ss:$0 sm:$0xff] }
0x2a62   :  { %v4323_v61 = vmul.f32 %v6675_v60, %v6667_v39 }
0x2a63   :  { %6352 = vmatmul.mubr.msk.bf16.vlgmr.msra.gmra.mxu0 %vm862_vm5, %v4097_v45 }
0x2a64   :  { %6362 = vmatpush3.bf16.msra.mxu0 %v4384_v38  ;;  %6363 = vmatprep.mubr.msk.bf16.mxu0 %vm6792_vm0, %v6791_v4  ;;  %v4325_v63 = vsel %vm3173_vm10, %v4323_v61, 0.0 }
0x2a65   :  { %6373 = vmatprep.subr.bf16.mxu0 %v6791_v4  ;;  %v4327_v46 = vpack.c.bf16 %v4325_v63, %v4325_v63 }
0x2a6b   :  { %6364 = vmatmul.mubr.msk.bf16.vlgmr.msra.gmra.mxu0 %vm862_vm5, %v4327_v46 }
0x2a6c   :  { %6375 = vmatprep.mubr.msk.bf16.mxu0 %vm6792_vm0, %v6791_v4  ;;  %6374 = vmatpush3.bf16.msra.mxu0 %v4205_v6 }
0x2a6d   :  { %6385 = vmatprep.subr.bf16.mxu0 %v6791_v4 }
0x2b17   :  { %v4140_v12 = vpop.f32.mrf.mxu1 }
0x2b18   :  { %v4194_v16 = vmin.f32 %v4140_v12, 0.0  ;;  %vm4192_vm13 = vcmp.gt.f32.partialorder %v4140_v12, 0.0 }
0x2b19   :  { %v6347_v13 = vpop.f32.mrf.mxu1 }
0x2b1a   :  { %v4196_v19 = vmul.f32 1.442695, %v4194_v16 }
0x2b1b   :  { %v4143_v15 = vpop.f32.mrf.mxu1 }
0x2b1c   :  { %6676 = vpow2.f32 %v4196_v19 }
0x2b1d   :  { %v6348_v17 = vpop.f32.mrf.mxu1 }
0x2b1f   :  { %v4371_v18 = vpop.f32.mrf.mxu1 }
0x2b20   :  { %v4428_v26 = vmin.f32 %v4371_v18, 0.0  ;;  %vm4426_vm15 = vcmp.gt.f32.partialorder %v4371_v18, 0.0 }
0x2b21   :  { %v6359_v23 = vpop.f32.mrf.mxu1 }
0x2b22   :  { %v4430_v25 = vmul.f32 1.442695, %v4428_v26 }
0x2b23   :  { %v4186_v24 = vpop.f32.mrf.mxu0  ;;  %v4374_v59 = vpop.f32.mrf.mxu1 }
0x2b24   :  { %v4195_v30 = vmin.f32 %v4186_v24, 0.0  ;;  %vm4193_vm9 = vcmp.gt.f32.partialorder %v4186_v24, 0.0  ;;  %v4565_v59 = vld [vmem:[%s7975_s1 + $0x8] sm:$0xff] }
0x2b25   :  { %v6353_v8 = vpop.f32.mrf.mxu0  ;;  %v6360_v27 = vpop.f32.mrf.mxu1 }
0x2b26   :  { %v4198_v62 = vmul.f32 1.442695, %v4195_v30  ;;  %v4568_v30 = vld [vmem:[%s7976_s28 + $0x10] sm:$0xff]  ;;  %v4569_v8 = vld [vmem:[%s7976_s28 + $0x18] sm:$0xff] }
0x2b27   :  { %v4189_v31 = vpop.f32.mrf.mxu0  ;;  %v4623_v27 = vpack.c.bf16 %v4569_v8, %v4568_v30 }
0x2b28   :  { %6678 = vpow2.f32 %v4198_v62 }
0x2b29   :  { %v6354_v33 = vpop.f32.mrf.mxu0  ;;  %6680 = vpow2.f32 %v4430_v25  ;;  %v6677_v39 = vpop.eup %6676 }
0x2b2a   :  { %v5821_v41 = vadd.f32 -1.0, %v6677_v39 }
0x2b2b   :  { %v4420_v34 = vpop.f32.mrf.mxu0 }
0x2b2c   :  { %v4429_v36 = vmin.f32 %v4420_v34, 0.0  ;;  %v4202_v44 = vsel %vm4192_vm13, %v4140_v12, %v5821_v41  ;;  %vm4427_vm6 = vcmp.gt.f32.partialorder %v4420_v34, 0.0  ;;  %v4566_v41 = vld [vmem:[%s7976_s28] sm:$0xff] }
0x2b2d   :  { %v6365_v14 = vpop.f32.mrf.mxu0 }
0x2b2e   :  { %v4432_v37 = vmul.f32 1.442695, %v4429_v36 }
0x2b2f   :  { %v4423_v9 = vpop.f32.mrf.mxu0 }
0x2b30   :  { %6682 = vpow2.f32 %v4432_v37 }
0x2b31   :  { %v6366_v40 = vpop.f32.mrf.mxu0 }
0x2b35   :  { %v6679_v42 = vpop.eup %6678 }
0x2b36   :  { %v5822_v43 = vadd.f32 -1.0, %v6679_v42  ;;  %v6681_v48 = vpop.eup %6680  ;;  %v4567_v42 = vld [vmem:[%s7976_s28 + $0x8] sm:$0xff] }
0x2b37   :  { %v5825_v50 = vadd.f32 -1.0, %v6681_v48 }
0x2b38   :  { %v4203_v47 = vsel %vm4193_vm9, %v4186_v24, %v5822_v43  ;;  %v4622_v43 = vpack.c.bf16 %v4567_v42, %v4566_v41 }
0x2b39   :  { %v4204_v49 = vpack.c.bf16 %v4203_v47, %v4202_v44  ;;  %v4436_v32 = vsel %vm4426_vm15, %v4371_v18, %v5825_v50 }
0x2b3b   :  { %6376 = vmatmul.mubr.msk.bf16.vlgmr.msra.gmra.mxu0 %vm244_vm1, %v4204_v49 }
0x2b3c   :  { %6389 = vmatprep.mubr.msk.bf16.mxu0 %vm6792_vm0, %v6791_v4  ;;  %6386 = vmatpush3.bf16.msra.mxu0 %v4623_v27 }
0x2b3d   :  { %v6683_v51 = vpop.eup %6682  ;;  %6387 = vmatprep.subr.bf16.mxu0 %v6791_v4 }
0x2b3e   :  { %v5826_v5 = vadd.f32 -1.0, %v6683_v51 }
0x2b40   :  { %v4437_v52 = vsel %vm4427_vm6, %v4420_v34, %v5826_v5  ;;  %6388 = vmatpush3.bf16.msra.mxu0 %v4622_v43  ;;  %vm5627_vm6 = vcmask 254976  }
0x2b41   :  { %v4438_v53 = vpack.c.bf16 %v4437_v52, %v4436_v32  ;;  %6399 = vmatprep.subr.bf16.mxu0 %v6791_v4 }
0x2b43   :  { %6370 = vmatmul.mubr.msk.bf16.vlgmr.msra.gmra.mxu1 %vm244_vm1, %v4438_v53 }
0x2b44   :  { %6381 = vmatprep.mubr.msk.bf16.mxu1 %vm6792_vm0, %v6791_v4 }
0x2bfb   :  { %v4521_v54 = vpop.f32.mrf.mxu0 }
0x2bfd   :  { %v6377_v55 = vpop.f32.mrf.mxu0 }
0x2bff   :  { %v4524_v56 = vpop.f32.mrf.mxu0 }
0x2c01   :  { %v6378_v35 = vpop.f32.mrf.mxu0 }
0x2c03   :  { %v4477_v60 = vpop.f32.mrf.mxu1 }
0x2c04   :  { %v4522_v45 = vadd.f32 %v4521_v54, %v4477_v60 }
0x2c05   :  { %v6371_v61 = vpop.f32.mrf.mxu1 }
0x2c06   :  { %v4534_v38 = vadd.f32 %v5829_v58, %v4522_v45 }
0x2c07   :  { %v4480_v63 = vpop.f32.mrf.mxu1 }
0x2c08   :  { %v4525_v46 = vadd.f32 %v4524_v56, %v4480_v63  ;;  %v4536_v57 = vadd.f32 %v4534_v38, %v7659_v21 }
0x2c09   :  { %v6372_v3 = vpop.f32.mrf.mxu1 }
0x2c0a   :  { %v4535_v6 = vadd.f32 %v5829_v58, %v4525_v46  ;;  %v4538_v7 = vsel %vm244_vm1, %v4536_v57, 0.0 }
0x2c0b   :  { %4539 = vadd.xlane.f32.xlu1 %v4538_v7 }
0x2c0c   :  { %v4537_v10 = vadd.f32 %v4535_v6, %v7661_v22  ;;  %v4564_v22 = vld [vmem:[%s7975_s1] sm:$0xff] }
0x2c0d   :  { %v4576_v26 = vpack.c.bf16 %v4565_v59, %v4564_v22 }
0x2c0e   :  { %v4541_v11 = vsel %vm244_vm1, %v4537_v10, 0.0 }
0x2c0f   :  { %4542 = vadd.xlane.f32.xlu0 %v4541_v11  ;;  %6380 = vmatpush3.bf16.msra.mxu1 %v4576_v26 }
0x2c10   :  { %6393 = vmatprep.subr.bf16.mxu1 %v6791_v4 }
0x2c94   :  { %v4540_v12 = vpop.xlane.xlu1 %4539 }
0x2c95   :  { %v4544_v13 = vmul.f32 0.0625, %v4540_v12 }
0x2c97   :  { %v4546_v15 = vsub.f32 %v4536_v57, %v4544_v13 }
0x2c98   :  { %v4543_v16 = vpop.xlane.xlu0 %4542 }
0x2c99   :  { %v4545_v17 = vmul.f32 0.0625, %v4543_v16  ;;  %v4548_v21 = vmul.f32 %v4546_v15, %v4546_v15 }
0x2c9b   :  { %v4547_v18 = vsub.f32 %v4537_v10, %v4545_v17  ;;  %v4550_v19 = vsel %vm244_vm1, %v4548_v21, 0.0 }
0x2c9c   :  { %4551 = vadd.xlane.f32.xlu0 %v4550_v19 }
0x2c9d   :  { %v4549_v23 = vmul.f32 %v4547_v18, %v4547_v18 }
0x2c9f   :  { %v4553_v24 = vsel %vm244_vm1, %v4549_v23, 0.0 }
0x2ca0   :  { %4554 = vadd.xlane.f32.xlu1 %v4553_v24 }
0x2d25   :  { %v4552_v62 = vpop.xlane.xlu0 %4551 }
0x2d26   :  { %v4556_v31 = vmul.f32 0.0625, %v4552_v62 }
0x2d28   :  { %v4558_v25 = vadd.f32 1e-05, %v4556_v31 }
0x2d29   :  { %v4555_v33 = vpop.xlane.xlu1 %4554 }
0x2d2a   :  { %v4557_v34 = vmul.f32 0.0625, %v4555_v33  ;;  %6684 = vrsqrt.f32 %v4558_v25 }
0x2d2c   :  { %v4559_v36 = vadd.f32 1e-05, %v4557_v34 }
0x2d2e   :  { %6686 = vrsqrt.f32 %v4559_v36 }
0x2d37   :  { %v6685_v14 = vpop.eup %6684 }
0x2d38   :  { %v7765_v9 = vmul.f32 %v6685_v14, %v4546_v15 }
0x2d3b   :  { %v6687_v37 = vpop.eup %6686 }
0x2d3c   :  { %v7767_v39 = vmul.f32 %v6687_v37, %v4547_v18 }
0x2d3e   :  { %v4575_v40 = vpack.c.bf16 %v7767_v39, %v7765_v9 }
0x2d40   :  { %6382 = vmatmul.mubr.msk.bf16.vlgmr.msra.gmra.mxu1 %vm244_vm1, %v4575_v40 }
0x2d41   :  { %6395 = vmatprep.mubr.msk.bf16.mxu1 %vm6792_vm0, %v6791_v4 }
0x2e00   :  { %v4614_v44 = vpop.f32.mrf.mxu1 }
0x2e01   :  { %v7777_v47 = vpack.c.bf16 %v4614_v44, %v4614_v44 }
0x2e02   :  { %v6383_v48 = vpop.f32.mrf.mxu1 }
0x2e03   :  { %v4798_v49 = vsel %vm894_vm14, %v7777_v47, 0 }
0x2e04   :  { %v4617_v50 = vpop.f32.mrf.mxu1  ;;  %6394 = vmatpush3.bf16.msra.mxu1 %v4798_v49 }
0x2e05   :  { %v4621_v51 = vpack.c.bf16 %v4617_v50, %v4614_v44  ;;  %v7781_v5 = vpack.c.bf16 %v4617_v50, %v4617_v50  ;;  %6405 = vmatprep.subr.bf16.mxu1 %v6791_v4 }
0x2e06   :  { %v6384_v32 = vpop.f32.mrf.mxu1 }
0x2e07   :  { %6390 = vmatmul.mubr.msk.bf16.vlgmr.msra.gmra.mxu0 %vm304_vm4, %v4621_v51  ;;  %v4844_v52 = vsel %vm894_vm14, %v7781_v5, 0 }
0x2e08   :  { %6400 = vmatpush3.bf16.msra.mxu0 %v4844_v52  ;;  %6401 = vmatprep.mubr.msk.bf16.mxu0 %vm6792_vm0, %v6791_v4 }
0x2e09   :  { %6411 = vmatprep.subr.bf16.mxu0 %v6791_v4 }
0x2ec7   :  { %v4661_v53 = vpop.f32.mrf.mxu0 }
0x2ec8   :  { %4670 = vrot.lane.b32.xlu0 %v4661_v53, %s6796_s13 }
0x2ec9   :  { %v6391_v54 = vpop.f32.mrf.mxu0 }
0x2ecb   :  { %v4664_v55 = vpop.f32.mrf.mxu0 }
0x2ecc   :  { %4741 = vperm.xlu0 %6527, %v4661_v53   ;;  %4672 = vrot.lane.b32.xlu1 %v4664_v55, %s6796_s13 }
0x2ecd   :  { %v6392_v56 = vpop.f32.mrf.mxu0 }
0x2ed0   :  { %6530 = vset.pattern.permute.xlu0 %v6794_v2  ;;  %4900 = vrot.lane.b32.xlu1 %v4661_v53, %s6795_s5 }
0x2ed1   :  { %4975 = vperm.xlu0 %6530, %v4664_v55  }
0x2ed4   :  { %4902 = vrot.lane.b32.xlu1 %v4664_v55, %s6795_s5  ;;  %s7979_s5 = sld [smem:[#allocation32_spill]] }
0x2ed8   :  { %4971 = vperm.xlu1 %6528, %v4661_v53  }
0x2edc   :  { %6529 = vset.pattern.permute.xlu1 %v6793_v1 }
0x2edd   :  { %4745 = vperm.xlu1 %6529, %v4664_v55  }
0x2f3a   :  { %v4671_v35 = vpop.permute.xlu0 %4670 }
0x2f3b   :  { %4676 = vxpose.xlu1.b32.start.end [1/1] (short) (narrow) %v4671_v35, 8 }
0x2f3e   :  { %v4673_v58 = vpop.permute.xlu1 %4672 }
0x2f42   :  { %v4901_v60 = vpop.permute.xlu1 %4900 }
0x2f43   :  { %4906 = vxpose.xlu0.b32.start.end [1/1] (short) (narrow) %v4901_v60, 8 }
0x2f46   :  { %v4903_v45 = vpop.permute.xlu1 %4902 }
0x2f47   :  { %4708 = vxpose.xlu0.b32.start.end [1/1] (short) (narrow) %v4673_v58, 8  ;;  %v4742_v2 = vpop.permute.xlu0 %4741 }
0x2f4b   :  { %4938 = vxpose.xlu0.b32.start.end [1/1] (short) (narrow) %v4903_v45, 8 }
0x2f4c   :  { %v4976_v3 = vpop.permute.xlu0 %4975 }
0x2f53   :  { %v4972_v61 = vpop.permute.xlu1 %4971 }
0x2f58   :  { %v4746_v38 = vpop.permute.xlu1 %4745 }
0x2fb7   :  { %v4692_v63 = vpop.trf.xlu1 }
0x2fb8   :  { %v4751_v46 = vrot.slane %v4692_v63, %v7167_v20 }
0x2fba   :  { %v4756_v57 = vmul.f32 %v4751_v46, %v4742_v2 }
0x2fbc   :  { %v4760_v6 = vmul.f32 0.01, %v4756_v57  ;;  %vm4758_vm4 = vcmp.ge.f32.partialorder %v4756_v57, 0.0 }
0x2fbe   :  { %v4762_v7 = vsel %vm4758_vm4, %v4756_v57, %v4760_v6 }
0x2fbf   :  { %v4922_v10 = vpop.trf.xlu0  ;;  %v4764_v11 = vsel %vm3172_vm7, %v4762_v7, -9e+15 }
0x2fc0   :  { %v4981_v12 = vrot.slane %v4922_v10, %v7167_v20  ;;  %v4766_v13 = vsel %vm862_vm5, %v4764_v11, -inf }
0x2fc1   :  { %4767 = vmax.xlane.f32.xlu1 %v4766_v13 }
0x2fc2   :  { %v4986_v15 = vmul.f32 %v4981_v12, %v4972_v61 }
0x2fc3   :  { %v4724_v16 = vpop.trf.xlu0 }
0x2fc4   :  { %v4990_v17 = vmul.f32 0.01, %v4986_v15  ;;  %v4755_v21 = vrot.slane %v4724_v16, %v7167_v20  ;;  %vm4988_vm3 = vcmp.ge.f32.partialorder %v4986_v15, 0.0 }
0x2fc6   :  { %v4757_v18 = vmul.f32 %v4755_v21, %v4746_v38  ;;  %v4992_v19 = vsel %vm4988_vm3, %v4986_v15, %v4990_v17 }
0x2fc7   :  { %v4954_v23 = vpop.trf.xlu0  ;;  %v4994_v24 = vsel %vm3172_vm7, %v4992_v19, -9e+15 }
0x2fc8   :  { %v4761_v22 = vmul.f32 0.01, %v4757_v18  ;;  %v4985_v59 = vrot.slane %v4954_v23, %v7167_v20  ;;  %v4996_v26 = vsel %vm862_vm5, %v4994_v24, -inf  ;;  %vm4759_vm8 = vcmp.ge.f32.partialorder %v4757_v18, 0.0 }
0x2fc9   :  { %4997 = vmax.xlane.f32.xlu1 %v4996_v26  ;;  %v4572_v26 = vld [vmem:[%s7977_s2 + $0x10] sm:$0xff] }
0x2fca   :  { %v4987_v30 = vmul.f32 %v4985_v59, %v4976_v3  ;;  %v4763_v8 = vsel %vm4759_vm8, %v4757_v18, %v4761_v22  ;;  %v4571_v22 = vld [vmem:[%s7977_s2 + $0x8] sm:$0xff] }
0x2fcb   :  { %v4765_v27 = vsel %vm3173_vm10, %v4763_v8, -9e+15 }
0x2fcc   :  { %v4991_v62 = vmul.f32 0.01, %v4987_v30  ;;  %v4769_v31 = vsel %vm862_vm5, %v4765_v27, -inf  ;;  %vm4989_vm11 = vcmp.ge.f32.partialorder %v4987_v30, 0.0 }
0x2fcd   :  { %4770 = vmax.xlane.f32.xlu0 %v4769_v31 }
0x2fce   :  { %v4993_v25 = vsel %vm4989_vm11, %v4987_v30, %v4991_v62  ;;  %v4573_v30 = vld [vmem:[%s7977_s2 + $0x18] sm:$0xff] }
0x2fcf   :  { %v4995_v33 = vsel %vm3173_vm10, %v4993_v25, -9e+15  ;;  %v5133_v8 = vpack.c.bf16 %v4573_v30, %v4572_v26 }
0x2fd0   :  { %v4999_v34 = vsel %vm862_vm5, %v4995_v33, -inf }
0x2fd1   :  { %5000 = vmax.xlane.f32.xlu1 %v4999_v34 }
0x304a   :  { %v4768_v36 = vpop.xlane.xlu1 %4767 }
0x304b   :  { %v4772_v14 = vsub.f32 %v4764_v11, %v4768_v36 }
0x304d   :  { %v4774_v37 = vmul.f32 1.442695, %v4772_v14 }
0x304f   :  { %6688 = vpow2.f32 %v4774_v37 }
0x3052   :  { %v4998_v40 = vpop.xlane.xlu1 %4997 }
0x3053   :  { %v5002_v41 = vsub.f32 %v4994_v24, %v4998_v40  ;;  %v4570_v24 = vld [vmem:[%s7977_s2] sm:$0xff] }
0x3054   :  { %v4899_v59 = vpack.c.bf16 %v4571_v22, %v4570_v24 }
0x3055   :  { %v5004_v42 = vmul.f32 1.442695, %v5002_v41 }
0x3056   :  { %v4771_v43 = vpop.xlane.xlu0 %4770 }
0x3057   :  { %6690 = vpow2.f32 %v5004_v42  ;;  %v4773_v44 = vsub.f32 %v4765_v27, %v4771_v43 }
0x3059   :  { %v4776_v48 = vmul.f32 1.442695, %v4773_v44 }
0x305a   :  { %v5001_v49 = vpop.xlane.xlu1 %5000 }
0x305b   :  { %6692 = vpow2.f32 %v4776_v48  ;;  %v5003_v50 = vsub.f32 %v4995_v33, %v5001_v49 }
0x305c   :  { %v6689_v51 = vpop.eup %6688 }
0x305d   :  { %v5006_v32 = vmul.f32 1.442695, %v5003_v50  ;;  %v4778_v52 = vsel %vm862_vm5, %v6689_v51, 0.0 }
0x305e   :  { %4779 = vadd.xlane.f32.xlu0 %v4778_v52 }
0x305f   :  { %6694 = vpow2.f32 %v5006_v32 }
0x3064   :  { %v6691_v53 = vpop.eup %6690 }
0x3065   :  { %v5008_v54 = vsel %vm862_vm5, %v6691_v53, 0.0 }
0x3066   :  { %5009 = vadd.xlane.f32.xlu0 %v5008_v54 }
0x3068   :  { %v6693_v55 = vpop.eup %6692 }
0x3069   :  { %v4781_v56 = vsel %vm862_vm5, %v6693_v55, 0.0 }
0x306a   :  { %4782 = vadd.xlane.f32.xlu1 %v4781_v56 }
0x306c   :  { %v6695_v35 = vpop.eup %6694 }
0x306d   :  { %v5011_v58 = vsel %vm862_vm5, %v6695_v35, 0.0 }
0x306e   :  { %5012 = vadd.xlane.f32.xlu1 %v5011_v58 }
0x307c   :  { %5023 = vrot.lane.b32.xlu0 %v7777_v47, %s6798_s9 }
0x307f   :  { %5072 = vrot.lane.b32.xlu1 %v7781_v5, %s6798_s9 }
0x30e7   :  { %v4780_v60 = vpop.xlane.xlu0 %4779 }
0x30e8   :  { %6696 = vrcp.f32 %v4780_v60 }
0x30ef   :  { %v5010_v45 = vpop.xlane.xlu0 %5009 }
0x30f0   :  { %6698 = vrcp.f32 %v5010_v45 }
0x30f3   :  { %v4783_v61 = vpop.xlane.xlu1 %4782  ;;  %v5024_v46 = vpop.permute.xlu0 %5023 }
0x30f4   :  { %6700 = vrcp.f32 %v4783_v61  ;;  %v5029_v47 = vsel %vm894_vm14, %v5024_v46, 0 }
0x30f5   :  { %v6697_v38 = vpop.eup %6696 }
0x30f6   :  { %v4786_v2 = vmul.f32 %v6697_v38, %v6689_v51 }
0x30f7   :  { %v5013_v63 = vpop.xlane.xlu1 %5012 }
0x30f8   :  { %6702 = vrcp.f32 %v5013_v63  ;;  %v4788_v57 = vsel %vm3172_vm7, %v4786_v2, 0.0 }
0x30f9   :  { %v4790_v3 = vpack.c.bf16 %v4788_v57, %v4788_v57 }
0x30fb   :  { %6396 = vmatmul.mubr.msk.bf16.vlgmr.msra.gmra.mxu1 %vm862_vm5, %v4790_v3  ;;  %v5073_v13 = vpop.permute.xlu1 %5072 }
0x30fc   :  { %6406 = vmatpush3.bf16.msra.mxu1 %v5029_v47  ;;  %6407 = vmatprep.mubr.msk.bf16.mxu1 %vm6792_vm0, %v6791_v4  ;;  %v5078_v18 = vsel %vm894_vm14, %v5073_v13, 0  ;;  %v5842_v13 = vld [vmem:[%s7978_s0] ss:$0 sm:$0xff] }
0x30fd   :  { %v6699_v5 = vpop.eup %6698  ;;  %6417 = vmatprep.subr.bf16.mxu1 %v6791_v4 }
0x30fe   :  { %v5016_v6 = vmul.f32 %v6699_v5, %v6691_v53 }
0x3100   :  { %v5018_v7 = vsel %vm3172_vm7, %v5016_v6, 0.0 }
0x3101   :  { %v6701_v10 = vpop.eup %6700  ;;  %v5020_v11 = vpack.c.bf16 %v5018_v7, %v5018_v7 }
0x3102   :  { %v4787_v12 = vmul.f32 %v6701_v10, %v6693_v55 }
0x3103   :  { %6408 = vmatmul.mubr.msk.bf16.vlgmr.msra.gmra.mxu1 %vm862_vm5, %v5020_v11 }
0x3104   :  { %v4789_v15 = vsel %vm3173_vm10, %v4787_v12, 0.0  ;;  %6419 = vmatprep.mubr.msk.bf16.mxu1 %vm6792_vm0, %v6791_v4  ;;  %6418 = vmatpush3.bf16.msra.mxu1 %v5133_v8 }
0x3105   :  { %v6703_v16 = vpop.eup %6702  ;;  %v4791_v17 = vpack.c.bf16 %v4789_v15, %v4789_v15  ;;  %6429 = vmatprep.subr.bf16.mxu1 %v6791_v4 }
0x3106   :  { %v5017_v21 = vmul.f32 %v6703_v16, %v6695_v35 }
0x3107   :  { %6402 = vmatmul.mubr.msk.bf16.vlgmr.msra.gmra.mxu0 %vm862_vm5, %v4791_v17 }
0x3108   :  { %6412 = vmatpush3.bf16.msra.mxu0 %v5078_v18  ;;  %6413 = vmatprep.mubr.msk.bf16.mxu0 %vm6792_vm0, %v6791_v4  ;;  %v5019_v19 = vsel %vm3173_vm10, %v5017_v21, 0.0 }
0x3109   :  { %6423 = vmatprep.subr.bf16.mxu0 %v6791_v4  ;;  %v5021_v23 = vpack.c.bf16 %v5019_v19, %v5019_v19 }
0x310f   :  { %6414 = vmatmul.mubr.msk.bf16.vlgmr.msra.gmra.mxu0 %vm862_vm5, %v5021_v23 }
0x3110   :  { %6425 = vmatprep.mubr.msk.bf16.mxu0 %vm6792_vm0, %v6791_v4  ;;  %6424 = vmatpush3.bf16.msra.mxu0 %v4899_v59 }
0x3111   :  { %6435 = vmatprep.subr.bf16.mxu0 %v6791_v4 }
0x31bb   :  { %v4834_v27 = vpop.f32.mrf.mxu1 }
0x31bc   :  { %v4888_v25 = vmin.f32 %v4834_v27, 0.0  ;;  %vm4886_vm12 = vcmp.gt.f32.partialorder %v4834_v27, 0.0 }
0x31bd   :  { %v6397_v62 = vpop.f32.mrf.mxu1 }
0x31be   :  { %v4890_v36 = vmul.f32 1.442695, %v4888_v25 }
0x31bf   :  { %v4837_v31 = vpop.f32.mrf.mxu1 }
0x31c0   :  { %6704 = vpow2.f32 %v4890_v36 }
0x31c1   :  { %v6398_v33 = vpop.f32.mrf.mxu1 }
0x31c3   :  { %v5065_v34 = vpop.f32.mrf.mxu1 }
0x31c4   :  { %v5122_v41 = vmin.f32 %v5065_v34, 0.0  ;;  %vm5120_vm9 = vcmp.gt.f32.partialorder %v5065_v34, 0.0 }
0x31c5   :  { %v6409_v14 = vpop.f32.mrf.mxu1 }
0x31c6   :  { %v5124_v50 = vmul.f32 1.442695, %v5122_v41  ;;  %v5260_v41 = vld [vmem:[%s7980_s17] sm:$0xff] }
0x31c7   :  { %v4880_v37 = vpop.f32.mrf.mxu0  ;;  %v5068_v40 = vpop.f32.mrf.mxu1 }
0x31c8   :  { %v4889_v42 = vmin.f32 %v4880_v37, 0.0  ;;  %vm4887_vm13 = vcmp.gt.f32.partialorder %v4880_v37, 0.0 }
0x31c9   :  { %v6403_v43 = vpop.f32.mrf.mxu0  ;;  %v6410_v44 = vpop.f32.mrf.mxu1 }
0x31ca   :  { %v4892_v48 = vmul.f32 1.442695, %v4889_v42  ;;  %v5261_v42 = vld [vmem:[%s7980_s17 + $0x8] sm:$0xff] }
0x31cb   :  { %v4883_v49 = vpop.f32.mrf.mxu0  ;;  %v5309_v43 = vpack.c.bf16 %v5261_v42, %v5260_v41 }
0x31cc   :  { %6706 = vpow2.f32 %v4892_v48 }
0x31cd   :  { %v6404_v51 = vpop.f32.mrf.mxu0  ;;  %6708 = vpow2.f32 %v5124_v50  ;;  %v6705_v56 = vpop.eup %6704 }
0x31ce   :  { %v5834_v58 = vadd.f32 -1.0, %v6705_v56 }
0x31cf   :  { %v5114_v32 = vpop.f32.mrf.mxu0 }
0x31d0   :  { %v5123_v52 = vmin.f32 %v5114_v32, 0.0  ;;  %v4896_v61 = vsel %vm4886_vm12, %v4834_v27, %v5834_v58  ;;  %vm5121_vm15 = vcmp.gt.f32.partialorder %v5114_v32, 0.0 }
0x31d1   :  { %v6415_v53 = vpop.f32.mrf.mxu0 }
0x31d2   :  { %v5126_v54 = vmul.f32 1.442695, %v5123_v52 }
0x31d3   :  { %v5117_v55 = vpop.f32.mrf.mxu0 }
0x31d4   :  { %6710 = vpow2.f32 %v5126_v54 }
0x31d5   :  { %v6416_v35 = vpop.f32.mrf.mxu0 }
0x31d9   :  { %v6707_v60 = vpop.eup %6706 }
0x31da   :  { %v5835_v45 = vadd.f32 -1.0, %v6707_v60  ;;  %v6709_v2 = vpop.eup %6708 }
0x31db   :  { %v5838_v46 = vadd.f32 -1.0, %v6709_v2 }
0x31dc   :  { %v4897_v38 = vsel %vm4887_vm13, %v4880_v37, %v5835_v45  ;;  %v5259_v37 = vld [vmem:[%s7979_s5 + $0x8] sm:$0xff] }
0x31dd   :  { %v4898_v63 = vpack.c.bf16 %v4897_v38, %v4896_v61  ;;  %v5130_v47 = vsel %vm5120_vm9, %v5065_v34, %v5838_v46 }
0x31df   :  { %6426 = vmatmul.mubr.msk.bf16.vlgmr.msra.gmra.mxu0 %vm244_vm1, %v4898_v63 }
0x31e0   :  { %6437 = vmatprep.mubr.msk.bf16.mxu0 %vm6792_vm0, %v6791_v4  ;;  %6436 = vmatpush3.bf16.msra.mxu0 %v5309_v43 }
0x31e1   :  { %v6711_v57 = vpop.eup %6710  ;;  %6447 = vmatprep.subr.bf16.mxu0 %v6791_v4 }
0x31e2   :  { %v5839_v3 = vadd.f32 -1.0, %v6711_v57 }
0x31e4   :  { %v5131_v5 = vsel %vm5121_vm15, %v5114_v32, %v5839_v3 }
0x31e5   :  { %v5132_v6 = vpack.c.bf16 %v5131_v5, %v5130_v47 }
0x31e7   :  { %6420 = vmatmul.mubr.msk.bf16.vlgmr.msra.gmra.mxu1 %vm244_vm1, %v5132_v6 }
0x31e8   :  { %6431 = vmatprep.mubr.msk.bf16.mxu1 %vm6792_vm0, %v6791_v4 }
0x329f   :  { %v5215_v7 = vpop.f32.mrf.mxu0 }
0x32a1   :  { %v6427_v10 = vpop.f32.mrf.mxu0 }
0x32a3   :  { %v5218_v11 = vpop.f32.mrf.mxu0 }
0x32a5   :  { %v6428_v12 = vpop.f32.mrf.mxu0 }
0x32a7   :  { %v5171_v15 = vpop.f32.mrf.mxu1 }
0x32a8   :  { %v5216_v16 = vadd.f32 %v5215_v7, %v5171_v15 }
0x32a9   :  { %v6421_v17 = vpop.f32.mrf.mxu1 }
0x32aa   :  { %v5228_v21 = vadd.f32 %v5842_v13, %v5216_v16 }
0x32ab   :  { %v5174_v18 = vpop.f32.mrf.mxu1 }
0x32ac   :  { %v5219_v19 = vadd.f32 %v5218_v11, %v5174_v18  ;;  %v5230_v23 = vadd.f32 %v5228_v21, %v7765_v9 }
0x32ad   :  { %v6422_v24 = vpop.f32.mrf.mxu1 }
0x32ae   :  { %v5229_v22 = vadd.f32 %v5842_v13, %v5219_v19  ;;  %v5232_v59 = vsel %vm244_vm1, %v5230_v23, 0.0 }
0x32af   :  { %5233 = vadd.xlane.f32.xlu1 %v5232_v59 }
0x32b0   :  { %v5231_v26 = vadd.f32 %v5229_v22, %v7767_v39  ;;  %v5258_v39 = vld [vmem:[%s7979_s5] sm:$0xff] }
0x32b1   :  { %v5263_v40 = vpack.c.bf16 %v5259_v37, %v5258_v39 }
0x32b2   :  { %v5235_v30 = vsel %vm244_vm1, %v5231_v26, 0.0 }
0x32b3   :  { %5236 = vadd.xlane.f32.xlu0 %v5235_v30  ;;  %6430 = vmatpush3.bf16.msra.mxu1 %v5263_v40 }
0x32b4   :  { %6441 = vmatprep.subr.bf16.mxu1 %v6791_v4 }
0x3338   :  { %v5234_v8 = vpop.xlane.xlu1 %5233 }
0x3339   :  { %v5238_v27 = vmul.f32 0.0625, %v5234_v8 }
0x333b   :  { %v5240_v62 = vsub.f32 %v5230_v23, %v5238_v27 }
0x333c   :  { %v5237_v31 = vpop.xlane.xlu0 %5236 }
0x333d   :  { %v5239_v25 = vmul.f32 0.0625, %v5237_v31  ;;  %v5242_v9 = vmul.f32 %v5240_v62, %v5240_v62 }
0x333f   :  { %v5241_v33 = vsub.f32 %v5231_v26, %v5239_v25  ;;  %v5244_v34 = vsel %vm244_vm1, %v5242_v9, 0.0 }
0x3340   :  { %5245 = vadd.xlane.f32.xlu0 %v5244_v34 }
0x3341   :  { %v5243_v36 = vmul.f32 %v5241_v33, %v5241_v33 }
0x3343   :  { %v5247_v14 = vsel %vm244_vm1, %v5243_v36, 0.0  ;;  %v5628_v36 = vsel %vm5627_vm6, %v7554_v0, 0.0 }
0x3344   :  { %5248 = vadd.xlane.f32.xlu1 %v5247_v14 }
0x33c9   :  { %v5246_v44 = vpop.xlane.xlu0 %5245 }
0x33ca   :  { %v5250_v48 = vmul.f32 0.0625, %v5246_v44 }
0x33cc   :  { %v5252_v49 = vadd.f32 1e-05, %v5250_v48 }
0x33cd   :  { %v5249_v50 = vpop.xlane.xlu1 %5248 }
0x33ce   :  { %v5251_v51 = vmul.f32 0.0625, %v5249_v50  ;;  %6712 = vrsqrt.f32 %v5252_v49 }
0x33d0   :  { %v5253_v32 = vadd.f32 1e-05, %v5251_v51 }
0x33d2   :  { %6714 = vrsqrt.f32 %v5253_v32 }
0x33db   :  { %v6713_v52 = vpop.eup %6712 }
0x33dc   :  { %v5256_v54 = vmul.f32 %v6713_v52, %v5240_v62 }
0x33df   :  { %v6715_v53 = vpop.eup %6714 }
0x33e0   :  { %v5257_v55 = vmul.f32 %v6715_v53, %v5241_v33 }
0x33e2   :  { %v5262_v56 = vpack.c.bf16 %v5257_v55, %v5256_v54 }
0x33e4   :  { %6432 = vmatmul.mubr.msk.bf16.vlgmr.msra.gmra.mxu1 %vm244_vm1, %v5262_v56 }
0x33e5   :  { %6443 = vmatprep.mubr.msk.bf16.mxu1 %vm6792_vm0, %v6791_v4 }
0x34a4   :  { %v5301_v35 = vpop.f32.mrf.mxu1 }
0x34a5   :  { %v5478_v58 = vpack.c.bf16 %v5301_v35, %v5301_v35 }
0x34a6   :  { %v6433_v60 = vpop.f32.mrf.mxu1 }
0x34a7   :  { %v5484_v45 = vsel %vm894_vm14, %v5478_v58, 0 }
0x34a8   :  { %v5304_v61 = vpop.f32.mrf.mxu1  ;;  %6442 = vmatpush3.bf16.msra.mxu1 %v5484_v45 }
0x34a9   :  { %v5308_v38 = vpack.c.bf16 %v5304_v61, %v5301_v35  ;;  %v5479_v2 = vpack.c.bf16 %v5304_v61, %v5304_v61 }
0x34aa   :  { %v6434_v63 = vpop.f32.mrf.mxu1 }
0x34ab   :  { %6438 = vmatmul.mubr.msk.bf16.vlgmr.msra.gmra.mxu0 %vm244_vm1, %v5308_v38  ;;  %v5530_v46 = vsel %vm894_vm14, %v5479_v2, 0 }
0x34ac   :  { %6448 = vmatpush3.bf16.msra.mxu0 %v5530_v46  ;;  %6449 = vmatprep.mubr.msk.bf16.mxu0 %vm6792_vm0, %v6791_v4 }
0x356b   :  { %v5347_v57 = vpop.f32.mrf.mxu0 }
0x356c   :  { %5356 = vrot.lane.b32.xlu1 %v5347_v57, %s6796_s13 }
0x356d   :  { %v6439_v3 = vpop.f32.mrf.mxu0 }
0x356f   :  { %v5350_v47 = vpop.f32.mrf.mxu0 }
0x3570   :  { %5427 = vperm.xlu1 %6529, %v5347_v57   ;;  %5358 = vrot.lane.b32.xlu0 %v5350_v47, %s6796_s13  ;;  %s6799_s13 = smov [#allocation3]  }
0x3571   :  { %v6440_v5 = vpop.f32.mrf.mxu0  ;;  %s5696_s21 = sshll.u32 %s6799_s13, 4  ;;  %s5697_s21 = int_to_ptr.vmem [resolvable:$true] %s5696_s21 }
0x3572   :  { %s6728_s25 = scalar_lea.vmem %s5697_s21, 32  ;;  %p6729_p1 = scmp.lt.s32.totalorder %s5697_s21, %s5697_s21 }
0x3574   :  { %5431 = vperm.xlu1 %6529, %v5350_v47  }
0x35de   :  { %v5357_v6 = vpop.permute.xlu1 %5356 }
0x35df   :  { %5362 = vxpose.xlu1.b32.start.end [1/1] (short) (narrow) %v5357_v6, 8 }
0x35e2   :  { %v5359_v7 = vpop.permute.xlu0 %5358 }
0x35e3   :  { %5394 = vxpose.xlu0.b32.start.end [1/1] (short) (narrow) %v5359_v7, 8 }
0x35eb   :  { %v5428_v10 = vpop.permute.xlu1 %5427 }
0x35ef   :  { %v5432_v11 = vpop.permute.xlu1 %5431 }
0x365b   :  { %v5378_v12 = vpop.trf.xlu1 }
0x365c   :  { %v5437_v13 = vrot.slane %v5378_v12, %v7167_v20  ;;  %v5848_v12 = vld [vmem:[%s7023_s20] ss:$0 sm:$0xff]  ;;  %s6724_s20 = scalar_lea.vmem %s5697_s21, 16 }
0x365d   :  { %p6725_p0 = scmp.ne.s32.totalorder %s5697_s21, %s6724_s20  ;;  %p6730_p2 = scmp.lt.s32.totalorder %s6728_s25, %s6724_s20 }
0x365e   :  { %v5442_v4 = vmul.f32 %v5437_v13, %v5428_v10 }
0x365f   :  { %v5410_v15 = vpop.trf.xlu0  ;;  %p6731_p3 = por %p6730_p2, %p6729_p1 }
0x3660   :  { %v5446_v16 = vmul.f32 0.01, %v5442_v4  ;;  %v5441_v17 = vrot.slane %v5410_v15, %v7167_v20  ;;  %vm5444_vm0 = vcmp.ge.f32.partialorder %v5442_v4, 0.0 }
0x3661   :  { %p6732_p4 = pnand %p6731_p3, %p6725_p0 }
0x3662   :  { %v5443_v21 = vmul.f32 %v5441_v17, %v5432_v11  ;;  %v5448_v18 = vsel %vm5444_vm0, %v5442_v4, %v5446_v16 }
0x3663   :  { %v5450_v19 = vsel %vm3172_vm7, %v5448_v18, -9e+15  ;;  %v5849_v18 = vld [vmem:[#allocation2] ss:$0 sm:$0xff] }
0x3664   :  { %v5447_v23 = vmul.f32 0.01, %v5443_v21  ;;  %v5452_v24 = vsel %vm862_vm5, %v5450_v19, -inf  ;;  %vm5445_vm14 = vcmp.ge.f32.partialorder %v5443_v21, 0.0 }
0x3665   :  { %5453 = vmax.xlane.f32.xlu1 %v5452_v24 }
0x3666   :  { %v5449_v22 = vsel %vm5445_vm14, %v5443_v21, %v5447_v23 }
0x3667   :  { %v5451_v59 = vsel %vm3173_vm10, %v5449_v22, -9e+15 }
0x3668   :  { %v5455_v26 = vsel %vm862_vm5, %v5451_v59, -inf }
0x3669   :  { %5456 = vmax.xlane.f32.xlu0 %v5455_v26 }
0x36ee   :  { %v5454_v30 = vpop.xlane.xlu1 %5453 }
0x36ef   :  { %v5458_v20 = vsub.f32 %v5450_v19, %v5454_v30 }
0x36f1   :  { %v5460_v8 = vmul.f32 1.442695, %v5458_v20 }
0x36f2   :  { %v5457_v27 = vpop.xlane.xlu0 %5456 }
0x36f3   :  { %6716 = vpow2.f32 %v5460_v8  ;;  %v5459_v62 = vsub.f32 %v5451_v59, %v5457_v27 }
0x36f5   :  { %v5462_v31 = vmul.f32 1.442695, %v5459_v62 }
0x36f7   :  { %6718 = vpow2.f32 %v5462_v31 }
0x3700   :  { %v6717_v25 = vpop.eup %6716 }
0x3701   :  { %v5464_v9 = vsel %vm862_vm5, %v6717_v25, 0.0 }
0x3702   :  { %5465 = vadd.xlane.f32.xlu0 %v5464_v9 }
0x3704   :  { %v6719_v33 = vpop.eup %6718 }
0x3705   :  { %v5467_v34 = vsel %vm862_vm5, %v6719_v33, 0.0 }
0x3706   :  { %5468 = vadd.xlane.f32.xlu0 %v5467_v34 }
0x370a   :  { %5629 = vadd.xlane.f32.xlu0 %v5628_v36 }
0x378b   :  { %v5466_v14 = vpop.xlane.xlu0 %5465 }
0x378c   :  { %6720 = vrcp.f32 %v5466_v14 }
0x378f   :  { %v5469_v39 = vpop.xlane.xlu0 %5468 }
0x3790   :  { %6722 = vrcp.f32 %v5469_v39 }
0x3793   :  { %v5630_v21 = vpop.xlane.xlu0 %5629 }
0x3799   :  { %v6721_v37 = vpop.eup %6720 }
0x379a   :  { %v5472_v40 = vmul.f32 %v6721_v37, %v6717_v25 }
0x379c   :  { %v5474_v41 = vsel %vm3172_vm7, %v5472_v40, 0.0 }
0x379d   :  { %v6723_v42 = vpop.eup %6722  ;;  %v5476_v43 = vpack.c.bf16 %v5474_v41, %v5474_v41 }
0x379e   :  { %v5473_v44 = vmul.f32 %v6723_v42, %v6719_v33 }
0x379f   :  { %6444 = vmatmul.mubr.msk.bf16.vlgmr.msra.gmra.mxu1 %vm862_vm5, %v5476_v43 }
0x37a0   :  { %v5475_v48 = vsel %vm3173_vm10, %v5473_v44, 0.0 }
0x37a1   :  { %v5477_v49 = vpack.c.bf16 %v5475_v48, %v5475_v48 }
0x37a3   :  { %6450 = vmatmul.mubr.msk.bf16.vlgmr.msra.gmra.mxu0 %vm862_vm5, %v5477_v49  ;;  %vm5644_vm5 = vcmask 123904  }
0x385f   :  { %v5520_v0 = vpop.f32.mrf.mxu1 }
0x3860   :  { %vm5572_vm4 = vcmp.ge.f32.partialorder %v5520_v0, 0.0  ;;  %v5574_v50 = vmul.f32 0.01, %v5520_v0 }
0x3861   :  { %v6445_v51 = vpop.f32.mrf.mxu1 }
0x3862   :  { %v5576_v32 = vsel %vm5572_vm4, %v5520_v0, %v5574_v50 }
0x3863   :  { %v5594_v52 = vsel %vm244_vm1, %v5576_v32, 0.0  ;;  %v5523_v28 = vpop.f32.mrf.mxu1  ;;  %v5566_v53 = vpop.f32.mrf.mxu0 }
0x3864   :  { %v5595_v54 = vrot.slane %v5594_v52, 4  ;;  %vm5573_vm7 = vcmp.ge.f32.partialorder %v5566_v53, 0.0  ;;  %v5575_v55 = vmul.f32 0.01, %v5566_v53 }
0x3865   :  { %v6446_v56 = vpop.f32.mrf.mxu1  ;;  %v6451_v35 = vpop.f32.mrf.mxu0 }
0x3866   :  { %v5596_v58 = vadd.f32 %v5595_v54, %v5594_v52  ;;  %v5577_v29 = vsel %vm5573_vm7, %v5566_v53, %v5575_v55 }
0x3867   :  { %v5601_v60 = vsel %vm244_vm1, %v5577_v29, 0.0  ;;  %v5569_v45 = vpop.f32.mrf.mxu0  ;;  %vm5688_vm1 = vcmask 8192  }
0x3868   :  { %v5597_v61 = vrot.slane %v5596_v58, 2  ;;  %v5602_v38 = vrot.slane %v5601_v60, 4 }
0x3869   :  { %v6452_v2 = vpop.f32.mrf.mxu0 }
0x386a   :  { %v5598_v63 = vadd.f32 %v5597_v61, %v5596_v58  ;;  %v5603_v46 = vadd.f32 %v5602_v38, %v5601_v60 }
0x386c   :  { %v5599_v57 = vrot.slane %v5598_v63, 1  ;;  %v5604_v3 = vrot.slane %v5603_v46, 2 }
0x386e   :  { %v5605_v47 = vadd.f32 %v5604_v3, %v5603_v46  ;;  %v5600_v5 = vadd.f32 %v5599_v57, %v5598_v63 }
0x3870   :  { %v5606_v6 = vrot.slane %v5605_v47, 1  ;;  %v5608_v10 = vmul.f32 0.125, %v5600_v5 }
0x3872   :  { %v5607_v7 = vadd.f32 %v5606_v6, %v5605_v47  ;;  %v5637_v4 = vmul.f32 %v5848_v12, %v5608_v10 }
0x3874   :  { %v5609_v11 = vmul.f32 0.125, %v5607_v7 }
0x3876   :  { %v5638_v13 = vmul.f32 %v5848_v12, %v5609_v11 }
0x3878   :  { %v5641_v15 = vrot.slane %v5638_v13, 7 }
0x387a   :  { %v5642_v16 = vsel %vm5624_vm2, %v5641_v15, %v5637_v4 }
0x387b   :  { %v5645_v17 = vsel %vm5644_vm5, %v5642_v16, 0.0 }
0x387c   :  { %5646 = vadd.xlane.f32.xlu1 %v5645_v17 }
0x3905   :  { %v5647_v19 = vpop.xlane.xlu1 %5646 }
0x3906   :  { %v5648_v23 = vadd.f32 %v5647_v19, %v5630_v21 }
0x3908   :  { %v5655_v24 = vadd.f32 %v5849_v18, %v5648_v23 }
0x390a   :  { %5656 = vxpose.xlu0.b32.start.end [1/1] (short) (narrow) %v5655_v24, 8 }
0x3933   :  { %6531 = vset.pattern.permute.xlu0 %v6793_v1 }
0x3986   :  { %v5672_v22 = vpop.trf.xlu0 }
0x3987   :  { %5689 = vst.msk [vmem:[#allocation3] sm:$0x1] %vm5688_vm1, %v5672_v22 }
0x3988   :  { %6735 = shalt.err (!%p6732_p4)
}
0x3989   :  { %5699 = dma.vmem_to_hbm [thread:$0]  %s5697_s21, 16, %s7031_s4, [#allocation4]  }
0x398a   :  { %6744 = dma.done.wait [#allocation4], 16  }
0x398b   :  { %6745 = vsyncadd [#allocation4], 4294967280 }
0x398c   :  { %5703 = vsyncpa [#allocation4], 1 }

</bundles_post_ra>
